<compile_context>
chip_gen: v6e
topology: v6e:2x2x1
jax: 0.10.0
libtpu: 0.0.40
codegen_flags: <defaults>
</compile_context>

<pallas_src>
import jax
import jax.numpy as jnp
from jax.experimental import pallas as pl
from jax.experimental.pallas import tpu as pltpu

EPS = 1e-5
NEG_SLOPE = 0.2
LANE = 128
VMEM_LIMIT = 64 * 1024 * 1024


# ----------------------------- Pallas kernels ------------------------------ #

def _gemm_stats_kernel(p_ref, w_ref, o_ref, stats_ref):
    """One M-tile of the im2col GEMM + per-tile BN partial sums.

    The conv tile is stored as bf16 (halves inter-pass HBM traffic); the BN
    partial sums are taken from the f32 accumulator so the global batch
    statistics remain exact.
    """
    acc = jnp.dot(p_ref[...], w_ref[...], preferred_element_type=jnp.float32)
    o_ref[...] = acc.astype(o_ref.dtype)
    cpad = acc.shape[1]
    csum = jnp.sum(acc, axis=0, keepdims=True)          # (1, Cpad)
    csq = jnp.sum(acc * acc, axis=0, keepdims=True)     # (1, Cpad)
    stats_ref[...] = jnp.concatenate(
        [csum, csq, jnp.zeros((6, cpad), jnp.float32)], axis=0)


def _bn_lrelu_kernel(y_ref, sc_ref, sh_ref, o_ref):
    """Global batch-norm affine (scale/shift) + LeakyReLU(0.2), bf16 out."""
    z = y_ref[...].astype(jnp.float32) * sc_ref[...] + sh_ref[...]
    # max(z, 0.2*z) == LeakyReLU(0.2) for slope in (0, 1).
    o_ref[...] = jnp.maximum(z, NEG_SLOPE * z).astype(o_ref.dtype)


def _gemm_sigmoid_kernel(p_ref, w_ref, o_ref):
    acc = jnp.dot(p_ref[...], w_ref[...], preferred_element_type=jnp.float32)
    o_ref[...] = jax.nn.sigmoid(acc)


# ------------------------------ helpers ------------------------------------ #

def _round_up(n, m):
    return ((n + m - 1) // m) * m


def _pad_lanes(a, target):
    pad = target - a.shape[-1]
    if pad == 0:
        return a
    cfg = [(0, 0)] * (a.ndim - 1) + [(0, pad)]
    return jnp.pad(a, cfg)


def _pick_tm(m, k, cpad, byte_cap=4 * 1024 * 1024):
    """Largest M tile that divides M and keeps each buffer under ~4 MiB
    (conservative f32-sized bound -> leaves VMEM headroom for double-buffers)."""
    for tm in (1024, 512, 256, 128, 64, 32, 16, 8):
        if m % tm == 0 and tm * max(k, cpad) * 4 <= byte_cap:
            return tm
    return m


def _im2col(x, k, stride, pad):
    """x: (B, H, W, C) NHWC -> (B*Ho*Wo, k*k*C) with (kh, kw, c) minor order."""
    if pad:
        x = jnp.pad(x, ((0, 0), (pad, pad), (pad, pad), (0, 0)))
    B, H, W, C = x.shape
    Ho = (H - k) // stride + 1
    Wo = (W - k) // stride + 1
    cols = []
    for kh in range(k):
        for kw in range(k):
            cols.append(x[:, kh:kh + stride * Ho:stride,
                          kw:kw + stride * Wo:stride, :])
    patches = jnp.stack(cols, axis=3)  # (B, Ho, Wo, k*k, C)
    return patches.reshape(B * Ho * Wo, k * k * C), Ho, Wo


def _weight_to_gemm(w, cpad):
    """PyTorch conv weight (Cout, Cin, KH, KW) -> bf16 (KH*KW*Cin, Cpad)."""
    Cout, Cin, KH, KW = w.shape
    wmat = jnp.transpose(w, (2, 3, 1, 0)).reshape(KH * KW * Cin, Cout)
    return _pad_lanes(wmat, cpad).astype(jnp.bfloat16)


# ------------------------------ layers -------------------------------------- #

def conv_bn_lrelu(x, w, gamma, beta, *, stride, pad):
    """x: (B,H,W,Cin) bf16 NHWC.  Returns (B,Ho,Wo,Cout) bf16."""
    B = x.shape[0]
    Cout = w.shape[0]
    KH = w.shape[2]
    Cpad = _round_up(Cout, LANE)

    patches, Ho, Wo = _im2col(x, KH, stride, pad)      # bf16, (M, K)
    wmat = _weight_to_gemm(w, Cpad)                    # bf16, (K, Cpad)
    M, K = patches.shape
    TM = _pick_tm(M, K, Cpad)
    grid_m = M // TM

    # --- Pass 1: tiled GEMM (bf16 out) + per-tile BN partial stats ---------- #
    conv, stats = pl.pallas_call(
        _gemm_stats_kernel,
        grid=(grid_m,),
        in_specs=[
            pl.BlockSpec((TM, K), lambda i: (i, 0)),
            pl.BlockSpec((K, Cpad), lambda i: (0, 0)),   # constant block: no re-DMA
        ],
        out_specs=[
            pl.BlockSpec((TM, Cpad), lambda i: (i, 0)),
            pl.BlockSpec((8, Cpad), lambda i: (i, 0)),
        ],
        out_shape=[
            jax.ShapeDtypeStruct((M, Cpad), jnp.bfloat16),
            jax.ShapeDtypeStruct((grid_m * 8, Cpad), jnp.float32),
        ],
        compiler_params=pltpu.CompilerParams(
            dimension_semantics=("parallel",),
            vmem_limit_bytes=VMEM_LIMIT),
        cost_estimate=pl.CostEstimate(
            flops=2 * M * K * Cpad,
            transcendentals=0,
            bytes_accessed=(M * K * 2 + K * Cpad * 2 + M * Cpad * 2
                            + grid_m * 8 * Cpad * 4)),
    )(patches, wmat)

    # --- Global (full-batch) BN stats: biased variance, train mode ---------- #
    stats = stats.reshape(grid_m, 8, Cpad)
    col_sum = jnp.sum(stats[:, 0, :], axis=0)
    col_sq = jnp.sum(stats[:, 1, :], axis=0)
    mean = col_sum / M
    var = jnp.maximum(col_sq / M - mean * mean, 0.0)
    g = _pad_lanes(gamma, Cpad)
    b = _pad_lanes(beta, Cpad)
    scale = (g * jax.lax.rsqrt(var + EPS)).reshape(1, Cpad)
    shift = (b - mean * scale[0]).reshape(1, Cpad)

    # --- Pass 2: normalize + LeakyReLU(0.2), lane-dense bf16, in-place ------ #
    act = pl.pallas_call(
        _bn_lrelu_kernel,
        grid=(grid_m,),
        in_specs=[
            pl.BlockSpec((TM, Cpad), lambda i: (i, 0)),
            pl.BlockSpec((1, Cpad), lambda i: (0, 0)),
            pl.BlockSpec((1, Cpad), lambda i: (0, 0)),
        ],
        out_specs=pl.BlockSpec((TM, Cpad), lambda i: (i, 0)),
        out_shape=jax.ShapeDtypeStruct((M, Cpad), jnp.bfloat16),
        input_output_aliases={0: 0},   # overwrite the conv buffer in place
        compiler_params=pltpu.CompilerParams(
            dimension_semantics=("parallel",),
            vmem_limit_bytes=VMEM_LIMIT),
        cost_estimate=pl.CostEstimate(
            flops=4 * M * Cpad,
            transcendentals=0,
            bytes_accessed=2 * M * Cpad * 2 + 2 * Cpad * 4),
    )(conv, scale, shift)

    # Slice the channel padding off before the next layer's im2col
    # (a no-op when Cout is already a multiple of 128).
    return act[:, :Cout].reshape(B, Ho, Wo, Cout)


def conv_sigmoid_head(x, w):
    """Final Conv(k=4, s=1, p=0, bias=False) -> Flatten -> Sigmoid."""
    B = x.shape[0]
    Cout = w.shape[0]
    KH = w.shape[2]
    Cpad = _round_up(Cout, LANE)
    patches, _, _ = _im2col(x, KH, 1, 0)               # (B, K) since Ho=Wo=1
    wmat = _weight_to_gemm(w, Cpad)
    M, K = patches.shape
    out = pl.pallas_call(
        _gemm_sigmoid_kernel,
        grid=(1,),
        in_specs=[
            pl.BlockSpec((M, K), lambda i: (0, 0)),
            pl.BlockSpec((K, Cpad), lambda i: (0, 0)),
        ],
        out_specs=pl.BlockSpec((M, Cpad), lambda i: (0, 0)),
        out_shape=jax.ShapeDtypeStruct((M, Cpad), jnp.float32),
        compiler_params=pltpu.CompilerParams(
            dimension_semantics=("arbitrary",),
            vmem_limit_bytes=VMEM_LIMIT),
        cost_estimate=pl.CostEstimate(
            flops=2 * M * K * Cpad,
            transcendentals=M * Cpad,
            bytes_accessed=M * K * 2 + K * Cpad * 2 + M * Cpad * 4),
    )(patches, wmat)
    return out[:, :Cout].reshape(B, Cout)


# --------------------------- Parameter init -------------------------------- #

def init_params(key, image_channels, hidden_dim):
    """Deterministic synthetic init matching PyTorch module shapes."""
    layer_dims = [
        (hidden_dim, image_channels),
        (hidden_dim * 2, hidden_dim),
        (hidden_dim * 4, hidden_dim * 2),
        (hidden_dim * 8, hidden_dim * 4),
    ]
    params = []
    for co, ci in layer_dims:
        key, sub = jax.random.split(key)
        params.append({
            "w": jax.random.normal(sub, (co, ci, 4, 4), jnp.float32) * 0.05,
            "gamma": jnp.ones((co,), jnp.float32),   # BatchNorm2d default init
            "beta": jnp.zeros((co,), jnp.float32),
        })
    key, sub = jax.random.split(key)
    w_last = jax.random.normal(sub, (1, hidden_dim * 8, 4, 4), jnp.float32) * 0.05
    return params, w_last


# ------------------------------ Forward ------------------------------------ #

def discriminator_forward(x_nchw, params, w_last):
    # x_nchw: (B, C, 64, 64) as in PyTorch; NHWC + bf16 for the GEMM kernels.
    x = jnp.transpose(x_nchw, (0, 2, 3, 1)).astype(jnp.bfloat16)
    # 4 x [Conv(k=4,s=2,p=1, no bias) + BN(train stats) + LeakyReLU(0.2)]
    for p in params:
        x = conv_bn_lrelu(x, p["w"], p["gamma"], p["beta"], stride=2, pad=1)
    # Conv(k=4,s=1,p=0) -> (B,1,1,1); Flatten -> (B,1); Sigmoid
    return conv_sigmoid_head(x, w_last)


if __name__ == "__main__":
    key = jax.random.PRNGKey(0)
    kx, kp = jax.random.split(key)
    B, C, H, W = 2, 3, 64, 64      # architecture requires 64x64 to reach 1x1
    hidden_dim = 8                  # small hidden_dim for the test
    x = jax.random.normal(kx, (B, C, H, W), jnp.float32)
    params, w_last = init_params(kp, C, hidden_dim)

    fwd = jax.jit(discriminator_forward)
    out = fwd(x, params, w_last)
    jax.block_until_ready(out)

    assert out.shape == (B, 1), out.shape
    assert bool(jnp.all(jnp.isfinite(out)))
    assert bool(jnp.all((out >= 0.0) & (out <= 1.0)))
    print("KERNEL_OK")
</pallas_src>

<mosaic_0001>
module attributes {stable_mosaic.version = 11 : i64} {
  func.func @_gemm_stats_kernel(%arg0: i32, %arg1: memref<1024x48xbf16, #tpu.memory_space<vmem>>, %arg2: memref<48x128xbf16, #tpu.memory_space<vmem>>, %arg3: memref<1024x128xbf16, #tpu.memory_space<vmem>>, %arg4: memref<8x128xf32, #tpu.memory_space<vmem>>) attributes {dimension_semantics = [#tpu.dimension_semantics<parallel>], iteration_bounds = array<i64: 2>, scalar_prefetch = 0 : i64, scratch_operands = 0 : i64, tpu.core_type = #tpu.core_type<tc>, window_params = [{transform_indices = @transform_0, window_bounds = array<i64: 1024, 48>}, {pipeline_mode = #tpu.pipeline_mode<synchronous>, transform_indices = @transform_1, window_bounds = array<i64: 48, 128>}, {transform_indices = @transform_2, window_bounds = array<i64: 1024, 128>}, {transform_indices = @transform_3, window_bounds = array<i64: 8, 128>}]} {
    %c0 = arith.constant 0 : index
    %c0_0 = arith.constant 0 : index
    %0 = vector.load %arg1[%c0, %c0_0] : memref<1024x48xbf16, #tpu.memory_space<vmem>>, vector<1024x48xbf16>
    %c0_1 = arith.constant 0 : index
    %c0_2 = arith.constant 0 : index
    %1 = vector.load %arg2[%c0_1, %c0_2] : memref<48x128xbf16, #tpu.memory_space<vmem>>, vector<48x128xbf16>
    %cst = arith.constant dense<0.000000e+00> : vector<1024x128xf32>
    %2 = tpu.matmul %0, %1, %cst {dimension_numbers = #tpu.dot_dimension_numbers<[1], [0], [0], [1], [0, 0, 1, 1], [], []>} : vector<1024x48xbf16>, vector<48x128xbf16>, vector<1024x128xf32> -> vector<1024x128xf32>
    %3 = arith.truncf %2 : vector<1024x128xf32> to vector<1024x128xbf16>
    %c0_3 = arith.constant 0 : index
    %c0_4 = arith.constant 0 : index
    %4 = vector.load %arg3[%c0_3, %c0_4] : memref<1024x128xbf16, #tpu.memory_space<vmem>>, vector<1024x128xbf16>
    tpu.vector_store %arg3[%c0_3, %c0_4], %3 {strides = array<i32>} : memref<1024x128xbf16, #tpu.memory_space<vmem>>, vector<1024x128xbf16>,
    %cst_5 = arith.constant dense<0.000000e+00> : vector<128xf32>
    %5 = vector.multi_reduction <add>, %2, %cst_5 [0] : vector<1024x128xf32> to vector<128xf32>
    %6 = vector.shape_cast %5 : vector<128xf32> to vector<1x128xf32>
    %7 = arith.mulf %2, %2 : vector<1024x128xf32>
    %cst_6 = arith.constant dense<0.000000e+00> : vector<128xf32>
    %8 = vector.multi_reduction <add>, %7, %cst_6 [0] : vector<1024x128xf32> to vector<128xf32>
    %9 = vector.shape_cast %8 : vector<128xf32> to vector<1x128xf32>
    %cst_7 = arith.constant 0.000000e+00 : f32
    %10 = vector.broadcast %cst_7 : f32 to vector<6x128xf32>
    %11 = tpu.concatenate %6, %9, %10 in 0 : vector<1x128xf32>, vector<1x128xf32>, vector<6x128xf32> -> vector<8x128xf32>
    %c0_8 = arith.constant 0 : index
    %c0_9 = arith.constant 0 : index
    %12 = vector.load %arg4[%c0_8, %c0_9] : memref<8x128xf32, #tpu.memory_space<vmem>>, vector<8x128xf32>
    tpu.vector_store %arg4[%c0_8, %c0_9], %11 {strides = array<i32>} : memref<8x128xf32, #tpu.memory_space<vmem>>, vector<8x128xf32>,
    return
  }
  func.func @transform_0(%arg0: i32) -> (i32, i32) {
    %c0_i32 = arith.constant 0 : i32
    %c0_i32_0 = arith.constant 0 : i32
    return %arg0, %c0_i32 : i32, i32
  }
  func.func @transform_1(%arg0: i32) -> (i32, i32) {
    %c0_i32 = arith.constant 0 : i32
    %c0_i32_0 = arith.constant 0 : i32
    %c0_i32_1 = arith.constant 0 : i32
    return %c0_i32, %c0_i32_0 : i32, i32
  }
  func.func @transform_2(%arg0: i32) -> (i32, i32) {
    %c0_i32 = arith.constant 0 : i32
    %c0_i32_0 = arith.constant 0 : i32
    return %arg0, %c0_i32 : i32, i32
  }
  func.func @transform_3(%arg0: i32) -> (i32, i32) {
    %c0_i32 = arith.constant 0 : i32
    %c0_i32_0 = arith.constant 0 : i32
    return %arg0, %c0_i32 : i32, i32
  }
}

module attributes {stable_mosaic.version = 11 : i64} {
  func.func @_bn_lrelu_kernel(%arg0: i32, %arg1: memref<1024x128xbf16, #tpu.memory_space<vmem>>, %arg2: memref<1x128xf32, #tpu.memory_space<vmem>>, %arg3: memref<1x128xf32, #tpu.memory_space<vmem>>, %arg4: memref<1024x128xbf16, #tpu.memory_space<vmem>>) attributes {dimension_semantics = [#tpu.dimension_semantics<parallel>], iteration_bounds = array<i64: 2>, scalar_prefetch = 0 : i64, scratch_operands = 0 : i64, tpu.core_type = #tpu.core_type<tc>, window_params = [{transform_indices = @transform_0, window_bounds = array<i64: 1024, 128>}, {pipeline_mode = #tpu.pipeline_mode<synchronous>, transform_indices = @transform_1, window_bounds = array<i64: 1, 128>}, {pipeline_mode = #tpu.pipeline_mode<synchronous>, transform_indices = @transform_2, window_bounds = array<i64: 1, 128>}, {transform_indices = @transform_3, window_bounds = array<i64: 1024, 128>}]} {
    %c0 = arith.constant 0 : index
    %c0_0 = arith.constant 0 : index
    %0 = vector.load %arg1[%c0, %c0_0] : memref<1024x128xbf16, #tpu.memory_space<vmem>>, vector<1024x128xbf16>
    %1 = arith.extf %0 : vector<1024x128xbf16> to vector<1024x128xf32>
    %c0_1 = arith.constant 0 : index
    %c0_2 = arith.constant 0 : index
    %2 = vector.load %arg2[%c0_1, %c0_2] : memref<1x128xf32, #tpu.memory_space<vmem>>, vector<1x128xf32>
    %3 = vector.broadcast %2 : vector<1x128xf32> to vector<1024x128xf32>
    %4 = arith.mulf %1, %3 : vector<1024x128xf32>
    %c0_3 = arith.constant 0 : index
    %c0_4 = arith.constant 0 : index
    %5 = vector.load %arg3[%c0_3, %c0_4] : memref<1x128xf32, #tpu.memory_space<vmem>>, vector<1x128xf32>
    %6 = vector.broadcast %5 : vector<1x128xf32> to vector<1024x128xf32>
    %7 = arith.addf %4, %6 : vector<1024x128xf32>
    %cst = arith.constant 2.000000e-01 : f32
    %8 = vector.broadcast %cst : f32 to vector<1024x128xf32>
    %9 = arith.mulf %8, %7 : vector<1024x128xf32>
    %10 = arith.maximumf %7, %9 : vector<1024x128xf32>
    %11 = arith.truncf %10 : vector<1024x128xf32> to vector<1024x128xbf16>
    %c0_5 = arith.constant 0 : index
    %c0_6 = arith.constant 0 : index
    %12 = vector.load %arg4[%c0_5, %c0_6] : memref<1024x128xbf16, #tpu.memory_space<vmem>>, vector<1024x128xbf16>
    tpu.vector_store %arg4[%c0_5, %c0_6], %11 {strides = array<i32>} : memref<1024x128xbf16, #tpu.memory_space<vmem>>, vector<1024x128xbf16>,
    return
  }
  func.func @transform_0(%arg0: i32) -> (i32, i32) {
    %c0_i32 = arith.constant 0 : i32
    %c0_i32_0 = arith.constant 0 : i32
    return %arg0, %c0_i32 : i32, i32
  }
  func.func @transform_1(%arg0: i32) -> (i32, i32) {
    %c0_i32 = arith.constant 0 : i32
    %c0_i32_0 = arith.constant 0 : i32
    %c0_i32_1 = arith.constant 0 : i32
    return %c0_i32, %c0_i32_0 : i32, i32
  }
  func.func @transform_2(%arg0: i32) -> (i32, i32) {
    %c0_i32 = arith.constant 0 : i32
    %c0_i32_0 = arith.constant 0 : i32
    %c0_i32_1 = arith.constant 0 : i32
    return %c0_i32, %c0_i32_0 : i32, i32
  }
  func.func @transform_3(%arg0: i32) -> (i32, i32) {
    %c0_i32 = arith.constant 0 : i32
    %c0_i32_0 = arith.constant 0 : i32
    return %arg0, %c0_i32 : i32, i32
  }
}

module attributes {stable_mosaic.version = 11 : i64} {
  func.func @_gemm_stats_kernel(%arg0: i32, %arg1: memref<512x128xbf16, #tpu.memory_space<vmem>>, %arg2: memref<128x128xbf16, #tpu.memory_space<vmem>>, %arg3: memref<512x128xbf16, #tpu.memory_space<vmem>>, %arg4: memref<8x128xf32, #tpu.memory_space<vmem>>) attributes {dimension_semantics = [#tpu.dimension_semantics<parallel>], iteration_bounds = array<i64: 1>, scalar_prefetch = 0 : i64, scratch_operands = 0 : i64, tpu.core_type = #tpu.core_type<tc>, window_params = [{transform_indices = @transform_0, window_bounds = array<i64: 512, 128>}, {pipeline_mode = #tpu.pipeline_mode<synchronous>, transform_indices = @transform_1, window_bounds = array<i64: 128, 128>}, {transform_indices = @transform_2, window_bounds = array<i64: 512, 128>}, {transform_indices = @transform_3, window_bounds = array<i64: 8, 128>}]} {
    %c0 = arith.constant 0 : index
    %c0_0 = arith.constant 0 : index
    %0 = vector.load %arg1[%c0, %c0_0] : memref<512x128xbf16, #tpu.memory_space<vmem>>, vector<512x128xbf16>
    %c0_1 = arith.constant 0 : index
    %c0_2 = arith.constant 0 : index
    %1 = vector.load %arg2[%c0_1, %c0_2] : memref<128x128xbf16, #tpu.memory_space<vmem>>, vector<128x128xbf16>
    %cst = arith.constant dense<0.000000e+00> : vector<512x128xf32>
    %2 = tpu.matmul %0, %1, %cst {dimension_numbers = #tpu.dot_dimension_numbers<[1], [0], [0], [1], [0, 0, 1, 1], [], []>} : vector<512x128xbf16>, vector<128x128xbf16>, vector<512x128xf32> -> vector<512x128xf32>
    %3 = arith.truncf %2 : vector<512x128xf32> to vector<512x128xbf16>
    %c0_3 = arith.constant 0 : index
    %c0_4 = arith.constant 0 : index
    %4 = vector.load %arg3[%c0_3, %c0_4] : memref<512x128xbf16, #tpu.memory_space<vmem>>, vector<512x128xbf16>
    tpu.vector_store %arg3[%c0_3, %c0_4], %3 {strides = array<i32>} : memref<512x128xbf16, #tpu.memory_space<vmem>>, vector<512x128xbf16>,
    %cst_5 = arith.constant dense<0.000000e+00> : vector<128xf32>
    %5 = vector.multi_reduction <add>, %2, %cst_5 [0] : vector<512x128xf32> to vector<128xf32>
    %6 = vector.shape_cast %5 : vector<128xf32> to vector<1x128xf32>
    %7 = arith.mulf %2, %2 : vector<512x128xf32>
    %cst_6 = arith.constant dense<0.000000e+00> : vector<128xf32>
    %8 = vector.multi_reduction <add>, %7, %cst_6 [0] : vector<512x128xf32> to vector<128xf32>
    %9 = vector.shape_cast %8 : vector<128xf32> to vector<1x128xf32>
    %cst_7 = arith.constant 0.000000e+00 : f32
    %10 = vector.broadcast %cst_7 : f32 to vector<6x128xf32>
    %11 = tpu.concatenate %6, %9, %10 in 0 : vector<1x128xf32>, vector<1x128xf32>, vector<6x128xf32> -> vector<8x128xf32>
    %c0_8 = arith.constant 0 : index
    %c0_9 = arith.constant 0 : index
    %12 = vector.load %arg4[%c0_8, %c0_9] : memref<8x128xf32, #tpu.memory_space<vmem>>, vector<8x128xf32>
    tpu.vector_store %arg4[%c0_8, %c0_9], %11 {strides = array<i32>} : memref<8x128xf32, #tpu.memory_space<vmem>>, vector<8x128xf32>,
    return
  }
  func.func @transform_0(%arg0: i32) -> (i32, i32) {
    %c0_i32 = arith.constant 0 : i32
    %c0_i32_0 = arith.constant 0 : i32
    return %arg0, %c0_i32 : i32, i32
  }
  func.func @transform_1(%arg0: i32) -> (i32, i32) {
    %c0_i32 = arith.constant 0 : i32
    %c0_i32_0 = arith.constant 0 : i32
    %c0_i32_1 = arith.constant 0 : i32
    return %c0_i32, %c0_i32_0 : i32, i32
  }
  func.func @transform_2(%arg0: i32) -> (i32, i32) {
    %c0_i32 = arith.constant 0 : i32
    %c0_i32_0 = arith.constant 0 : i32
    return %arg0, %c0_i32 : i32, i32
  }
  func.func @transform_3(%arg0: i32) -> (i32, i32) {
    %c0_i32 = arith.constant 0 : i32
    %c0_i32_0 = arith.constant 0 : i32
    return %arg0, %c0_i32 : i32, i32
  }
}

module attributes {stable_mosaic.version = 11 : i64} {
  func.func @_bn_lrelu_kernel(%arg0: i32, %arg1: memref<512x128xbf16, #tpu.memory_space<vmem>>, %arg2: memref<1x128xf32, #tpu.memory_space<vmem>>, %arg3: memref<1x128xf32, #tpu.memory_space<vmem>>, %arg4: memref<512x128xbf16, #tpu.memory_space<vmem>>) attributes {dimension_semantics = [#tpu.dimension_semantics<parallel>], iteration_bounds = array<i64: 1>, scalar_prefetch = 0 : i64, scratch_operands = 0 : i64, tpu.core_type = #tpu.core_type<tc>, window_params = [{transform_indices = @transform_0, window_bounds = array<i64: 512, 128>}, {pipeline_mode = #tpu.pipeline_mode<synchronous>, transform_indices = @transform_1, window_bounds = array<i64: 1, 128>}, {pipeline_mode = #tpu.pipeline_mode<synchronous>, transform_indices = @transform_2, window_bounds = array<i64: 1, 128>}, {transform_indices = @transform_3, window_bounds = array<i64: 512, 128>}]} {
    %c0 = arith.constant 0 : index
    %c0_0 = arith.constant 0 : index
    %0 = vector.load %arg1[%c0, %c0_0] : memref<512x128xbf16, #tpu.memory_space<vmem>>, vector<512x128xbf16>
    %1 = arith.extf %0 : vector<512x128xbf16> to vector<512x128xf32>
    %c0_1 = arith.constant 0 : index
    %c0_2 = arith.constant 0 : index
    %2 = vector.load %arg2[%c0_1, %c0_2] : memref<1x128xf32, #tpu.memory_space<vmem>>, vector<1x128xf32>
    %3 = vector.broadcast %2 : vector<1x128xf32> to vector<512x128xf32>
    %4 = arith.mulf %1, %3 : vector<512x128xf32>
    %c0_3 = arith.constant 0 : index
    %c0_4 = arith.constant 0 : index
    %5 = vector.load %arg3[%c0_3, %c0_4] : memref<1x128xf32, #tpu.memory_space<vmem>>, vector<1x128xf32>
    %6 = vector.broadcast %5 : vector<1x128xf32> to vector<512x128xf32>
    %7 = arith.addf %4, %6 : vector<512x128xf32>
    %cst = arith.constant 2.000000e-01 : f32
    %8 = vector.broadcast %cst : f32 to vector<512x128xf32>
    %9 = arith.mulf %8, %7 : vector<512x128xf32>
    %10 = arith.maximumf %7, %9 : vector<512x128xf32>
    %11 = arith.truncf %10 : vector<512x128xf32> to vector<512x128xbf16>
    %c0_5 = arith.constant 0 : index
    %c0_6 = arith.constant 0 : index
    %12 = vector.load %arg4[%c0_5, %c0_6] : memref<512x128xbf16, #tpu.memory_space<vmem>>, vector<512x128xbf16>
    tpu.vector_store %arg4[%c0_5, %c0_6], %11 {strides = array<i32>} : memref<512x128xbf16, #tpu.memory_space<vmem>>, vector<512x128xbf16>,
    return
  }
  func.func @transform_0(%arg0: i32) -> (i32, i32) {
    %c0_i32 = arith.constant 0 : i32
    %c0_i32_0 = arith.constant 0 : i32
    return %arg0, %c0_i32 : i32, i32
  }
  func.func @transform_1(%arg0: i32) -> (i32, i32) {
    %c0_i32 = arith.constant 0 : i32
    %c0_i32_0 = arith.constant 0 : i32
    %c0_i32_1 = arith.constant 0 : i32
    return %c0_i32, %c0_i32_0 : i32, i32
  }
  func.func @transform_2(%arg0: i32) -> (i32, i32) {
    %c0_i32 = arith.constant 0 : i32
    %c0_i32_0 = arith.constant 0 : i32
    %c0_i32_1 = arith.constant 0 : i32
    return %c0_i32, %c0_i32_0 : i32, i32
  }
  func.func @transform_3(%arg0: i32) -> (i32, i32) {
    %c0_i32 = arith.constant 0 : i32
    %c0_i32_0 = arith.constant 0 : i32
    return %arg0, %c0_i32 : i32, i32
  }
}

module attributes {stable_mosaic.version = 11 : i64} {
  func.func @_gemm_stats_kernel(%arg0: i32, %arg1: memref<128x256xbf16, #tpu.memory_space<vmem>>, %arg2: memref<256x128xbf16, #tpu.memory_space<vmem>>, %arg3: memref<128x128xbf16, #tpu.memory_space<vmem>>, %arg4: memref<8x128xf32, #tpu.memory_space<vmem>>) attributes {dimension_semantics = [#tpu.dimension_semantics<parallel>], iteration_bounds = array<i64: 1>, scalar_prefetch = 0 : i64, scratch_operands = 0 : i64, tpu.core_type = #tpu.core_type<tc>, window_params = [{transform_indices = @transform_0, window_bounds = array<i64: 128, 256>}, {pipeline_mode = #tpu.pipeline_mode<synchronous>, transform_indices = @transform_1, window_bounds = array<i64: 256, 128>}, {transform_indices = @transform_2, window_bounds = array<i64: 128, 128>}, {transform_indices = @transform_3, window_bounds = array<i64: 8, 128>}]} {
    %c0 = arith.constant 0 : index
    %c0_0 = arith.constant 0 : index
    %0 = vector.load %arg1[%c0, %c0_0] : memref<128x256xbf16, #tpu.memory_space<vmem>>, vector<128x256xbf16>
    %c0_1 = arith.constant 0 : index
    %c0_2 = arith.constant 0 : index
    %1 = vector.load %arg2[%c0_1, %c0_2] : memref<256x128xbf16, #tpu.memory_space<vmem>>, vector<256x128xbf16>
    %cst = arith.constant dense<0.000000e+00> : vector<128x128xf32>
    %2 = tpu.matmul %0, %1, %cst {dimension_numbers = #tpu.dot_dimension_numbers<[1], [0], [0], [1], [0, 0, 1, 1], [], []>} : vector<128x256xbf16>, vector<256x128xbf16>, vector<128x128xf32> -> vector<128x128xf32>
    %3 = arith.truncf %2 : vector<128x128xf32> to vector<128x128xbf16>
    %c0_3 = arith.constant 0 : index
    %c0_4 = arith.constant 0 : index
    %4 = vector.load %arg3[%c0_3, %c0_4] : memref<128x128xbf16, #tpu.memory_space<vmem>>, vector<128x128xbf16>
    tpu.vector_store %arg3[%c0_3, %c0_4], %3 {strides = array<i32>} : memref<128x128xbf16, #tpu.memory_space<vmem>>, vector<128x128xbf16>,
    %cst_5 = arith.constant dense<0.000000e+00> : vector<128xf32>
    %5 = vector.multi_reduction <add>, %2, %cst_5 [0] : vector<128x128xf32> to vector<128xf32>
    %6 = vector.shape_cast %5 : vector<128xf32> to vector<1x128xf32>
    %7 = arith.mulf %2, %2 : vector<128x128xf32>
    %cst_6 = arith.constant dense<0.000000e+00> : vector<128xf32>
    %8 = vector.multi_reduction <add>, %7, %cst_6 [0] : vector<128x128xf32> to vector<128xf32>
    %9 = vector.shape_cast %8 : vector<128xf32> to vector<1x128xf32>
    %cst_7 = arith.constant 0.000000e+00 : f32
    %10 = vector.broadcast %cst_7 : f32 to vector<6x128xf32>
    %11 = tpu.concatenate %6, %9, %10 in 0 : vector<1x128xf32>, vector<1x128xf32>, vector<6x128xf32> -> vector<8x128xf32>
    %c0_8 = arith.constant 0 : index
    %c0_9 = arith.constant 0 : index
    %12 = vector.load %arg4[%c0_8, %c0_9] : memref<8x128xf32, #tpu.memory_space<vmem>>, vector<8x128xf32>
    tpu.vector_store %arg4[%c0_8, %c0_9], %11 {strides = array<i32>} : memref<8x128xf32, #tpu.memory_space<vmem>>, vector<8x128xf32>,
    return
  }
  func.func @transform_0(%arg0: i32) -> (i32, i32) {
    %c0_i32 = arith.constant 0 : i32
    %c0_i32_0 = arith.constant 0 : i32
    return %arg0, %c0_i32 : i32, i32
  }
  func.func @transform_1(%arg0: i32) -> (i32, i32) {
    %c0_i32 = arith.constant 0 : i32
    %c0_i32_0 = arith.constant 0 : i32
    %c0_i32_1 = arith.constant 0 : i32
    return %c0_i32, %c0_i32_0 : i32, i32
  }
  func.func @transform_2(%arg0: i32) -> (i32, i32) {
    %c0_i32 = arith.constant 0 : i32
    %c0_i32_0 = arith.constant 0 : i32
    return %arg0, %c0_i32 : i32, i32
  }
  func.func @transform_3(%arg0: i32) -> (i32, i32) {
    %c0_i32 = arith.constant 0 : i32
    %c0_i32_0 = arith.constant 0 : i32
    return %arg0, %c0_i32 : i32, i32
  }
}

module attributes {stable_mosaic.version = 11 : i64} {
  func.func @_bn_lrelu_kernel(%arg0: i32, %arg1: memref<128x128xbf16, #tpu.memory_space<vmem>>, %arg2: memref<1x128xf32, #tpu.memory_space<vmem>>, %arg3: memref<1x128xf32, #tpu.memory_space<vmem>>, %arg4: memref<128x128xbf16, #tpu.memory_space<vmem>>) attributes {dimension_semantics = [#tpu.dimension_semantics<parallel>], iteration_bounds = array<i64: 1>, scalar_prefetch = 0 : i64, scratch_operands = 0 : i64, tpu.core_type = #tpu.core_type<tc>, window_params = [{transform_indices = @transform_0, window_bounds = array<i64: 128, 128>}, {pipeline_mode = #tpu.pipeline_mode<synchronous>, transform_indices = @transform_1, window_bounds = array<i64: 1, 128>}, {pipeline_mode = #tpu.pipeline_mode<synchronous>, transform_indices = @transform_2, window_bounds = array<i64: 1, 128>}, {transform_indices = @transform_3, window_bounds = array<i64: 128, 128>}]} {
    %c0 = arith.constant 0 : index
    %c0_0 = arith.constant 0 : index
    %0 = vector.load %arg1[%c0, %c0_0] : memref<128x128xbf16, #tpu.memory_space<vmem>>, vector<128x128xbf16>
    %1 = arith.extf %0 : vector<128x128xbf16> to vector<128x128xf32>
    %c0_1 = arith.constant 0 : index
    %c0_2 = arith.constant 0 : index
    %2 = vector.load %arg2[%c0_1, %c0_2] : memref<1x128xf32, #tpu.memory_space<vmem>>, vector<1x128xf32>
    %3 = vector.broadcast %2 : vector<1x128xf32> to vector<128x128xf32>
    %4 = arith.mulf %1, %3 : vector<128x128xf32>
    %c0_3 = arith.constant 0 : index
    %c0_4 = arith.constant 0 : index
    %5 = vector.load %arg3[%c0_3, %c0_4] : memref<1x128xf32, #tpu.memory_space<vmem>>, vector<1x128xf32>
    %6 = vector.broadcast %5 : vector<1x128xf32> to vector<128x128xf32>
    %7 = arith.addf %4, %6 : vector<128x128xf32>
    %cst = arith.constant 2.000000e-01 : f32
    %8 = vector.broadcast %cst : f32 to vector<128x128xf32>
    %9 = arith.mulf %8, %7 : vector<128x128xf32>
    %10 = arith.maximumf %7, %9 : vector<128x128xf32>
    %11 = arith.truncf %10 : vector<128x128xf32> to vector<128x128xbf16>
    %c0_5 = arith.constant 0 : index
    %c0_6 = arith.constant 0 : index
    %12 = vector.load %arg4[%c0_5, %c0_6] : memref<128x128xbf16, #tpu.memory_space<vmem>>, vector<128x128xbf16>
    tpu.vector_store %arg4[%c0_5, %c0_6], %11 {strides = array<i32>} : memref<128x128xbf16, #tpu.memory_space<vmem>>, vector<128x128xbf16>,
    return
  }
  func.func @transform_0(%arg0: i32) -> (i32, i32) {
    %c0_i32 = arith.constant 0 : i32
    %c0_i32_0 = arith.constant 0 : i32
    return %arg0, %c0_i32 : i32, i32
  }
  func.func @transform_1(%arg0: i32) -> (i32, i32) {
    %c0_i32 = arith.constant 0 : i32
    %c0_i32_0 = arith.constant 0 : i32
    %c0_i32_1 = arith.constant 0 : i32
    return %c0_i32, %c0_i32_0 : i32, i32
  }
  func.func @transform_2(%arg0: i32) -> (i32, i32) {
    %c0_i32 = arith.constant 0 : i32
    %c0_i32_0 = arith.constant 0 : i32
    %c0_i32_1 = arith.constant 0 : i32
    return %c0_i32, %c0_i32_0 : i32, i32
  }
  func.func @transform_3(%arg0: i32) -> (i32, i32) {
    %c0_i32 = arith.constant 0 : i32
    %c0_i32_0 = arith.constant 0 : i32
    return %arg0, %c0_i32 : i32, i32
  }
}

module attributes {stable_mosaic.version = 11 : i64} {
  func.func @_gemm_stats_kernel(%arg0: i32, %arg1: memref<32x512xbf16, #tpu.memory_space<vmem>>, %arg2: memref<512x128xbf16, #tpu.memory_space<vmem>>, %arg3: memref<32x128xbf16, #tpu.memory_space<vmem>>, %arg4: memref<8x128xf32, #tpu.memory_space<vmem>>) attributes {dimension_semantics = [#tpu.dimension_semantics<parallel>], iteration_bounds = array<i64: 1>, scalar_prefetch = 0 : i64, scratch_operands = 0 : i64, tpu.core_type = #tpu.core_type<tc>, window_params = [{transform_indices = @transform_0, window_bounds = array<i64: 32, 512>}, {pipeline_mode = #tpu.pipeline_mode<synchronous>, transform_indices = @transform_1, window_bounds = array<i64: 512, 128>}, {transform_indices = @transform_2, window_bounds = array<i64: 32, 128>}, {transform_indices = @transform_3, window_bounds = array<i64: 8, 128>}]} {
    %c0 = arith.constant 0 : index
    %c0_0 = arith.constant 0 : index
    %0 = vector.load %arg1[%c0, %c0_0] : memref<32x512xbf16, #tpu.memory_space<vmem>>, vector<32x512xbf16>
    %c0_1 = arith.constant 0 : index
    %c0_2 = arith.constant 0 : index
    %1 = vector.load %arg2[%c0_1, %c0_2] : memref<512x128xbf16, #tpu.memory_space<vmem>>, vector<512x128xbf16>
    %cst = arith.constant dense<0.000000e+00> : vector<32x128xf32>
    %2 = tpu.matmul %0, %1, %cst {dimension_numbers = #tpu.dot_dimension_numbers<[1], [0], [0], [1], [0, 0, 1, 1], [], []>} : vector<32x512xbf16>, vector<512x128xbf16>, vector<32x128xf32> -> vector<32x128xf32>
    %3 = arith.truncf %2 : vector<32x128xf32> to vector<32x128xbf16>
    %c0_3 = arith.constant 0 : index
    %c0_4 = arith.constant 0 : index
    %4 = vector.load %arg3[%c0_3, %c0_4] : memref<32x128xbf16, #tpu.memory_space<vmem>>, vector<32x128xbf16>
    tpu.vector_store %arg3[%c0_3, %c0_4], %3 {strides = array<i32>} : memref<32x128xbf16, #tpu.memory_space<vmem>>, vector<32x128xbf16>,
    %cst_5 = arith.constant dense<0.000000e+00> : vector<128xf32>
    %5 = vector.multi_reduction <add>, %2, %cst_5 [0] : vector<32x128xf32> to vector<128xf32>
    %6 = vector.shape_cast %5 : vector<128xf32> to vector<1x128xf32>
    %7 = arith.mulf %2, %2 : vector<32x128xf32>
    %cst_6 = arith.constant dense<0.000000e+00> : vector<128xf32>
    %8 = vector.multi_reduction <add>, %7, %cst_6 [0] : vector<32x128xf32> to vector<128xf32>
    %9 = vector.shape_cast %8 : vector<128xf32> to vector<1x128xf32>
    %cst_7 = arith.constant 0.000000e+00 : f32
    %10 = vector.broadcast %cst_7 : f32 to vector<6x128xf32>
    %11 = tpu.concatenate %6, %9, %10 in 0 : vector<1x128xf32>, vector<1x128xf32>, vector<6x128xf32> -> vector<8x128xf32>
    %c0_8 = arith.constant 0 : index
    %c0_9 = arith.constant 0 : index
    %12 = vector.load %arg4[%c0_8, %c0_9] : memref<8x128xf32, #tpu.memory_space<vmem>>, vector<8x128xf32>
    tpu.vector_store %arg4[%c0_8, %c0_9], %11 {strides = array<i32>} : memref<8x128xf32, #tpu.memory_space<vmem>>, vector<8x128xf32>,
    return
  }
  func.func @transform_0(%arg0: i32) -> (i32, i32) {
    %c0_i32 = arith.constant 0 : i32
    %c0_i32_0 = arith.constant 0 : i32
    return %arg0, %c0_i32 : i32, i32
  }
  func.func @transform_1(%arg0: i32) -> (i32, i32) {
    %c0_i32 = arith.constant 0 : i32
    %c0_i32_0 = arith.constant 0 : i32
    %c0_i32_1 = arith.constant 0 : i32
    return %c0_i32, %c0_i32_0 : i32, i32
  }
  func.func @transform_2(%arg0: i32) -> (i32, i32) {
    %c0_i32 = arith.constant 0 : i32
    %c0_i32_0 = arith.constant 0 : i32
    return %arg0, %c0_i32 : i32, i32
  }
  func.func @transform_3(%arg0: i32) -> (i32, i32) {
    %c0_i32 = arith.constant 0 : i32
    %c0_i32_0 = arith.constant 0 : i32
    return %arg0, %c0_i32 : i32, i32
  }
}

module attributes {stable_mosaic.version = 11 : i64} {
  func.func @_bn_lrelu_kernel(%arg0: i32, %arg1: memref<32x128xbf16, #tpu.memory_space<vmem>>, %arg2: memref<1x128xf32, #tpu.memory_space<vmem>>, %arg3: memref<1x128xf32, #tpu.memory_space<vmem>>, %arg4: memref<32x128xbf16, #tpu.memory_space<vmem>>) attributes {dimension_semantics = [#tpu.dimension_semantics<parallel>], iteration_bounds = array<i64: 1>, scalar_prefetch = 0 : i64, scratch_operands = 0 : i64, tpu.core_type = #tpu.core_type<tc>, window_params = [{transform_indices = @transform_0, window_bounds = array<i64: 32, 128>}, {pipeline_mode = #tpu.pipeline_mode<synchronous>, transform_indices = @transform_1, window_bounds = array<i64: 1, 128>}, {pipeline_mode = #tpu.pipeline_mode<synchronous>, transform_indices = @transform_2, window_bounds = array<i64: 1, 128>}, {transform_indices = @transform_3, window_bounds = array<i64: 32, 128>}]} {
    %c0 = arith.constant 0 : index
    %c0_0 = arith.constant 0 : index
    %0 = vector.load %arg1[%c0, %c0_0] : memref<32x128xbf16, #tpu.memory_space<vmem>>, vector<32x128xbf16>
    %1 = arith.extf %0 : vector<32x128xbf16> to vector<32x128xf32>
    %c0_1 = arith.constant 0 : index
    %c0_2 = arith.constant 0 : index
    %2 = vector.load %arg2[%c0_1, %c0_2] : memref<1x128xf32, #tpu.memory_space<vmem>>, vector<1x128xf32>
    %3 = vector.broadcast %2 : vector<1x128xf32> to vector<32x128xf32>
    %4 = arith.mulf %1, %3 : vector<32x128xf32>
    %c0_3 = arith.constant 0 : index
    %c0_4 = arith.constant 0 : index
    %5 = vector.load %arg3[%c0_3, %c0_4] : memref<1x128xf32, #tpu.memory_space<vmem>>, vector<1x128xf32>
    %6 = vector.broadcast %5 : vector<1x128xf32> to vector<32x128xf32>
    %7 = arith.addf %4, %6 : vector<32x128xf32>
    %cst = arith.constant 2.000000e-01 : f32
    %8 = vector.broadcast %cst : f32 to vector<32x128xf32>
    %9 = arith.mulf %8, %7 : vector<32x128xf32>
    %10 = arith.maximumf %7, %9 : vector<32x128xf32>
    %11 = arith.truncf %10 : vector<32x128xf32> to vector<32x128xbf16>
    %c0_5 = arith.constant 0 : index
    %c0_6 = arith.constant 0 : index
    %12 = vector.load %arg4[%c0_5, %c0_6] : memref<32x128xbf16, #tpu.memory_space<vmem>>, vector<32x128xbf16>
    tpu.vector_store %arg4[%c0_5, %c0_6], %11 {strides = array<i32>} : memref<32x128xbf16, #tpu.memory_space<vmem>>, vector<32x128xbf16>,
    return
  }
  func.func @transform_0(%arg0: i32) -> (i32, i32) {
    %c0_i32 = arith.constant 0 : i32
    %c0_i32_0 = arith.constant 0 : i32
    return %arg0, %c0_i32 : i32, i32
  }
  func.func @transform_1(%arg0: i32) -> (i32, i32) {
    %c0_i32 = arith.constant 0 : i32
    %c0_i32_0 = arith.constant 0 : i32
    %c0_i32_1 = arith.constant 0 : i32
    return %c0_i32, %c0_i32_0 : i32, i32
  }
  func.func @transform_2(%arg0: i32) -> (i32, i32) {
    %c0_i32 = arith.constant 0 : i32
    %c0_i32_0 = arith.constant 0 : i32
    %c0_i32_1 = arith.constant 0 : i32
    return %c0_i32, %c0_i32_0 : i32, i32
  }
  func.func @transform_3(%arg0: i32) -> (i32, i32) {
    %c0_i32 = arith.constant 0 : i32
    %c0_i32_0 = arith.constant 0 : i32
    return %arg0, %c0_i32 : i32, i32
  }
}

module attributes {stable_mosaic.version = 11 : i64} {
  func.func @_gemm_sigmoid_kernel(%arg0: i32, %arg1: memref<2x1024xbf16, #tpu.memory_space<vmem>>, %arg2: memref<1024x128xbf16, #tpu.memory_space<vmem>>, %arg3: memref<2x128xf32, #tpu.memory_space<vmem>>) attributes {dimension_semantics = [#tpu.dimension_semantics<arbitrary>], iteration_bounds = array<i64: 1>, scalar_prefetch = 0 : i64, scratch_operands = 0 : i64, tpu.core_type = #tpu.core_type<tc>, window_params = [{pipeline_mode = #tpu.pipeline_mode<synchronous>, transform_indices = @transform_0, window_bounds = array<i64: 2, 1024>}, {pipeline_mode = #tpu.pipeline_mode<synchronous>, transform_indices = @transform_1, window_bounds = array<i64: 1024, 128>}, {pipeline_mode = #tpu.pipeline_mode<synchronous>, transform_indices = @transform_2, window_bounds = array<i64: 2, 128>}]} {
    %c0 = arith.constant 0 : index
    %c0_0 = arith.constant 0 : index
    %0 = vector.load %arg1[%c0, %c0_0] : memref<2x1024xbf16, #tpu.memory_space<vmem>>, vector<2x1024xbf16>
    %c0_1 = arith.constant 0 : index
    %c0_2 = arith.constant 0 : index
    %1 = vector.load %arg2[%c0_1, %c0_2] : memref<1024x128xbf16, #tpu.memory_space<vmem>>, vector<1024x128xbf16>
    %cst = arith.constant dense<0.000000e+00> : vector<2x128xf32>
    %2 = tpu.matmul %0, %1, %cst {dimension_numbers = #tpu.dot_dimension_numbers<[1], [0], [0], [1], [0, 0, 1, 1], [], []>} : vector<2x1024xbf16>, vector<1024x128xbf16>, vector<2x128xf32> -> vector<2x128xf32>
    %3 = arith.negf %2 : vector<2x128xf32>
    %4 = math.exp %3 : vector<2x128xf32>
    %cst_3 = arith.constant 1.000000e+00 : f32
    %5 = vector.broadcast %cst_3 : f32 to vector<2x128xf32>
    %6 = arith.addf %5, %4 : vector<2x128xf32>
    %7 = arith.divf %5, %6 : vector<2x128xf32>
    %c0_4 = arith.constant 0 : index
    %c0_5 = arith.constant 0 : index
    %8 = vector.load %arg3[%c0_4, %c0_5] : memref<2x128xf32, #tpu.memory_space<vmem>>, vector<2x128xf32>
    tpu.vector_store %arg3[%c0_4, %c0_5], %7 {strides = array<i32>} : memref<2x128xf32, #tpu.memory_space<vmem>>, vector<2x128xf32>,
    return
  }
  func.func @transform_0(%arg0: i32) -> (i32, i32) {
    %c0_i32 = arith.constant 0 : i32
    %c0_i32_0 = arith.constant 0 : i32
    %c0_i32_1 = arith.constant 0 : i32
    return %c0_i32, %c0_i32_0 : i32, i32
  }
  func.func @transform_1(%arg0: i32) -> (i32, i32) {
    %c0_i32 = arith.constant 0 : i32
    %c0_i32_0 = arith.constant 0 : i32
    %c0_i32_1 = arith.constant 0 : i32
    return %c0_i32, %c0_i32_0 : i32, i32
  }
  func.func @transform_2(%arg0: i32) -> (i32, i32) {
    %c0_i32 = arith.constant 0 : i32
    %c0_i32_0 = arith.constant 0 : i32
    %c0_i32_1 = arith.constant 0 : i32
    return %c0_i32, %c0_i32_0 : i32, i32
  }
}

</mosaic_0001>

<bundles_post_ra>
// kernel: discriminator_forward.10
= control target key start
LH: loop header
LB: loop body
LE: loop exit
PB: predicated region body
PF: predicated region fallthrough
CT: control target
= control target key end

     0   :  { %s2661_s12 = smov 0   ;;  %s3374_s0 = inlined_call_operand.vmem [shape: bf16[2048,128], index: 0, kind: input, shape index: {}, may-alias: {0,3}]   ;;  %s3375_s1 = inlined_call_operand.vmem [shape: f32[1,128], index: 1, kind: input, shape index: {}]   ;;  %s3376_s2 = inlined_call_operand.vmem [shape: f32[1,128], index: 2, kind: input, shape index: {}]   ;;  %s3377_s3 = inlined_call_operand.vmem [shape: bf16[2048,128], index: 3, kind: output, shape index: {}, may-alias: {0,3}]  }
   0x1 LB: > { %s1652_s13 = sadd.s32 4294967295, %s2639_s12   ;;  %p1656_p0 = scmp.ge.s32.totalorder %s2639_s12, 1  ;;  %s2639_s12 = sphi %s2661_s12, %s13_s12  }
   0x2   : > { %p138_p1 = scmp.lt.s32.totalorder %s2639_s12, 3 }
   0x4   : > { %p139_p2 = pnand %p1656_p0, %p138_p1 }
   0x6   : > { %142 = sbr.rel (%p139_p2) target bundleno = 207 (0xcf), region = 32 }
   0xb   : > { %s1657_s14 = sshll.u32 %s1652_s13, 7  ;;  %v2682_v0 = vld [vmem:[%s3375_s1] ss:$0 sm:$0xff] }
   0xc   : > { %p163_p3 = scmp.lt.s32.totalorder %s1657_s14, 255  ;;  %v2691_v9 = vld [vmem:[%s3376_s2] ss:$0 sm:$0xff] }
   0xe   : > { %s3429_s14 = smov (!%p163_p3, %s1657_s14), 255 }
   0xf   : > { %s1658_s15 = sshll.u32 %s3429_s14, 2 }
  0x10   : > { %s2677_s18 = scalar_lea.vmem %s3374_s0, %s1658_s15  ;;  %s2778_s25 = scalar_lea.vmem %s3377_s3, %s1658_s15 }
  0x11   : > { %v1922_v1 = vld [vmem:[%s2677_s18] sm:$0xff]   ;;  %v2497_v2 = vld [vmem:[%s2677_s18 + $0x8] sm:$0xff]   ;;  %v2498_v3 = vld [vmem:[%s2677_s18 + $0x10] sm:$0xff]  }
  0x12   : > { %v1923_v4 = vunpack.c.l.bf16 %v1922_v1  ;;  %v1924_v5 = vunpack.c.h.bf16 %v1922_v1  ;;  %v2499_v6 = vld [vmem:[%s2677_s18 + $0x18] sm:$0xff]   ;;  %v1927_v7 = vunpack.c.l.bf16 %v2497_v2  ;;  %v1928_v8 = vunpack.c.h.bf16 %v2497_v2  ;;  %v2500_v18 = vld [vmem:[%s2677_s18 + $0x20] sm:$0xff]   ;;  %v2501_v19 = vld [vmem:[%s2677_s18 + $0x28] sm:$0xff]  }
  0x13   : > { %v1931_v10 = vunpack.c.l.bf16 %v2498_v3  ;;  %v1932_v11 = vunpack.c.h.bf16 %v2498_v3  ;;  %v1935_v12 = vunpack.c.l.bf16 %v2499_v6  ;;  %v1936_v13 = vunpack.c.h.bf16 %v2499_v6  ;;  %v2502_v24 = vld [vmem:[%s2677_s18 + $0x30] sm:$0xff]   ;;  %v2723_v53 = vld [vmem:[%s2677_s18 + $0x38] sm:$0xff]   ;;  %v2738_v3 = vld [vmem:[%s2677_s18 + $0x40] sm:$0xff]  }
  0x14   : > { %v437_v14 = vmul.f32 %v1923_v4, %v2682_v0  ;;  %v438_v15 = vmul.f32 %v1924_v5, %v2682_v0  ;;  %v439_v16 = vmul.f32 %v1927_v7, %v2682_v0  ;;  %v440_v17 = vmul.f32 %v1928_v8, %v2682_v0 }
  0x15   : > { %v441_v20 = vmul.f32 %v1931_v10, %v2682_v0  ;;  %v442_v21 = vmul.f32 %v1932_v11, %v2682_v0  ;;  %v443_v22 = vmul.f32 %v1935_v12, %v2682_v0  ;;  %v444_v23 = vmul.f32 %v1936_v13, %v2682_v0  ;;  %v2913_v13 = vld [vmem:[%s2677_s18 + $0x1b0] sm:$0xff]  }
  0x16   : > { %v572_v25 = vadd.f32 %v2691_v9, %v437_v14  ;;  %v573_v26 = vadd.f32 %v2691_v9, %v438_v15  ;;  %v574_v27 = vadd.f32 %v2691_v9, %v439_v16  ;;  %v575_v28 = vadd.f32 %v2691_v9, %v440_v17  ;;  %v2763_v17 = vld [vmem:[%s2677_s18 + $0x48] sm:$0xff]   ;;  %3403 = vst [vmem:[#allocation11_spill] sm:$0xff] %v2913_v13  ;;  %v2930_v13 = vld [vmem:[%s2677_s18 + $0x1d0] sm:$0xff]  }
  0x17   : > { %v576_v29 = vadd.f32 %v2691_v9, %v441_v20  ;;  %v577_v30 = vadd.f32 %v2691_v9, %v442_v21  ;;  %v578_v31 = vadd.f32 %v2691_v9, %v443_v22  ;;  %v579_v32 = vadd.f32 %v2691_v9, %v444_v23  ;;  %v2781_v22 = vld [vmem:[%s2677_s18 + $0x50] sm:$0xff]   ;;  %v2784_v23 = vld [vmem:[%s2677_s18 + $0x58] sm:$0xff]   ;;  %v2910_v21 = vld [vmem:[%s2677_s18 + $0x1a8] sm:$0xff]   ;;  %3407 = vst [vmem:[#allocation15_spill] sm:$0xff] %v2930_v13 }
  0x18   : > { %v700_v33 = vmul.f32 0.2, %v572_v25  ;;  %v1939_v34 = vunpack.c.l.bf16 %v2500_v18  ;;  %v1940_v35 = vunpack.c.h.bf16 %v2500_v18  ;;  %v1943_v36 = vunpack.c.l.bf16 %v2501_v19  ;;  %3402 = vst [vmem:[#allocation10_spill] sm:$0xff] %v2910_v21  ;;  %v2949_v13 = vld [vmem:[%s2677_s18 + $0x1f0] sm:$0xff]  }
  0x19   : > { %v701_v37 = vmul.f32 0.2, %v573_v26  ;;  %v1944_v38 = vunpack.c.h.bf16 %v2501_v19  ;;  %v1947_v39 = vunpack.c.l.bf16 %v2502_v24  ;;  %v1948_v40 = vunpack.c.h.bf16 %v2502_v24  ;;  %v2787_v24 = vld [vmem:[%s2677_s18 + $0x60] sm:$0xff]  }
  0x1a   : > { %v828_v41 = vmax.f32 %v572_v25, %v700_v33  ;;  %v702_v42 = vmul.f32 0.2, %v574_v27  ;;  %v445_v43 = vmul.f32 %v1939_v34, %v2682_v0  ;;  %v446_v44 = vmul.f32 %v1940_v35, %v2682_v0  ;;  %v2790_v25 = vld [vmem:[%s2677_s18 + $0x68] sm:$0xff]   ;;  %v2817_v34 = vld [vmem:[%s2677_s18 + $0xb0] sm:$0xff]   ;;  %v2820_v35 = vld [vmem:[%s2677_s18 + $0xb8] sm:$0xff]  }
  0x1b   : > { %v829_v45 = vmax.f32 %v573_v26, %v701_v37  ;;  %v703_v46 = vmul.f32 0.2, %v575_v28  ;;  %v447_v47 = vmul.f32 %v1943_v36, %v2682_v0  ;;  %v448_v48 = vmul.f32 %v1944_v38, %v2682_v0  ;;  %v2793_v26 = vld [vmem:[%s2677_s18 + $0x70] sm:$0xff]   ;;  %v2814_v33 = vld [vmem:[%s2677_s18 + $0xa8] sm:$0xff]   ;;  %v2823_v36 = vld [vmem:[%s2677_s18 + $0xc0] sm:$0xff]  }
  0x1c   : > { %v830_v49 = vmax.f32 %v574_v27, %v702_v42  ;;  %v704_v50 = vmul.f32 0.2, %v576_v29  ;;  %v2717_v51 = vadd.f32 %v2691_v9, %v445_v43  ;;  %v2720_v52 = vadd.f32 %v2691_v9, %v446_v44  ;;  %v2796_v27 = vld [vmem:[%s2677_s18 + $0x78] sm:$0xff]   ;;  %v2826_v37 = vld [vmem:[%s2677_s18 + $0xc8] sm:$0xff]   ;;  %v2829_v38 = vld [vmem:[%s2677_s18 + $0xd0] sm:$0xff]  }
  0x1d   : > { %v2725_v54 = vpack.c.bf16 %v829_v45, %v828_v41  ;;  %v831_v55 = vmax.f32 %v575_v28, %v703_v46  ;;  %v705_v56 = vmul.f32 0.2, %v577_v30  ;;  %v2728_v57 = vadd.f32 %v2691_v9, %v447_v47  ;;  %v2799_v28 = vld [vmem:[%s2677_s18 + $0x80] sm:$0xff]   ;;  %v2838_v41 = vld [vmem:[%s2677_s18 + $0xe8] sm:$0xff]   ;;  %v2841_v42 = vld [vmem:[%s2677_s18 + $0xf0] sm:$0xff]  }
  0x1e   : > { %v832_v58 = vmax.f32 %v576_v29, %v704_v50  ;;  %v706_v59 = vmul.f32 0.2, %v578_v31  ;;  %v2731_v60 = vadd.f32 %v2691_v9, %v448_v48  ;;  %v449_v61 = vmul.f32 %v1947_v39, %v2682_v0  ;;  %v2802_v29 = vld [vmem:[%s2677_s18 + $0x88] sm:$0xff]   ;;  %v2832_v39 = vld [vmem:[%s2677_s18 + $0xd8] sm:$0xff]   ;;  %v2847_v44 = vld [vmem:[%s2677_s18 + $0x100] sm:$0xff]  }
  0x1f   : > { %v2734_v62 = vpack.c.bf16 %v831_v55, %v830_v49  ;;  %v833_v63 = vmax.f32 %v577_v30, %v705_v56  ;;  %v707_v1 = vmul.f32 0.2, %v579_v32  ;;  %v450_v2 = vmul.f32 %v1948_v40, %v2682_v0  ;;  %v2805_v30 = vld [vmem:[%s2677_s18 + $0x90] sm:$0xff]   ;;  %v2835_v40 = vld [vmem:[%s2677_s18 + $0xe0] sm:$0xff]   ;;  %v2844_v43 = vld [vmem:[%s2677_s18 + $0xf8] sm:$0xff]  }
  0x20   : > { %v834_v4 = vmax.f32 %v578_v31, %v706_v59  ;;  %v2741_v5 = vmul.f32 0.2, %v2717_v51  ;;  %v2744_v6 = vadd.f32 %v2691_v9, %v449_v61  ;;  %v1951_v7 = vunpack.c.l.bf16 %v2723_v53  ;;  %v2808_v31 = vld [vmem:[%s2677_s18 + $0x98] sm:$0xff]   ;;  %v2850_v45 = vld [vmem:[%s2677_s18 + $0x108] sm:$0xff]   ;;  %v2853_v46 = vld [vmem:[%s2677_s18 + $0x110] sm:$0xff]  }
  0x21   : > { %v2747_v8 = vpack.c.bf16 %v833_v63, %v832_v58  ;;  %v835_v10 = vmax.f32 %v579_v32, %v707_v1  ;;  %v2750_v11 = vmul.f32 0.2, %v2720_v52  ;;  %v2753_v12 = vadd.f32 %v2691_v9, %v450_v2  ;;  %v2811_v32 = vld [vmem:[%s2677_s18 + $0xa0] sm:$0xff]   ;;  %v2856_v47 = vld [vmem:[%s2677_s18 + $0x118] sm:$0xff]   ;;  %v2862_v49 = vld [vmem:[%s2677_s18 + $0x128] sm:$0xff]  }
  0x22   : > { %v2758_v14 = vmul.f32 0.2, %v2728_v57  ;;  %v1952_v15 = vunpack.c.h.bf16 %v2723_v53  ;;  %v451_v16 = vmul.f32 %v1951_v7, %v2682_v0  ;;  %v2770_v20 = vmul.f32 0.2, %v2731_v60  ;;  %v2859_v48 = vld [vmem:[%s2677_s18 + $0x120] sm:$0xff]   ;;  %v2865_v50 = vld [vmem:[%s2677_s18 + $0x130] sm:$0xff]  }
  0x23   : > { %v2765_v18 = vpack.c.bf16 %v835_v10, %v834_v4  ;;  %v837_v19 = vmax.f32 %v2720_v52, %v2750_v11  ;;  %v2868_v52 = vld [vmem:[%s2677_s18 + $0x138] sm:$0xff]   ;;  %v2871_v53 = vld [vmem:[%s2677_s18 + $0x140] sm:$0xff]   ;;  %v2874_v55 = vld [vmem:[%s2677_s18 + $0x148] sm:$0xff]  }
  0x24   : > { %v2877_v56 = vld [vmem:[%s2677_s18 + $0x150] sm:$0xff]   ;;  %v2880_v58 = vld [vmem:[%s2677_s18 + $0x158] sm:$0xff]   ;;  %v2883_v59 = vld [vmem:[%s2677_s18 + $0x160] sm:$0xff]   ;;  %v586_v21 = vadd.f32 %v2691_v9, %v451_v16  ;;  %v1956_v16 = vunpack.c.h.bf16 %v2738_v3 }
  0x25   : > { %v2886_v61 = vld [vmem:[%s2677_s18 + $0x168] sm:$0xff]   ;;  %v2889_v63 = vld [vmem:[%s2677_s18 + $0x170] sm:$0xff]   ;;  %v2892_v1 = vld [vmem:[%s2677_s18 + $0x178] sm:$0xff]  }
  0x26   : > { %3394 = vst [vmem:[#allocation2_spill] sm:$0xff] %v2886_v61  ;;  %3395 = vst [vmem:[#allocation3_spill] sm:$0xff] %v2889_v63  ;;  %v2895_v2 = vld [vmem:[%s2677_s18 + $0x180] sm:$0xff]   ;;  %v2898_v4 = vld [vmem:[%s2677_s18 + $0x188] sm:$0xff]  }
  0x27   : > { %3396 = vst [vmem:[#allocation4_spill] sm:$0xff] %v2892_v1  ;;  %3397 = vst [vmem:[#allocation5_spill] sm:$0xff] %v2895_v2  ;;  %v2901_v7 = vld [vmem:[%s2677_s18 + $0x190] sm:$0xff]   ;;  %v2904_v10 = vld [vmem:[%s2677_s18 + $0x198] sm:$0xff]  }
  0x28   : > { %3398 = vst [vmem:[#allocation6_spill] sm:$0xff] %v2898_v4  ;;  %3399 = vst [vmem:[#allocation7_spill] sm:$0xff] %v2901_v7  ;;  %v2907_v11 = vld [vmem:[%s2677_s18 + $0x1a0] sm:$0xff]   ;;  %v2916_v63 = vld [vmem:[%s2677_s18 + $0x1b8] sm:$0xff]   ;;  %v838_v7 = vmax.f32 %v2728_v57, %v2758_v14  ;;  %v839_v14 = vmax.f32 %v2731_v60, %v2770_v20  ;;  %v454_v20 = vmul.f32 %v1956_v16, %v2682_v0 }
  0x29   : > { %3400 = vst [vmem:[#allocation8_spill] sm:$0xff] %v2904_v10  ;;  %3401 = vst [vmem:[#allocation9_spill] sm:$0xff] %v2907_v11  ;;  %v2919_v1 = vld [vmem:[%s2677_s18 + $0x1c0] sm:$0xff]   ;;  %v2922_v2 = vld [vmem:[%s2677_s18 + $0x1c8] sm:$0xff]   ;;  %v712_v10 = vmul.f32 0.2, %v2744_v6  ;;  %v452_v11 = vmul.f32 %v1952_v15, %v2682_v0 }
  0x2a   : > { %3404 = vst [vmem:[#allocation12_spill] sm:$0xff] %v2916_v63  ;;  %3405 = vst [vmem:[#allocation13_spill] sm:$0xff] %v2919_v1  ;;  %v2933_v63 = vld [vmem:[%s2677_s18 + $0x1d8] sm:$0xff]   ;;  %v2936_v1 = vld [vmem:[%s2677_s18 + $0x1e0] sm:$0xff]   ;;  %v713_v15 = vmul.f32 0.2, %v2753_v12 }
  0x2b   : > { %3406 = vst [vmem:[#allocation14_spill] sm:$0xff] %v2922_v2  ;;  %3408 = vst [vmem:[#allocation16_spill] sm:$0xff] %v2933_v63  ;;  %v3410_v2 = vmax.f32 %v2717_v51, %v2741_v5  ;;  %v2946_v4 = vld [vmem:[%s2677_s18 + $0x1e8] sm:$0xff]   ;;  %v2952_v63 = vld [vmem:[%s2677_s18 + $0x1f8] sm:$0xff]   ;;  %v587_v61 = vadd.f32 %v2691_v9, %v452_v11  ;;  %v714_v51 = vmul.f32 0.2, %v586_v21  ;;  %v3411_v5 = vunpack.c.l.bf16 %v2738_v3 }
  0x2c   : > { %3409 = vst [vmem:[#allocation17_spill] sm:$0xff] %v2936_v1  ;;  %v840_v1 = vmax.f32 %v2744_v6, %v712_v10  ;;  %2181 = vst [vmem:[%s2778_s25] sm:$0xff] %v2725_v54   ;;  %v841_v6 = vmax.f32 %v2753_v12, %v713_v15  ;;  %v1960_v54 = vunpack.c.h.bf16 %v2763_v17  ;;  %v1964_v15 = vunpack.c.h.bf16 %v2781_v22 }
  0x2d   : > { %v2200_v57 = vpack.c.bf16 %v837_v19, %v3410_v2  ;;  %v453_v60 = vmul.f32 %v3411_v5, %v2682_v0  ;;  %2560 = vst [vmem:[%s2778_s25 + $0x8] sm:$0xff] %v2734_v62   ;;  %2561 = vst [vmem:[%s2778_s25 + $0x10] sm:$0xff] %v2747_v8   ;;  %v2205_v19 = vpack.c.bf16 %v839_v14, %v838_v7  ;;  %v1959_v2 = vunpack.c.l.bf16 %v2763_v17 }
  0x2e   : > { %2562 = vst [vmem:[%s2778_s25 + $0x18] sm:$0xff] %v2765_v18   ;;  %v715_v10 = vmul.f32 0.2, %v587_v61  ;;  %v842_v3 = vmax.f32 %v586_v21, %v714_v51  ;;  %v2210_v62 = vpack.c.bf16 %v841_v6, %v840_v1  ;;  %v589_v8 = vadd.f32 %v2691_v9, %v454_v20 }
  0x2f   : > { %2563 = vst [vmem:[%s2778_s25 + $0x20] sm:$0xff] %v2200_v57   ;;  %v588_v11 = vadd.f32 %v2691_v9, %v453_v60  ;;  %2564 = vst [vmem:[%s2778_s25 + $0x28] sm:$0xff] %v2205_v19   ;;  %v455_v18 = vmul.f32 %v1959_v2, %v2682_v0  ;;  %v1963_v7 = vunpack.c.l.bf16 %v2781_v22  ;;  %v456_v14 = vmul.f32 %v1960_v54, %v2682_v0 }
  0x30   : > { %v843_v12 = vmax.f32 %v587_v61, %v715_v10  ;;  %2565 = vst [vmem:[%s2778_s25 + $0x30] sm:$0xff] %v2210_v62   ;;  %v717_v21 = vmul.f32 0.2, %v589_v8  ;;  %v1967_v1 = vunpack.c.l.bf16 %v2784_v23  ;;  %v458_v61 = vmul.f32 %v1964_v15, %v2682_v0 }
  0x31   : > { %v716_v57 = vmul.f32 0.2, %v588_v11  ;;  %v590_v16 = vadd.f32 %v2691_v9, %v455_v18  ;;  %v457_v17 = vmul.f32 %v1963_v7, %v2682_v0  ;;  %v591_v60 = vadd.f32 %v2691_v9, %v456_v14 }
  0x32   : > { %v2215_v51 = vpack.c.bf16 %v843_v12, %v842_v3  ;;  %v845_v19 = vmax.f32 %v589_v8, %v717_v21  ;;  %v1968_v22 = vunpack.c.h.bf16 %v2784_v23  ;;  %v593_v10 = vadd.f32 %v2691_v9, %v458_v61 }
  0x33   : > { %v844_v5 = vmax.f32 %v588_v11, %v716_v57  ;;  %v718_v6 = vmul.f32 0.2, %v590_v16  ;;  %v592_v20 = vadd.f32 %v2691_v9, %v457_v17  ;;  %v719_v2 = vmul.f32 0.2, %v591_v60 }
  0x34   : > { %2566 = vst [vmem:[%s2778_s25 + $0x38] sm:$0xff] %v2215_v51   ;;  %v459_v54 = vmul.f32 %v1967_v1, %v2682_v0  ;;  %v1971_v3 = vunpack.c.l.bf16 %v2787_v24  ;;  %v460_v7 = vmul.f32 %v1968_v22, %v2682_v0  ;;  %v721_v12 = vmul.f32 0.2, %v593_v10 }
  0x35   : > { %v2220_v11 = vpack.c.bf16 %v845_v19, %v844_v5  ;;  %v846_v62 = vmax.f32 %v590_v16, %v718_v6  ;;  %v720_v18 = vmul.f32 0.2, %v592_v20  ;;  %v847_v8 = vmax.f32 %v591_v60, %v719_v2 }
  0x36   : > { %v594_v57 = vadd.f32 %v2691_v9, %v459_v54  ;;  %v1972_v23 = vunpack.c.h.bf16 %v2787_v24  ;;  %v595_v15 = vadd.f32 %v2691_v9, %v460_v7  ;;  %v461_v21 = vmul.f32 %v1971_v3, %v2682_v0 }
  0x37   : > { %2567 = vst [vmem:[%s2778_s25 + $0x40] sm:$0xff] %v2220_v11   ;;  %v848_v14 = vmax.f32 %v592_v20, %v720_v18  ;;  %v1975_v17 = vunpack.c.l.bf16 %v2790_v25  ;;  %v2225_v1 = vpack.c.bf16 %v847_v8, %v846_v62  ;;  %v849_v16 = vmax.f32 %v593_v10, %v721_v12 }
  0x38   : > { %v722_v51 = vmul.f32 0.2, %v594_v57  ;;  %v462_v5 = vmul.f32 %v1972_v23, %v2682_v0  ;;  %v723_v60 = vmul.f32 0.2, %v595_v15  ;;  %v596_v61 = vadd.f32 %v2691_v9, %v461_v21 }
  0x39   : > { %v1976_v19 = vunpack.c.h.bf16 %v2790_v25  ;;  %v463_v24 = vmul.f32 %v1975_v17, %v2682_v0  ;;  %2568 = vst [vmem:[%s2778_s25 + $0x48] sm:$0xff] %v2225_v1   ;;  %v2230_v6 = vpack.c.bf16 %v849_v16, %v848_v14  ;;  %v1979_v2 = vunpack.c.l.bf16 %v2793_v26 }
  0x3a   : > { %v850_v20 = vmax.f32 %v594_v57, %v722_v51  ;;  %v597_v22 = vadd.f32 %v2691_v9, %v462_v5  ;;  %v851_v54 = vmax.f32 %v595_v15, %v723_v60  ;;  %v724_v10 = vmul.f32 0.2, %v596_v61 }
  0x3b   : > { %v464_v3 = vmul.f32 %v1976_v19, %v2682_v0  ;;  %v598_v11 = vadd.f32 %v2691_v9, %v463_v24  ;;  %2569 = vst [vmem:[%s2778_s25 + $0x50] sm:$0xff] %v2230_v6   ;;  %v1980_v25 = vunpack.c.h.bf16 %v2793_v26  ;;  %v465_v18 = vmul.f32 %v1979_v2, %v2682_v0 }
  0x3c   : > { %v725_v62 = vmul.f32 0.2, %v597_v22  ;;  %v1983_v7 = vunpack.c.l.bf16 %v2796_v27  ;;  %v2235_v8 = vpack.c.bf16 %v851_v54, %v850_v20  ;;  %v852_v12 = vmax.f32 %v596_v61, %v724_v10 }
  0x3d   : > { %v599_v57 = vadd.f32 %v2691_v9, %v464_v3  ;;  %v726_v23 = vmul.f32 0.2, %v598_v11  ;;  %v466_v15 = vmul.f32 %v1980_v25, %v2682_v0  ;;  %v600_v21 = vadd.f32 %v2691_v9, %v465_v18 }
  0x3e   : > { %v853_v14 = vmax.f32 %v597_v22, %v725_v62  ;;  %v1984_v17 = vunpack.c.h.bf16 %v2796_v27  ;;  %2570 = vst [vmem:[%s2778_s25 + $0x58] sm:$0xff] %v2235_v8   ;;  %v467_v16 = vmul.f32 %v1983_v7, %v2682_v0  ;;  %v1987_v51 = vunpack.c.l.bf16 %v2799_v28 }
  0x3f   : > { %v727_v1 = vmul.f32 0.2, %v599_v57  ;;  %v854_v26 = vmax.f32 %v598_v11, %v726_v23  ;;  %v601_v60 = vadd.f32 %v2691_v9, %v466_v15  ;;  %v728_v61 = vmul.f32 0.2, %v600_v21 }
  0x40   : > { %v2240_v5 = vpack.c.bf16 %v853_v14, %v852_v12  ;;  %v468_v19 = vmul.f32 %v1984_v17, %v2682_v0  ;;  %v602_v6 = vadd.f32 %v2691_v9, %v467_v16  ;;  %v1988_v20 = vunpack.c.h.bf16 %v2799_v28 }
  0x41   : > { %v855_v24 = vmax.f32 %v599_v57, %v727_v1  ;;  %v469_v27 = vmul.f32 %v1987_v51, %v2682_v0  ;;  %v729_v22 = vmul.f32 0.2, %v601_v60  ;;  %v856_v2 = vmax.f32 %v600_v21, %v728_v61 }
  0x42   : > { %2571 = vst [vmem:[%s2778_s25 + $0x60] sm:$0xff] %v2240_v5   ;;  %v603_v54 = vadd.f32 %v2691_v9, %v468_v19  ;;  %v1991_v10 = vunpack.c.l.bf16 %v2802_v29  ;;  %v730_v11 = vmul.f32 0.2, %v602_v6  ;;  %v470_v62 = vmul.f32 %v1988_v20, %v2682_v0 }
  0x43   : > { %v2245_v3 = vpack.c.bf16 %v855_v24, %v854_v26  ;;  %v604_v25 = vadd.f32 %v2691_v9, %v469_v27  ;;  %v857_v18 = vmax.f32 %v601_v60, %v729_v22  ;;  %v1992_v28 = vunpack.c.h.bf16 %v2802_v29 }
  0x44   : > { %v731_v7 = vmul.f32 0.2, %v603_v54  ;;  %v471_v8 = vmul.f32 %v1991_v10, %v2682_v0  ;;  %v858_v12 = vmax.f32 %v602_v6, %v730_v11  ;;  %v605_v57 = vadd.f32 %v2691_v9, %v470_v62 }
  0x45   : > { %2572 = vst [vmem:[%s2778_s25 + $0x68] sm:$0xff] %v2245_v3   ;;  %v732_v23 = vmul.f32 0.2, %v604_v25  ;;  %v1995_v14 = vunpack.c.l.bf16 %v2805_v30  ;;  %v2250_v15 = vpack.c.bf16 %v857_v18, %v856_v2  ;;  %v472_v17 = vmul.f32 %v1992_v28, %v2682_v0 }
  0x46   : > { %v859_v21 = vmax.f32 %v603_v54, %v731_v7  ;;  %v606_v1 = vadd.f32 %v2691_v9, %v471_v8  ;;  %v733_v26 = vmul.f32 0.2, %v605_v57  ;;  %v1996_v29 = vunpack.c.h.bf16 %v2805_v30 }
  0x47   : > { %v860_v16 = vmax.f32 %v604_v25, %v732_v23  ;;  %v473_v51 = vmul.f32 %v1995_v14, %v2682_v0  ;;  %2573 = vst [vmem:[%s2778_s25 + $0x70] sm:$0xff] %v2250_v15   ;;  %v607_v60 = vadd.f32 %v2691_v9, %v472_v17  ;;  %v1999_v19 = vunpack.c.l.bf16 %v2808_v31 }
  0x48   : > { %v2255_v5 = vpack.c.bf16 %v859_v21, %v858_v12  ;;  %v734_v61 = vmul.f32 0.2, %v606_v1  ;;  %v861_v24 = vmax.f32 %v605_v57, %v733_v26  ;;  %v474_v6 = vmul.f32 %v1996_v29, %v2682_v0 }
  0x49   : > { %v608_v20 = vadd.f32 %v2691_v9, %v473_v51  ;;  %v2000_v27 = vunpack.c.h.bf16 %v2808_v31  ;;  %v735_v22 = vmul.f32 0.2, %v607_v60  ;;  %v475_v2 = vmul.f32 %v1999_v19, %v2682_v0 }
  0x4a   : > { %2574 = vst [vmem:[%s2778_s25 + $0x78] sm:$0xff] %v2255_v5   ;;  %v862_v30 = vmax.f32 %v606_v1, %v734_v61  ;;  %v2003_v54 = vunpack.c.l.bf16 %v2811_v32  ;;  %v2260_v10 = vpack.c.bf16 %v861_v24, %v860_v16  ;;  %v609_v3 = vadd.f32 %v2691_v9, %v474_v6 }
  0x4b   : > { %v736_v11 = vmul.f32 0.2, %v608_v20  ;;  %v476_v62 = vmul.f32 %v2000_v27, %v2682_v0  ;;  %v863_v25 = vmax.f32 %v607_v60, %v735_v22  ;;  %v610_v18 = vadd.f32 %v2691_v9, %v475_v2 }
  0x4c   : > { %v2004_v7 = vunpack.c.h.bf16 %v2811_v32  ;;  %v477_v31 = vmul.f32 %v2003_v54, %v2682_v0  ;;  %2575 = vst [vmem:[%s2778_s25 + $0x80] sm:$0xff] %v2260_v10   ;;  %v737_v28 = vmul.f32 0.2, %v609_v3  ;;  %v2007_v57 = vunpack.c.l.bf16 %v2814_v33 }
  0x4d   : > { %v864_v8 = vmax.f32 %v608_v20, %v736_v11  ;;  %v611_v12 = vadd.f32 %v2691_v9, %v476_v62  ;;  %v2265_v23 = vpack.c.bf16 %v863_v25, %v862_v30  ;;  %v738_v14 = vmul.f32 0.2, %v610_v18 }
  0x4e   : > { %v478_v15 = vmul.f32 %v2004_v7, %v2682_v0  ;;  %v612_v21 = vadd.f32 %v2691_v9, %v477_v31  ;;  %v865_v17 = vmax.f32 %v609_v3, %v737_v28  ;;  %v2008_v32 = vunpack.c.h.bf16 %v2814_v33 }
  0x4f   : > { %v739_v1 = vmul.f32 0.2, %v611_v12  ;;  %v479_v26 = vmul.f32 %v2007_v57, %v2682_v0  ;;  %2576 = vst [vmem:[%s2778_s25 + $0x88] sm:$0xff] %v2265_v23   ;;  %v866_v16 = vmax.f32 %v610_v18, %v738_v14  ;;  %v2011_v5 = vunpack.c.l.bf16 %v2817_v34 }
  0x50   : > { %v613_v29 = vadd.f32 %v2691_v9, %v478_v15  ;;  %v740_v51 = vmul.f32 0.2, %v612_v21  ;;  %v2270_v60 = vpack.c.bf16 %v865_v17, %v864_v8  ;;  %v480_v19 = vmul.f32 %v2008_v32, %v2682_v0 }
  0x51   : > { %v867_v61 = vmax.f32 %v611_v12, %v739_v1  ;;  %v614_v24 = vadd.f32 %v2691_v9, %v479_v26  ;;  %v2012_v33 = vunpack.c.h.bf16 %v2817_v34  ;;  %v481_v27 = vmul.f32 %v2011_v5, %v2682_v0 }
  0x52   : > { %v741_v6 = vmul.f32 0.2, %v613_v29  ;;  %v868_v20 = vmax.f32 %v612_v21, %v740_v51  ;;  %2577 = vst [vmem:[%s2778_s25 + $0x90] sm:$0xff] %v2270_v60   ;;  %v615_v30 = vadd.f32 %v2691_v9, %v480_v19  ;;  %v2015_v54 = vunpack.c.l.bf16 %v2820_v35 }
  0x53   : > { %v2275_v22 = vpack.c.bf16 %v867_v61, %v866_v16  ;;  %v742_v2 = vmul.f32 0.2, %v614_v24  ;;  %v482_v3 = vmul.f32 %v2012_v33, %v2682_v0  ;;  %v616_v11 = vadd.f32 %v2691_v9, %v481_v27 }
  0x54   : > { %v869_v10 = vmax.f32 %v613_v29, %v741_v6  ;;  %v2016_v62 = vunpack.c.h.bf16 %v2820_v35  ;;  %v743_v25 = vmul.f32 0.2, %v615_v30  ;;  %v483_v18 = vmul.f32 %v2015_v54, %v2682_v0 }
  0x55   : > { %2578 = vst [vmem:[%s2778_s25 + $0x98] sm:$0xff] %v2275_v22   ;;  %v870_v34 = vmax.f32 %v614_v24, %v742_v2  ;;  %v2019_v7 = vunpack.c.l.bf16 %v2823_v36  ;;  %v617_v28 = vadd.f32 %v2691_v9, %v482_v3  ;;  %v744_v8 = vmul.f32 0.2, %v616_v11 }
  0x56   : > { %v2280_v31 = vpack.c.bf16 %v869_v10, %v868_v20  ;;  %v484_v12 = vmul.f32 %v2016_v62, %v2682_v0  ;;  %v871_v57 = vmax.f32 %v615_v30, %v743_v25  ;;  %v618_v23 = vadd.f32 %v2691_v9, %v483_v18 }
  0x57   : > { %v2020_v14 = vunpack.c.h.bf16 %v2823_v36  ;;  %v485_v35 = vmul.f32 %v2019_v7, %v2682_v0  ;;  %v745_v15 = vmul.f32 0.2, %v617_v28  ;;  %v872_v21 = vmax.f32 %v616_v11, %v744_v8 }
  0x58   : > { %2579 = vst [vmem:[%s2778_s25 + $0xa0] sm:$0xff] %v2280_v31   ;;  %v619_v17 = vadd.f32 %v2691_v9, %v484_v12  ;;  %v2023_v1 = vunpack.c.l.bf16 %v2826_v37  ;;  %v2285_v32 = vpack.c.bf16 %v871_v57, %v870_v34  ;;  %v746_v26 = vmul.f32 0.2, %v618_v23 }
  0x59   : > { %v486_v16 = vmul.f32 %v2020_v14, %v2682_v0  ;;  %v620_v29 = vadd.f32 %v2691_v9, %v485_v35  ;;  %v873_v51 = vmax.f32 %v617_v28, %v745_v15  ;;  %v2024_v36 = vunpack.c.h.bf16 %v2826_v37 }
  0x5a   : > { %v747_v5 = vmul.f32 0.2, %v619_v17  ;;  %v487_v60 = vmul.f32 %v2023_v1, %v2682_v0  ;;  %2580 = vst [vmem:[%s2778_s25 + $0xa8] sm:$0xff] %v2285_v32   ;;  %v874_v61 = vmax.f32 %v618_v23, %v746_v26  ;;  %v2027_v6 = vunpack.c.l.bf16 %v2829_v38 }
  0x5b   : > { %v621_v19 = vadd.f32 %v2691_v9, %v486_v16  ;;  %v748_v24 = vmul.f32 0.2, %v620_v29  ;;  %v2290_v20 = vpack.c.bf16 %v873_v51, %v872_v21  ;;  %v488_v27 = vmul.f32 %v2024_v36, %v2682_v0 }
  0x5c   : > { %v875_v33 = vmax.f32 %v619_v17, %v747_v5  ;;  %v622_v22 = vadd.f32 %v2691_v9, %v487_v60  ;;  %v2028_v37 = vunpack.c.h.bf16 %v2829_v38  ;;  %v489_v54 = vmul.f32 %v2027_v6, %v2682_v0 }
  0x5d   : > { %v749_v30 = vmul.f32 0.2, %v621_v19  ;;  %v876_v2 = vmax.f32 %v620_v29, %v748_v24  ;;  %2581 = vst [vmem:[%s2778_s25 + $0xb0] sm:$0xff] %v2290_v20   ;;  %v623_v3 = vadd.f32 %v2691_v9, %v488_v27  ;;  %v2031_v62 = vunpack.c.l.bf16 %v2832_v39 }
  0x5e   : > { %v2295_v10 = vpack.c.bf16 %v875_v33, %v874_v61  ;;  %v750_v11 = vmul.f32 0.2, %v622_v22  ;;  %v490_v34 = vmul.f32 %v2028_v37, %v2682_v0  ;;  %v624_v18 = vadd.f32 %v2691_v9, %v489_v54 }
  0x5f   : > { %v877_v25 = vmax.f32 %v621_v19, %v749_v30  ;;  %v2032_v7 = vunpack.c.h.bf16 %v2832_v39  ;;  %v751_v31 = vmul.f32 0.2, %v623_v3  ;;  %v491_v28 = vmul.f32 %v2031_v62, %v2682_v0 }
  0x60   : > { %2582 = vst [vmem:[%s2778_s25 + $0xb8] sm:$0xff] %v2295_v10   ;;  %v878_v38 = vmax.f32 %v622_v22, %v750_v11  ;;  %v2035_v8 = vunpack.c.l.bf16 %v2835_v40  ;;  %v625_v57 = vadd.f32 %v2691_v9, %v490_v34  ;;  %v752_v23 = vmul.f32 0.2, %v624_v18 }
  0x61   : > { %v2300_v12 = vpack.c.bf16 %v877_v25, %v876_v2  ;;  %v492_v14 = vmul.f32 %v2032_v7, %v2682_v0  ;;  %v879_v35 = vmax.f32 %v623_v3, %v751_v31  ;;  %v626_v15 = vadd.f32 %v2691_v9, %v491_v28 }
  0x62   : > { %v2036_v21 = vunpack.c.h.bf16 %v2835_v40  ;;  %v493_v39 = vmul.f32 %v2035_v8, %v2682_v0  ;;  %v753_v17 = vmul.f32 0.2, %v625_v57  ;;  %v880_v1 = vmax.f32 %v624_v18, %v752_v23 }
  0x63   : > { %2583 = vst [vmem:[%s2778_s25 + $0xc0] sm:$0xff] %v2300_v12   ;;  %v627_v32 = vadd.f32 %v2691_v9, %v492_v14  ;;  %v2039_v26 = vunpack.c.l.bf16 %v2838_v41  ;;  %v2305_v16 = vpack.c.bf16 %v879_v35, %v878_v38  ;;  %v754_v29 = vmul.f32 0.2, %v626_v15 }
  0x64   : > { %v494_v51 = vmul.f32 %v2036_v21, %v2682_v0  ;;  %v628_v5 = vadd.f32 %v2691_v9, %v493_v39  ;;  %v881_v36 = vmax.f32 %v625_v57, %v753_v17  ;;  %v2040_v40 = vunpack.c.h.bf16 %v2838_v41 }
  0x65   : > { %v755_v60 = vmul.f32 0.2, %v627_v32  ;;  %v495_v61 = vmul.f32 %v2039_v26, %v2682_v0  ;;  %2584 = vst [vmem:[%s2778_s25 + $0xc8] sm:$0xff] %v2305_v16   ;;  %v882_v19 = vmax.f32 %v626_v15, %v754_v29  ;;  %v2043_v20 = vunpack.c.l.bf16 %v2841_v42 }
  0x66   : > { %v629_v24 = vadd.f32 %v2691_v9, %v494_v51  ;;  %v756_v6 = vmul.f32 0.2, %v628_v5  ;;  %v2310_v33 = vpack.c.bf16 %v881_v36, %v880_v1  ;;  %v496_v22 = vmul.f32 %v2040_v40, %v2682_v0 }
  0x67   : > { %v883_v27 = vmax.f32 %v627_v32, %v755_v60  ;;  %v630_v30 = vadd.f32 %v2691_v9, %v495_v61  ;;  %v2044_v41 = vunpack.c.h.bf16 %v2841_v42  ;;  %v497_v54 = vmul.f32 %v2043_v20, %v2682_v0 }
  0x68   : > { %v757_v2 = vmul.f32 0.2, %v629_v24  ;;  %v884_v37 = vmax.f32 %v628_v5, %v756_v6  ;;  %2585 = vst [vmem:[%s2778_s25 + $0xd0] sm:$0xff] %v2310_v33   ;;  %v631_v3 = vadd.f32 %v2691_v9, %v496_v22  ;;  %v2047_v62 = vunpack.c.l.bf16 %v2844_v43 }
  0x69   : > { %v2315_v10 = vpack.c.bf16 %v883_v27, %v882_v19  ;;  %v758_v11 = vmul.f32 0.2, %v630_v30  ;;  %v498_v34 = vmul.f32 %v2044_v41, %v2682_v0  ;;  %v632_v18 = vadd.f32 %v2691_v9, %v497_v54 }
  0x6a   : > { %v885_v25 = vmax.f32 %v629_v24, %v757_v2  ;;  %v2048_v7 = vunpack.c.h.bf16 %v2844_v43  ;;  %v759_v31 = vmul.f32 0.2, %v631_v3  ;;  %v499_v38 = vmul.f32 %v2047_v62, %v2682_v0 }
  0x6b   : > { %2586 = vst [vmem:[%s2778_s25 + $0xd8] sm:$0xff] %v2315_v10   ;;  %v886_v42 = vmax.f32 %v630_v30, %v758_v11  ;;  %v2051_v28 = vunpack.c.l.bf16 %v2847_v44  ;;  %v633_v12 = vadd.f32 %v2691_v9, %v498_v34  ;;  %v760_v57 = vmul.f32 0.2, %v632_v18 }
  0x6c   : > { %v2320_v8 = vpack.c.bf16 %v885_v25, %v884_v37  ;;  %v500_v23 = vmul.f32 %v2048_v7, %v2682_v0  ;;  %v887_v14 = vmax.f32 %v631_v3, %v759_v31  ;;  %v634_v35 = vadd.f32 %v2691_v9, %v499_v38 }
  0x6d   : > { %v2052_v15 = vunpack.c.h.bf16 %v2847_v44  ;;  %v501_v43 = vmul.f32 %v2051_v28, %v2682_v0  ;;  %v761_v21 = vmul.f32 0.2, %v633_v12  ;;  %v888_v39 = vmax.f32 %v632_v18, %v760_v57 }
  0x6e   : > { %2587 = vst [vmem:[%s2778_s25 + $0xe0] sm:$0xff] %v2320_v8   ;;  %v635_v17 = vadd.f32 %v2691_v9, %v500_v23  ;;  %v2055_v1 = vunpack.c.l.bf16 %v2850_v45  ;;  %v2325_v32 = vpack.c.bf16 %v887_v14, %v886_v42  ;;  %v762_v26 = vmul.f32 0.2, %v634_v35 }
  0x6f   : > { %v502_v16 = vmul.f32 %v2052_v15, %v2682_v0  ;;  %v636_v29 = vadd.f32 %v2691_v9, %v501_v43  ;;  %v889_v51 = vmax.f32 %v633_v12, %v761_v21  ;;  %v2056_v44 = vunpack.c.h.bf16 %v2850_v45 }
  0x70   : > { %v763_v5 = vmul.f32 0.2, %v635_v17  ;;  %v503_v36 = vmul.f32 %v2055_v1, %v2682_v0  ;;  %2588 = vst [vmem:[%s2778_s25 + $0xe8] sm:$0xff] %v2325_v32   ;;  %v890_v60 = vmax.f32 %v634_v35, %v762_v26  ;;  %v2059_v19 = vunpack.c.l.bf16 %v2853_v46 }
  0x71   : > { %v637_v40 = vadd.f32 %v2691_v9, %v502_v16  ;;  %v764_v61 = vmul.f32 0.2, %v636_v29  ;;  %v2330_v24 = vpack.c.bf16 %v889_v51, %v888_v39  ;;  %v504_v20 = vmul.f32 %v2056_v44, %v2682_v0 }
  0x72   : > { %v891_v6 = vmax.f32 %v635_v17, %v763_v5  ;;  %v638_v33 = vadd.f32 %v2691_v9, %v503_v36  ;;  %v2060_v45 = vunpack.c.h.bf16 %v2853_v46  ;;  %v505_v30 = vmul.f32 %v2059_v19, %v2682_v0  ;;  %v3179_v19 = vld [vmem:[%s3375_s1] ss:$0 sm:$0xff] }
  0x73   : > { %v765_v27 = vmul.f32 0.2, %v637_v40  ;;  %v892_v22 = vmax.f32 %v636_v29, %v764_v61  ;;  %2589 = vst [vmem:[%s2778_s25 + $0xf0] sm:$0xff] %v2330_v24   ;;  %v639_v37 = vadd.f32 %v2691_v9, %v504_v20  ;;  %v2063_v54 = vunpack.c.l.bf16 %v2856_v47 }
  0x74   : > { %v2335_v2 = vpack.c.bf16 %v891_v6, %v890_v60  ;;  %v766_v41 = vmul.f32 0.2, %v638_v33  ;;  %v506_v3 = vmul.f32 %v2060_v45, %v2682_v0  ;;  %v640_v11 = vadd.f32 %v2691_v9, %v505_v30 }
  0x75   : > { %v893_v10 = vmax.f32 %v637_v40, %v765_v27  ;;  %v2064_v62 = vunpack.c.h.bf16 %v2856_v47  ;;  %v767_v25 = vmul.f32 0.2, %v639_v37  ;;  %v507_v34 = vmul.f32 %v2063_v54, %v2682_v0 }
  0x76   : > { %2590 = vst [vmem:[%s2778_s25 + $0xf8] sm:$0xff] %v2335_v2   ;;  %v894_v46 = vmax.f32 %v638_v33, %v766_v41  ;;  %v2067_v18 = vunpack.c.l.bf16 %v2859_v48  ;;  %v641_v31 = vadd.f32 %v2691_v9, %v506_v3  ;;  %v768_v42 = vmul.f32 0.2, %v640_v11 }
  0x77   : > { %v2340_v7 = vpack.c.bf16 %v893_v10, %v892_v22  ;;  %v508_v38 = vmul.f32 %v2064_v62, %v2682_v0  ;;  %v895_v28 = vmax.f32 %v639_v37, %v767_v25  ;;  %v642_v8 = vadd.f32 %v2691_v9, %v507_v34  ;;  %v3194_v10 = vld [vmem:[%s3376_s2] ss:$0 sm:$0xff] }
  0x78   : > { %v2068_v12 = vunpack.c.h.bf16 %v2859_v48  ;;  %v509_v47 = vmul.f32 %v2067_v18, %v2682_v0  ;;  %v769_v57 = vmul.f32 0.2, %v641_v31  ;;  %v896_v23 = vmax.f32 %v640_v11, %v768_v42 }
  0x79   : > { %2591 = vst [vmem:[%s2778_s25 + $0x100] sm:$0xff] %v2340_v7   ;;  %v643_v14 = vadd.f32 %v2691_v9, %v508_v38  ;;  %v2071_v35 = vunpack.c.l.bf16 %v2862_v49  ;;  %v2345_v15 = vpack.c.bf16 %v895_v28, %v894_v46  ;;  %v770_v43 = vmul.f32 0.2, %v642_v8 }
  0x7a   : > { %v510_v21 = vmul.f32 %v2068_v12, %v2682_v0  ;;  %v644_v39 = vadd.f32 %v2691_v9, %v509_v47  ;;  %v897_v17 = vmax.f32 %v641_v31, %v769_v57  ;;  %v2072_v32 = vunpack.c.h.bf16 %v2862_v49 }
  0x7b   : > { %v771_v1 = vmul.f32 0.2, %v643_v14  ;;  %v511_v48 = vmul.f32 %v2071_v35, %v2682_v0  ;;  %2592 = vst [vmem:[%s2778_s25 + $0x108] sm:$0xff] %v2345_v15   ;;  %v898_v26 = vmax.f32 %v642_v8, %v770_v43  ;;  %v2075_v51 = vunpack.c.l.bf16 %v2865_v50 }
  0x7c   : > { %v645_v16 = vadd.f32 %v2691_v9, %v510_v21  ;;  %v772_v29 = vmul.f32 0.2, %v644_v39  ;;  %v2350_v5 = vpack.c.bf16 %v897_v17, %v896_v23  ;;  %v512_v36 = vmul.f32 %v2072_v32, %v2682_v0 }
  0x7d   : > { %v899_v44 = vmax.f32 %v643_v14, %v771_v1  ;;  %v646_v60 = vadd.f32 %v2691_v9, %v511_v48  ;;  %v2076_v49 = vunpack.c.h.bf16 %v2865_v50  ;;  %v513_v24 = vmul.f32 %v3179_v19, %v2075_v51 }
  0x7e   : > { %v773_v40 = vmul.f32 0.2, %v645_v16  ;;  %v900_v61 = vmax.f32 %v644_v39, %v772_v29  ;;  %2593 = vst [vmem:[%s2778_s25 + $0x110] sm:$0xff] %v2350_v5   ;;  %v647_v20 = vadd.f32 %v2691_v9, %v512_v36  ;;  %v2079_v0 = vunpack.c.l.bf16 %v2868_v52 }
  0x7f   : > { %v2355_v6 = vpack.c.bf16 %v899_v44, %v898_v26  ;;  %v774_v33 = vmul.f32 0.2, %v646_v60  ;;  %v514_v22 = vmul.f32 %v3179_v19, %v2076_v49  ;;  %v648_v45 = vadd.f32 %v2691_v9, %v513_v24 }
  0x80   : > { %v901_v27 = vmax.f32 %v645_v16, %v773_v40  ;;  %v2080_v50 = vunpack.c.h.bf16 %v2868_v52  ;;  %v775_v30 = vmul.f32 0.2, %v647_v20  ;;  %v515_v37 = vmul.f32 %v3179_v19, %v2079_v0 }
  0x81   : > { %2594 = vst [vmem:[%s2778_s25 + $0x118] sm:$0xff] %v2355_v6   ;;  %v902_v2 = vmax.f32 %v646_v60, %v774_v33  ;;  %v2083_v41 = vunpack.c.l.bf16 %v2871_v53  ;;  %v649_v3 = vadd.f32 %v3194_v10, %v514_v22  ;;  %v776_v11 = vmul.f32 0.2, %v648_v45 }
  0x82   : > { %v2360_v54 = vpack.c.bf16 %v901_v27, %v900_v61  ;;  %v516_v9 = vmul.f32 %v3179_v19, %v2080_v50  ;;  %v903_v62 = vmax.f32 %v647_v20, %v775_v30  ;;  %v650_v52 = vadd.f32 %v3194_v10, %v515_v37 }
  0x83   : > { %v2084_v25 = vunpack.c.h.bf16 %v2871_v53  ;;  %v517_v46 = vmul.f32 %v3179_v19, %v2083_v41  ;;  %v777_v34 = vmul.f32 0.2, %v649_v3  ;;  %v904_v18 = vmax.f32 %v648_v45, %v776_v11 }
  0x84   : > { %2595 = vst [vmem:[%s2778_s25 + $0x120] sm:$0xff] %v2360_v54   ;;  %v651_v7 = vadd.f32 %v3194_v10, %v516_v9  ;;  %v2087_v31 = vunpack.c.l.bf16 %v2874_v55  ;;  %v2365_v42 = vpack.c.bf16 %v903_v62, %v902_v2  ;;  %v778_v38 = vmul.f32 0.2, %v650_v52  ;;  %v3412_v2 = vld [vmem:[#allocation2_spill] sm:$0xff] }
  0x85   : > { %v518_v28 = vmul.f32 %v3179_v19, %v2084_v25  ;;  %v652_v8 = vadd.f32 %v3194_v10, %v517_v46  ;;  %v905_v12 = vmax.f32 %v649_v3, %v777_v34  ;;  %v2088_v53 = vunpack.c.h.bf16 %v2874_v55 }
  0x86   : > { %v779_v47 = vmul.f32 0.2, %v651_v7  ;;  %v519_v57 = vmul.f32 %v3179_v19, %v2087_v31  ;;  %2596 = vst [vmem:[%s2778_s25 + $0x128] sm:$0xff] %v2365_v42   ;;  %v906_v23 = vmax.f32 %v650_v52, %v778_v38  ;;  %v2091_v15 = vunpack.c.l.bf16 %v2877_v56 }
  0x87   : > { %v653_v14 = vadd.f32 %v3194_v10, %v518_v28  ;;  %v780_v35 = vmul.f32 0.2, %v652_v8  ;;  %v2370_v43 = vpack.c.bf16 %v905_v12, %v904_v18  ;;  %v520_v39 = vmul.f32 %v3179_v19, %v2088_v53  ;;  %v3413_v18 = vld [vmem:[#allocation3_spill] sm:$0xff] }
  0x88   : > { %v907_v21 = vmax.f32 %v651_v7, %v779_v47  ;;  %v654_v17 = vadd.f32 %v3194_v10, %v519_v57  ;;  %v2092_v55 = vunpack.c.h.bf16 %v2877_v56  ;;  %v521_v48 = vmul.f32 %v3179_v19, %v2091_v15 }
  0x89   : > { %v781_v1 = vmul.f32 0.2, %v653_v14  ;;  %v908_v32 = vmax.f32 %v652_v8, %v780_v35  ;;  %2597 = vst [vmem:[%s2778_s25 + $0x130] sm:$0xff] %v2370_v43   ;;  %v655_v16 = vadd.f32 %v3194_v10, %v520_v39  ;;  %v2095_v51 = vunpack.c.l.bf16 %v2880_v58  ;;  %v3414_v35 = vld [vmem:[#allocation4_spill] sm:$0xff] }
  0x8a   : > { %v2375_v26 = vpack.c.bf16 %v907_v21, %v906_v23  ;;  %v782_v29 = vmul.f32 0.2, %v654_v17  ;;  %v522_v44 = vmul.f32 %v3179_v19, %v2092_v55  ;;  %v656_v36 = vadd.f32 %v3194_v10, %v521_v48  ;;  %v3415_v48 = vld [vmem:[#allocation5_spill] sm:$0xff] }
  0x8b   : > { %v909_v5 = vmax.f32 %v653_v14, %v781_v1  ;;  %v2096_v60 = vunpack.c.h.bf16 %v2880_v58  ;;  %v783_v40 = vmul.f32 0.2, %v655_v16  ;;  %v523_v61 = vmul.f32 %v3179_v19, %v2095_v51 }
  0x8c   : > { %2598 = vst [vmem:[%s2778_s25 + $0x138] sm:$0xff] %v2375_v26   ;;  %v910_v56 = vmax.f32 %v654_v17, %v782_v29  ;;  %v2099_v49 = vunpack.c.l.bf16 %v2883_v59  ;;  %v657_v6 = vadd.f32 %v3194_v10, %v522_v44  ;;  %v784_v20 = vmul.f32 0.2, %v656_v36 }
  0x8d   : > { %v2380_v24 = vpack.c.bf16 %v909_v5, %v908_v32  ;;  %v524_v33 = vmul.f32 %v3179_v19, %v2096_v60  ;;  %v911_v0 = vmax.f32 %v655_v16, %v783_v40  ;;  %v658_v27 = vadd.f32 %v3194_v10, %v523_v61 }
  0x8e   : > { %v2100_v22 = vunpack.c.h.bf16 %v2883_v59  ;;  %v525_v58 = vmul.f32 %v3179_v19, %v2099_v49  ;;  %v785_v45 = vmul.f32 0.2, %v657_v6  ;;  %v912_v50 = vmax.f32 %v656_v36, %v784_v20 }
  0x8f   : > { %2599 = vst [vmem:[%s2778_s25 + $0x140] sm:$0xff] %v2380_v24   ;;  %v659_v30 = vadd.f32 %v3194_v10, %v524_v33  ;;  %v2103_v37 = vunpack.c.l.bf16 %v3412_v2  ;;  %v2385_v41 = vpack.c.bf16 %v911_v0, %v910_v56  ;;  %v786_v54 = vmul.f32 0.2, %v658_v27  ;;  %v3416_v24 = vld [vmem:[#allocation6_spill] sm:$0xff] }
  0x90   : > { %v526_v3 = vmul.f32 %v3179_v19, %v2100_v22  ;;  %v660_v11 = vadd.f32 %v3194_v10, %v525_v58  ;;  %v913_v9 = vmax.f32 %v657_v6, %v785_v45  ;;  %v2104_v59 = vunpack.c.h.bf16 %v3412_v2 }
  0x91   : > { %v787_v62 = vmul.f32 0.2, %v659_v30  ;;  %v527_v52 = vmul.f32 %v3179_v19, %v2103_v37  ;;  %2600 = vst [vmem:[%s2778_s25 + $0x148] sm:$0xff] %v2385_v41   ;;  %v914_v25 = vmax.f32 %v658_v27, %v786_v54  ;;  %v2107_v7 = vunpack.c.l.bf16 %v3413_v18  ;;  %v3417_v41 = vld [vmem:[#allocation7_spill] sm:$0xff] }
  0x92   : > { %v661_v46 = vadd.f32 %v3194_v10, %v526_v3  ;;  %v788_v34 = vmul.f32 0.2, %v660_v11  ;;  %v2390_v31 = vpack.c.bf16 %v913_v9, %v912_v50  ;;  %v528_v38 = vmul.f32 %v3179_v19, %v2104_v59 }
  0x93   : > { %v915_v42 = vmax.f32 %v659_v30, %v787_v62  ;;  %v662_v28 = vadd.f32 %v3194_v10, %v527_v52  ;;  %v2108_v47 = vunpack.c.h.bf16 %v3413_v18  ;;  %v529_v53 = vmul.f32 %v3179_v19, %v2107_v7 }
  0x94   : > { %v789_v8 = vmul.f32 0.2, %v661_v46  ;;  %v916_v12 = vmax.f32 %v660_v11, %v788_v34  ;;  %2601 = vst [vmem:[%s2778_s25 + $0x150] sm:$0xff] %v2390_v31   ;;  %v663_v23 = vadd.f32 %v3194_v10, %v528_v38  ;;  %v2111_v15 = vunpack.c.l.bf16 %v3414_v35  ;;  %v3418_v31 = vld [vmem:[#allocation8_spill] sm:$0xff] }
  0x95   : > { %v2395_v57 = vpack.c.bf16 %v915_v42, %v914_v25  ;;  %v790_v14 = vmul.f32 0.2, %v662_v28  ;;  %v530_v21 = vmul.f32 %v3179_v19, %v2108_v47  ;;  %v664_v39 = vadd.f32 %v3194_v10, %v529_v53 }
  0x96   : > { %v917_v43 = vmax.f32 %v661_v46, %v789_v8  ;;  %v2112_v17 = vunpack.c.h.bf16 %v3414_v35  ;;  %v791_v1 = vmul.f32 0.2, %v663_v23  ;;  %v531_v55 = vmul.f32 %v3179_v19, %v2111_v15 }
  0x97   : > { %2602 = vst [vmem:[%s2778_s25 + $0x158] sm:$0xff] %v2395_v57   ;;  %v918_v32 = vmax.f32 %v662_v28, %v790_v14  ;;  %v2115_v26 = vunpack.c.l.bf16 %v3415_v48  ;;  %v665_v29 = vadd.f32 %v3194_v10, %v530_v21  ;;  %v792_v51 = vmul.f32 0.2, %v664_v39 }
  0x98   : > { %v2400_v16 = vpack.c.bf16 %v917_v43, %v916_v12  ;;  %v532_v5 = vmul.f32 %v3179_v19, %v2112_v17  ;;  %v919_v44 = vmax.f32 %v663_v23, %v791_v1  ;;  %v666_v36 = vadd.f32 %v3194_v10, %v531_v55  ;;  %v3419_v23 = vld [vmem:[#allocation9_spill] sm:$0xff] }
  0x99   : > { %v2116_v60 = vunpack.c.h.bf16 %v3415_v48  ;;  %v533_v40 = vmul.f32 %v3179_v19, %v2115_v26  ;;  %v793_v56 = vmul.f32 0.2, %v665_v29  ;;  %v920_v61 = vmax.f32 %v664_v39, %v792_v51 }
  0x9a   : > { %2603 = vst [vmem:[%s2778_s25 + $0x160] sm:$0xff] %v2400_v16   ;;  %v667_v49 = vadd.f32 %v3194_v10, %v532_v5  ;;  %v2119_v6 = vunpack.c.l.bf16 %v3416_v24  ;;  %v2405_v20 = vpack.c.bf16 %v919_v44, %v918_v32  ;;  %v794_v33 = vmul.f32 0.2, %v666_v36  ;;  %v3420_v16 = vld [vmem:[#allocation10_spill] sm:$0xff] }
  0x9b   : > { %v534_v0 = vmul.f32 %v3179_v19, %v2116_v60  ;;  %v668_v27 = vadd.f32 %v3194_v10, %v533_v40  ;;  %v921_v22 = vmax.f32 %v665_v29, %v793_v56  ;;  %v2120_v45 = vunpack.c.h.bf16 %v3416_v24 }
  0x9c   : > { %v795_v58 = vmul.f32 0.2, %v667_v49  ;;  %v535_v50 = vmul.f32 %v3179_v19, %v2119_v6  ;;  %2604 = vst [vmem:[%s2778_s25 + $0x168] sm:$0xff] %v2405_v20   ;;  %v922_v30 = vmax.f32 %v666_v36, %v794_v33  ;;  %v2123_v54 = vunpack.c.l.bf16 %v3417_v41  ;;  %v3421_v20 = vld [vmem:[#allocation11_spill] sm:$0xff] }
  0x9d   : > { %v669_v2 = vadd.f32 %v3194_v10, %v534_v0  ;;  %v796_v37 = vmul.f32 0.2, %v668_v27  ;;  %v2410_v3 = vpack.c.bf16 %v921_v22, %v920_v61  ;;  %v536_v9 = vmul.f32 %v3179_v19, %v2120_v45 }
  0x9e   : > { %v923_v11 = vmax.f32 %v667_v49, %v795_v58  ;;  %v670_v62 = vadd.f32 %v3194_v10, %v535_v50  ;;  %v2124_v25 = vunpack.c.h.bf16 %v3417_v41  ;;  %v537_v46 = vmul.f32 %v3179_v19, %v2123_v54 }
  0x9f   : > { %v797_v59 = vmul.f32 0.2, %v669_v2  ;;  %v924_v52 = vmax.f32 %v668_v27, %v796_v37  ;;  %2605 = vst [vmem:[%s2778_s25 + $0x170] sm:$0xff] %v2410_v3   ;;  %v671_v18 = vadd.f32 %v3194_v10, %v536_v9  ;;  %v2127_v42 = vunpack.c.l.bf16 %v3418_v31  ;;  %v3422_v3 = vld [vmem:[#allocation12_spill] sm:$0xff] }
  0xa0   : > { %v2415_v34 = vpack.c.bf16 %v923_v11, %v922_v30  ;;  %v798_v7 = vmul.f32 0.2, %v670_v62  ;;  %v538_v28 = vmul.f32 %v3179_v19, %v2124_v25  ;;  %v672_v8 = vadd.f32 %v3194_v10, %v537_v46 }
  0xa1   : > { %v925_v38 = vmax.f32 %v669_v2, %v797_v59  ;;  %v2128_v12 = vunpack.c.h.bf16 %v3418_v31  ;;  %v799_v47 = vmul.f32 0.2, %v671_v18  ;;  %v539_v57 = vmul.f32 %v3179_v19, %v2127_v42 }
  0xa2   : > { %2606 = vst [vmem:[%s2778_s25 + $0x178] sm:$0xff] %v2415_v34   ;;  %v926_v53 = vmax.f32 %v670_v62, %v798_v7  ;;  %v2131_v14 = vunpack.c.l.bf16 %v3419_v23  ;;  %v673_v15 = vadd.f32 %v3194_v10, %v538_v28  ;;  %v800_v43 = vmul.f32 0.2, %v672_v8 }
  0xa3   : > { %v2420_v35 = vpack.c.bf16 %v925_v38, %v924_v52  ;;  %v540_v21 = vmul.f32 %v3179_v19, %v2128_v12  ;;  %v927_v39 = vmax.f32 %v671_v18, %v799_v47  ;;  %v674_v17 = vadd.f32 %v3194_v10, %v539_v57  ;;  %v3423_v18 = vld [vmem:[#allocation13_spill] sm:$0xff] }
  0xa4   : > { %v2132_v1 = vunpack.c.h.bf16 %v3419_v23  ;;  %v541_v32 = vmul.f32 %v3179_v19, %v2131_v14  ;;  %v801_v55 = vmul.f32 0.2, %v673_v15  ;;  %v928_v48 = vmax.f32 %v672_v8, %v800_v43 }
  0xa5   : > { %2607 = vst [vmem:[%s2778_s25 + $0x180] sm:$0xff] %v2420_v35   ;;  %v675_v26 = vadd.f32 %v3194_v10, %v540_v21  ;;  %v2135_v29 = vunpack.c.l.bf16 %v3420_v16  ;;  %v2425_v51 = vpack.c.bf16 %v927_v39, %v926_v53  ;;  %v802_v5 = vmul.f32 0.2, %v674_v17  ;;  %v3424_v35 = vld [vmem:[#allocation14_spill] sm:$0xff] }
  0xa6   : > { %v542_v44 = vmul.f32 %v3179_v19, %v2132_v1  ;;  %v676_v36 = vadd.f32 %v3194_v10, %v541_v32  ;;  %v929_v60 = vmax.f32 %v673_v15, %v801_v55  ;;  %v2136_v56 = vunpack.c.h.bf16 %v3420_v16 }
  0xa7   : > { %v803_v40 = vmul.f32 0.2, %v675_v26  ;;  %v543_v61 = vmul.f32 %v3179_v19, %v2135_v29  ;;  %2608 = vst [vmem:[%s2778_s25 + $0x188] sm:$0xff] %v2425_v51   ;;  %v930_v49 = vmax.f32 %v674_v17, %v802_v5  ;;  %v2139_v33 = vunpack.c.l.bf16 %v3421_v20  ;;  %v3425_v51 = vld [vmem:[#allocation15_spill] sm:$0xff] }
  0xa8   : > { %v677_v24 = vadd.f32 %v3194_v10, %v542_v44  ;;  %v804_v6 = vmul.f32 0.2, %v676_v36  ;;  %v2430_v0 = vpack.c.bf16 %v929_v60, %v928_v48  ;;  %v544_v22 = vmul.f32 %v3179_v19, %v2136_v56 }
  0xa9   : > { %v931_v27 = vmax.f32 %v675_v26, %v803_v40  ;;  %v678_v58 = vadd.f32 %v3194_v10, %v543_v61  ;;  %v2140_v30 = vunpack.c.h.bf16 %v3421_v20  ;;  %v545_v2 = vmul.f32 %v3179_v19, %v2139_v33 }
  0xaa   : > { %v805_v45 = vmul.f32 0.2, %v677_v24  ;;  %v932_v50 = vmax.f32 %v676_v36, %v804_v6  ;;  %2609 = vst [vmem:[%s2778_s25 + $0x190] sm:$0xff] %v2430_v0   ;;  %v679_v41 = vadd.f32 %v3194_v10, %v544_v22  ;;  %v2143_v11 = vunpack.c.l.bf16 %v3422_v3  ;;  %v3426_v0 = vld [vmem:[#allocation16_spill] sm:$0xff] }
  0xab   : > { %v2435_v37 = vpack.c.bf16 %v931_v27, %v930_v49  ;;  %v806_v54 = vmul.f32 0.2, %v678_v58  ;;  %v546_v62 = vmul.f32 %v3179_v19, %v2140_v30  ;;  %v680_v59 = vadd.f32 %v3194_v10, %v545_v2 }
  0xac   : > { %v933_v9 = vmax.f32 %v677_v24, %v805_v45  ;;  %v2144_v52 = vunpack.c.h.bf16 %v3422_v3  ;;  %v807_v25 = vmul.f32 0.2, %v679_v41  ;;  %v547_v34 = vmul.f32 %v3179_v19, %v2143_v11 }
  0xad   : > { %2610 = vst [vmem:[%s2778_s25 + $0x198] sm:$0xff] %v2435_v37   ;;  %v934_v46 = vmax.f32 %v678_v58, %v806_v54  ;;  %v2147_v7 = vunpack.c.l.bf16 %v3423_v18  ;;  %v681_v42 = vadd.f32 %v3194_v10, %v546_v62  ;;  %v808_v38 = vmul.f32 0.2, %v680_v59 }
  0xae   : > { %v2440_v31 = vpack.c.bf16 %v933_v9, %v932_v50  ;;  %v548_v28 = vmul.f32 %v3179_v19, %v2144_v52  ;;  %v935_v8 = vmax.f32 %v679_v41, %v807_v25  ;;  %v682_v12 = vadd.f32 %v3194_v10, %v547_v34  ;;  %v3427_v41 = vld [vmem:[#allocation17_spill] sm:$0xff] }
  0xaf   : > { %v2148_v47 = vunpack.c.h.bf16 %v3423_v18  ;;  %v549_v53 = vmul.f32 %v3179_v19, %v2147_v7  ;;  %v809_v57 = vmul.f32 0.2, %v681_v42  ;;  %v936_v23 = vmax.f32 %v680_v59, %v808_v38 }
  0xb0   : > { %2611 = vst [vmem:[%s2778_s25 + $0x1a0] sm:$0xff] %v2440_v31   ;;  %v683_v14 = vadd.f32 %v3194_v10, %v548_v28  ;;  %v2151_v15 = vunpack.c.l.bf16 %v3424_v35  ;;  %v2445_v43 = vpack.c.bf16 %v935_v8, %v934_v46  ;;  %v810_v21 = vmul.f32 0.2, %v682_v12 }
  0xb1   : > { %v550_v39 = vmul.f32 %v3179_v19, %v2148_v47  ;;  %v684_v17 = vadd.f32 %v3194_v10, %v549_v53  ;;  %v937_v1 = vmax.f32 %v681_v42, %v809_v57  ;;  %v2152_v55 = vunpack.c.h.bf16 %v3424_v35 }
  0xb2   : > { %v811_v32 = vmul.f32 0.2, %v683_v14  ;;  %v551_v48 = vmul.f32 %v3179_v19, %v2151_v15  ;;  %2612 = vst [vmem:[%s2778_s25 + $0x1a8] sm:$0xff] %v2445_v43   ;;  %v938_v26 = vmax.f32 %v682_v12, %v810_v21  ;;  %v2155_v5 = vunpack.c.l.bf16 %v3425_v51 }
  0xb3   : > { %v685_v16 = vadd.f32 %v3194_v10, %v550_v39  ;;  %v812_v29 = vmul.f32 0.2, %v684_v17  ;;  %v2450_v44 = vpack.c.bf16 %v937_v1, %v936_v23  ;;  %v552_v60 = vmul.f32 %v3179_v19, %v2152_v55 }
  0xb4   : > { %v939_v36 = vmax.f32 %v683_v14, %v811_v32  ;;  %v686_v40 = vadd.f32 %v3194_v10, %v551_v48  ;;  %v2156_v49 = vunpack.c.h.bf16 %v3425_v51  ;;  %v553_v24 = vmul.f32 %v3179_v19, %v2155_v5 }
  0xb5   : > { %v813_v56 = vmul.f32 0.2, %v685_v16  ;;  %v940_v61 = vmax.f32 %v684_v17, %v812_v29  ;;  %2613 = vst [vmem:[%s2778_s25 + $0x1b0] sm:$0xff] %v2450_v44   ;;  %v687_v20 = vadd.f32 %v3194_v10, %v552_v60  ;;  %v2159_v27 = vunpack.c.l.bf16 %v3426_v0 }
  0xb6   : > { %v2455_v6 = vpack.c.bf16 %v939_v36, %v938_v26  ;;  %v814_v33 = vmul.f32 0.2, %v686_v40  ;;  %v554_v58 = vmul.f32 %v3179_v19, %v2156_v49  ;;  %v688_v45 = vadd.f32 %v3194_v10, %v553_v24 }
  0xb7   : > { %v941_v22 = vmax.f32 %v685_v16, %v813_v56  ;;  %v2160_v50 = vunpack.c.h.bf16 %v3426_v0  ;;  %v815_v30 = vmul.f32 0.2, %v687_v20  ;;  %v555_v37 = vmul.f32 %v3179_v19, %v2159_v27 }
  0xb8   : > { %2614 = vst [vmem:[%s2778_s25 + $0x1b8] sm:$0xff] %v2455_v6   ;;  %v942_v2 = vmax.f32 %v686_v40, %v814_v33  ;;  %v2163_v54 = vunpack.c.l.bf16 %v3427_v41  ;;  %v689_v11 = vadd.f32 %v3194_v10, %v554_v58  ;;  %v816_v9 = vmul.f32 0.2, %v688_v45 }
  0xb9   : > { %v2460_v3 = vpack.c.bf16 %v941_v22, %v940_v61  ;;  %v556_v62 = vmul.f32 %v3179_v19, %v2160_v50  ;;  %v943_v59 = vmax.f32 %v687_v20, %v815_v30  ;;  %v690_v52 = vadd.f32 %v3194_v10, %v555_v37 }
  0xba   : > { %v2164_v25 = vunpack.c.h.bf16 %v3427_v41  ;;  %v557_v46 = vmul.f32 %v3179_v19, %v2163_v54  ;;  %v817_v34 = vmul.f32 0.2, %v689_v11  ;;  %v944_v18 = vmax.f32 %v688_v45, %v816_v9 }
  0xbb   : > { %2615 = vst [vmem:[%s2778_s25 + $0x1c0] sm:$0xff] %v2460_v3   ;;  %v691_v7 = vadd.f32 %v3194_v10, %v556_v62  ;;  %v2167_v31 = vunpack.c.l.bf16 %v2946_v4  ;;  %v2465_v42 = vpack.c.bf16 %v943_v59, %v942_v2  ;;  %v818_v38 = vmul.f32 0.2, %v690_v52 }
  0xbc   : > { %v558_v28 = vmul.f32 %v3179_v19, %v2164_v25  ;;  %v692_v8 = vadd.f32 %v3194_v10, %v557_v46  ;;  %v945_v12 = vmax.f32 %v689_v11, %v817_v34  ;;  %v2168_v53 = vunpack.c.h.bf16 %v2946_v4 }
  0xbd   : > { %v819_v47 = vmul.f32 0.2, %v691_v7  ;;  %v559_v57 = vmul.f32 %v3179_v19, %v2167_v31  ;;  %2616 = vst [vmem:[%s2778_s25 + $0x1c8] sm:$0xff] %v2465_v42   ;;  %v946_v23 = vmax.f32 %v690_v52, %v818_v38  ;;  %v2171_v15 = vunpack.c.l.bf16 %v2949_v13 }
  0xbe   : > { %v693_v14 = vadd.f32 %v3194_v10, %v558_v28  ;;  %v820_v35 = vmul.f32 0.2, %v692_v8  ;;  %v2470_v43 = vpack.c.bf16 %v945_v12, %v944_v18  ;;  %v560_v39 = vmul.f32 %v3179_v19, %v2168_v53 }
  0xbf   : > { %v947_v21 = vmax.f32 %v691_v7, %v819_v47  ;;  %v694_v17 = vadd.f32 %v3194_v10, %v559_v57  ;;  %v2172_v4 = vunpack.c.h.bf16 %v2949_v13  ;;  %v561_v55 = vmul.f32 %v3179_v19, %v2171_v15 }
  0xc0   : > { %v821_v1 = vmul.f32 0.2, %v693_v14  ;;  %v948_v32 = vmax.f32 %v692_v8, %v820_v35  ;;  %2617 = vst [vmem:[%s2778_s25 + $0x1d0] sm:$0xff] %v2470_v43   ;;  %v695_v26 = vadd.f32 %v3194_v10, %v560_v39  ;;  %v2175_v29 = vunpack.c.l.bf16 %v2952_v63 }
  0xc1   : > { %v2475_v48 = vpack.c.bf16 %v947_v21, %v946_v23  ;;  %v822_v16 = vmul.f32 0.2, %v694_v17  ;;  %v562_v5 = vmul.f32 %v3179_v19, %v2172_v4  ;;  %v696_v44 = vadd.f32 %v3194_v10, %v561_v55 }
  0xc2   : > { %v949_v51 = vmax.f32 %v693_v14, %v821_v1  ;;  %v2176_v36 = vunpack.c.h.bf16 %v2952_v63  ;;  %v823_v60 = vmul.f32 0.2, %v695_v26  ;;  %v563_v40 = vmul.f32 %v3179_v19, %v2175_v29 }
  0xc3   : > { %2618 = vst [vmem:[%s2778_s25 + $0x1d8] sm:$0xff] %v2475_v48   ;;  %v950_v13 = vmax.f32 %v694_v17, %v822_v16  ;;  %v697_v61 = vadd.f32 %v3194_v10, %v562_v5  ;;  %v824_v49 = vmul.f32 0.2, %v696_v44 }
  0xc4   : > { %v2480_v56 = vpack.c.bf16 %v949_v51, %v948_v32  ;;  %v564_v24 = vmul.f32 %v3179_v19, %v2176_v36  ;;  %v951_v6 = vmax.f32 %v695_v26, %v823_v60  ;;  %v698_v20 = vadd.f32 %v3194_v10, %v563_v40 }
  0xc5   : > { %v825_v33 = vmul.f32 0.2, %v697_v61  ;;  %v952_v63 = vmax.f32 %v696_v44, %v824_v49 }
  0xc6   : > { %2619 = vst [vmem:[%s2778_s25 + $0x1e0] sm:$0xff] %v2480_v56   ;;  %v699_v0 = vadd.f32 %v3194_v10, %v564_v24  ;;  %v2485_v27 = vpack.c.bf16 %v951_v6, %v950_v13  ;;  %v826_v22 = vmul.f32 0.2, %v698_v20 }
  0xc7   : > { %v953_v58 = vmax.f32 %v697_v61, %v825_v33 }
  0xc8   : > { %v827_v45 = vmul.f32 0.2, %v699_v0  ;;  %2620 = vst [vmem:[%s2778_s25 + $0x1e8] sm:$0xff] %v2485_v27   ;;  %v954_v50 = vmax.f32 %v698_v20, %v826_v22 }
  0xc9   : > { %v2490_v30 = vpack.c.bf16 %v953_v58, %v952_v63 }
  0xca   : > { %v955_v2 = vmax.f32 %v699_v0, %v827_v45 }
  0xcb   : > { %2621 = vst [vmem:[%s2778_s25 + $0x1f0] sm:$0xff] %v2490_v30  }
  0xcc   : > { %v2495_v37 = vpack.c.bf16 %v955_v2, %v954_v50 }
  0xce   : > { %2622 = vst [vmem:[%s2778_s25 + $0x1f8] sm:$0xff] %v2495_v37  }
  0xcf PF: > { %s13_s12 = sadd.s32 1, %s2639_s12  }
  0xd0   : > { %p10_p4 = scmp.ge.s32.totalorder %s13_s12, 4  }
  0xd2   :  { %12 = sbr.rel (!%p10_p4) target bundleno = 1 (0x1), region = 62 }

// kernel: discriminator_forward.9
= control target key start
LH: loop header
LB: loop body
LE: loop exit
PB: predicated region body
PF: predicated region fallthrough
CT: control target
= control target key end

     0   :  { %s3614_s12 = smov 0   ;;  %s4235_s0 = inlined_call_operand.vmem [shape: bf16[2048,48], index: 0, kind: input, shape index: {}]   ;;  %s4236_s1 = inlined_call_operand.vmem [shape: bf16[48,128], index: 1, kind: input, shape index: {}]   ;;  %s4237_s2 = inlined_call_operand.vmem [shape: bf16[2048,128], index: 2, kind: output, shape index: {0}]   ;;  %s4238_s3 = inlined_call_operand.vmem [shape: f32[16,128], index: 3, kind: output, shape index: {1}]  }
   0x1 LB: > { %s3620_s13 = sadd.s32 4294967295, %s3592_s12   ;;  %p2526_p0 = scmp.ge.s32.totalorder %s3592_s12, 1  ;;  %s3592_s12 = sphi %s3614_s12, %s14_s12  }
   0x2   : > { %p141_p1 = scmp.lt.s32.totalorder %s3592_s12, 3 }
   0x4   : > { %p142_p2 = pnand %p2526_p0, %p141_p1 }
   0x6   : > { %145 = sbr.rel (%p142_p2) target bundleno = 494 (0x1ee), region = 28 }
   0xb   : > { %v3519_v0 = vld [vmem:[%s4236_s1 + $0x10] sm:$0xff]   ;;  %s2527_s16 = sshll.u32 %s3620_s13, 7  ;;  %v3520_v1 = vld [vmem:[%s4236_s1 + $0x8] sm:$0xff]   ;;  %v3521_v2 = vld [vmem:[%s4236_s1] sm:$0xff]   ;;  %vm658_vm0 = vcmask 392192   ;;  %p181_p4 = scmp.lt.s32.totalorder %s3620_s13, 1 }
   0xc   : > { %p170_p3 = scmp.lt.s32.totalorder %s2527_s16, 255  ;;  %3371 = vmatprep.subr.bf16.mxu0 %v3519_v0  ;;  %3505 = vmatprep.subr.bf16.mxu1 %v3519_v0  ;;  %vm2430_vm1 = vcmask 1040384   ;;  %vm2432_vm2 = vcmask 1041408  }
   0xd   : > { %3372 = vmatpush3.bf16.msra.mxu0 %v3519_v0  ;;  %3508 = vmatpush3.bf16.msra.mxu1 %v3519_v0  ;;  %s4270_s13 = smov (!%p181_p4, %s3620_s13), 1 }
   0xe   : > { %s4268_s16 = smov (!%p170_p3, %s2527_s16), 255  ;;  %3373 = vmatprep.subr.bf16.mxu0 %v3520_v1  ;;  %3506 = vmatprep.subr.bf16.mxu1 %v3520_v1  ;;  %s2531_s28 = sshll.u32 %s4270_s13, 3 }
   0xf   : > { %s2528_s21 = sshll.u32 %s4268_s16, 2  ;;  %s184_s4 = scalar_lea.vmem %s4238_s3, %s2531_s28 }
  0x10   : > { %s3642_s24 = scalar_lea.vmem %s4235_s0, %s2528_s21  ;;  %s3777_s27 = scalar_lea.vmem %s4237_s2, %s2528_s21 }
  0x11   : > { %3374 = vmatpush3.bf16.msra.mxu0 %v3520_v1  ;;  %v3522_v3 = vld [vmem:[%s3642_s24] sm:$0xff]   ;;  %3509 = vmatpush3.bf16.msra.mxu1 %v3520_v1  ;;  %v3523_v4 = vld [vmem:[%s3642_s24 + $0x8] sm:$0xff]   ;;  %v3524_v5 = vld [vmem:[%s3642_s24 + $0x10] sm:$0xff]  }
  0x12   : > { %3375 = vmatprep.subr.bf16.mxu0 %v3521_v2  ;;  %3507 = vmatprep.subr.bf16.mxu1 %v3521_v2  ;;  %v3525_v6 = vld [vmem:[%s3642_s24 + $0x18] sm:$0xff]   ;;  %v3526_v7 = vld [vmem:[%s3642_s24 + $0x20] sm:$0xff]   ;;  %v3527_v8 = vld [vmem:[%s3642_s24 + $0x28] sm:$0xff]  }
  0x13   : > { %3377 = vmatprep.mubr.msk.bf16.mxu0 %vm658_vm0, %v3522_v3  ;;  %v3528_v9 = vld [vmem:[%s3642_s24 + $0x30] sm:$0xff]   ;;  %v3529_v10 = vld [vmem:[%s3642_s24 + $0x38] sm:$0xff]   ;;  %v3530_v11 = vld [vmem:[%s3642_s24 + $0x40] sm:$0xff]  }
  0x14   : > { %v3554_v12 = vld [vmem:[%s3642_s24 + $0x100] sm:$0xff]   ;;  %v3555_v13 = vld [vmem:[%s3642_s24 + $0x108] sm:$0xff]   ;;  %v3556_v14 = vld [vmem:[%s3642_s24 + $0x110] sm:$0xff]  }
  0x15   : > { %3376 = vmatpush3.bf16.msra.mxu0 %v3521_v2  ;;  %3510 = vmatpush3.bf16.msra.mxu1 %v3521_v2  ;;  %v3531_v15 = vld [vmem:[%s3642_s24 + $0x48] sm:$0xff]   ;;  %v3532_v16 = vld [vmem:[%s3642_s24 + $0x50] sm:$0xff]   ;;  %v3557_v17 = vld [vmem:[%s3642_s24 + $0x118] sm:$0xff]  }
  0x16   : > { %3441 = vmatprep.mubr.msk.bf16.mxu1 %vm658_vm0, %v3554_v12  ;;  %v3558_v18 = vld [vmem:[%s3642_s24 + $0x120] sm:$0xff]   ;;  %v3533_v19 = vld [vmem:[%s3642_s24 + $0x58] sm:$0xff]   ;;  %v3559_v21 = vld [vmem:[%s3642_s24 + $0x128] sm:$0xff]  }
  0x17   : > { %v3534_v20 = vld [vmem:[%s3642_s24 + $0x60] sm:$0xff]   ;;  %v3560_v22 = vld [vmem:[%s3642_s24 + $0x130] sm:$0xff]   ;;  %v3535_v23 = vld [vmem:[%s3642_s24 + $0x68] sm:$0xff]  }
  0x18   : > { %3378 = vmatmul.mubr.msk.bf16.vlgmr.msra.gmra.mxu0 %vm658_vm0, %v3523_v4  ;;  %3442 = vmatmul.mubr.msk.bf16.vlgmr.msra.gmra.mxu1 %vm658_vm0, %v3555_v13  ;;  %v3536_v24 = vld [vmem:[%s3642_s24 + $0x70] sm:$0xff]   ;;  %v3561_v25 = vld [vmem:[%s3642_s24 + $0x138] sm:$0xff]   ;;  %v3562_v26 = vld [vmem:[%s3642_s24 + $0x140] sm:$0xff]  }
  0x19   : > { %3381 = vmatprep.mubr.msk.bf16.mxu0 %vm658_vm0, %v3524_v5  ;;  %3445 = vmatprep.mubr.msk.bf16.mxu1 %vm658_vm0, %v3556_v14  ;;  %v3537_v27 = vld [vmem:[%s3642_s24 + $0x78] sm:$0xff]   ;;  %v3538_v28 = vld [vmem:[%s3642_s24 + $0x80] sm:$0xff]   ;;  %v3563_v29 = vld [vmem:[%s3642_s24 + $0x148] sm:$0xff]  }
  0x1a   : > { %v3564_v30 = vld [vmem:[%s3642_s24 + $0x150] sm:$0xff]   ;;  %v3539_v31 = vld [vmem:[%s3642_s24 + $0x88] sm:$0xff]   ;;  %v3565_v33 = vld [vmem:[%s3642_s24 + $0x158] sm:$0xff]  }
  0x1b   : > { %v3540_v32 = vld [vmem:[%s3642_s24 + $0x90] sm:$0xff]   ;;  %v3566_v34 = vld [vmem:[%s3642_s24 + $0x160] sm:$0xff]   ;;  %v3541_v35 = vld [vmem:[%s3642_s24 + $0x98] sm:$0xff]  }
  0x1c   : > { %v3542_v36 = vld [vmem:[%s3642_s24 + $0xa0] sm:$0xff]   ;;  %v3567_v37 = vld [vmem:[%s3642_s24 + $0x168] sm:$0xff]   ;;  %v3568_v38 = vld [vmem:[%s3642_s24 + $0x170] sm:$0xff]  }
  0x1d   : > { %v3543_v39 = vld [vmem:[%s3642_s24 + $0xa8] sm:$0xff]   ;;  %v3544_v40 = vld [vmem:[%s3642_s24 + $0xb0] sm:$0xff]   ;;  %v3569_v41 = vld [vmem:[%s3642_s24 + $0x178] sm:$0xff]  }
  0x1e   : > { %v3570_v42 = vld [vmem:[%s3642_s24 + $0x180] sm:$0xff]   ;;  %v3545_v43 = vld [vmem:[%s3642_s24 + $0xb8] sm:$0xff]   ;;  %v3571_v45 = vld [vmem:[%s3642_s24 + $0x188] sm:$0xff]  }
  0x1f   : > { %v3546_v44 = vld [vmem:[%s3642_s24 + $0xc0] sm:$0xff]   ;;  %v3572_v46 = vld [vmem:[%s3642_s24 + $0x190] sm:$0xff]   ;;  %v3547_v47 = vld [vmem:[%s3642_s24 + $0xc8] sm:$0xff]  }
  0x20   : > { %3382 = vmatmul.mubr.msk.bf16.gmra.mxu0 %vm658_vm0, %v3525_v6  ;;  %3446 = vmatmul.mubr.msk.bf16.gmra.mxu1 %vm658_vm0, %v3557_v17  ;;  %v3548_v48 = vld [vmem:[%s3642_s24 + $0xd0] sm:$0xff]   ;;  %v3573_v49 = vld [vmem:[%s3642_s24 + $0x198] sm:$0xff]   ;;  %v3574_v50 = vld [vmem:[%s3642_s24 + $0x1a0] sm:$0xff]  }
  0x21   : > { %3385 = vmatprep.mubr.msk.bf16.mxu0 %vm658_vm0, %v3526_v7  ;;  %3449 = vmatprep.mubr.msk.bf16.mxu1 %vm658_vm0, %v3558_v18  ;;  %v3549_v51 = vld [vmem:[%s3642_s24 + $0xd8] sm:$0xff]   ;;  %v3550_v52 = vld [vmem:[%s3642_s24 + $0xe0] sm:$0xff]   ;;  %v3575_v53 = vld [vmem:[%s3642_s24 + $0x1a8] sm:$0xff]  }
  0x22   : > { %v3576_v54 = vld [vmem:[%s3642_s24 + $0x1b0] sm:$0xff]   ;;  %v3551_v55 = vld [vmem:[%s3642_s24 + $0xe8] sm:$0xff]   ;;  %v3577_v57 = vld [vmem:[%s3642_s24 + $0x1b8] sm:$0xff]  }
  0x23   : > { %v3552_v56 = vld [vmem:[%s3642_s24 + $0xf0] sm:$0xff]   ;;  %v3578_v58 = vld [vmem:[%s3642_s24 + $0x1c0] sm:$0xff]   ;;  %v3553_v59 = vld [vmem:[%s3642_s24 + $0xf8] sm:$0xff]  }
  0x24   : > { %v3579_v60 = vld [vmem:[%s3642_s24 + $0x1c8] sm:$0xff]   ;;  %v3580_v61 = vld [vmem:[%s3642_s24 + $0x1d0] sm:$0xff]   ;;  %v3581_v62 = vld [vmem:[%s3642_s24 + $0x1d8] sm:$0xff]  }
  0x25   : > { %v3582_v63 = vld [vmem:[%s3642_s24 + $0x1e0] sm:$0xff]   ;;  %v3583_v0 = vld [vmem:[%s3642_s24 + $0x1e8] sm:$0xff]   ;;  %v3584_v1 = vld [vmem:[%s3642_s24 + $0x1f0] sm:$0xff]  }
  0x26   : > { %v3585_v2 = vld [vmem:[%s3642_s24 + $0x1f8] sm:$0xff]  }
  0x28   : > { %3386 = vmatmul.mubr.msk.bf16.gmra.mxu0 %vm658_vm0, %v3527_v8  ;;  %3450 = vmatmul.mubr.msk.bf16.gmra.mxu1 %vm658_vm0, %v3559_v21 }
  0x29   : > { %3389 = vmatprep.mubr.msk.bf16.mxu0 %vm658_vm0, %v3528_v9  ;;  %3453 = vmatprep.mubr.msk.bf16.mxu1 %vm658_vm0, %v3560_v22 }
  0x30   : > { %3390 = vmatmul.mubr.msk.bf16.gmra.mxu0 %vm658_vm0, %v3529_v10  ;;  %3454 = vmatmul.mubr.msk.bf16.gmra.mxu1 %vm658_vm0, %v3561_v25 }
  0x31   : > { %3393 = vmatprep.mubr.msk.bf16.mxu0 %vm658_vm0, %v3530_v11  ;;  %3457 = vmatprep.mubr.msk.bf16.mxu1 %vm658_vm0, %v3562_v26 }
  0x38   : > { %3394 = vmatmul.mubr.msk.bf16.gmra.mxu0 %vm658_vm0, %v3531_v15  ;;  %3458 = vmatmul.mubr.msk.bf16.gmra.mxu1 %vm658_vm0, %v3563_v29 }
  0x39   : > { %3397 = vmatprep.mubr.msk.bf16.mxu0 %vm658_vm0, %v3532_v16  ;;  %3461 = vmatprep.mubr.msk.bf16.mxu1 %vm658_vm0, %v3564_v30 }
  0x40   : > { %3398 = vmatmul.mubr.msk.bf16.gmra.mxu0 %vm658_vm0, %v3533_v19  ;;  %3462 = vmatmul.mubr.msk.bf16.gmra.mxu1 %vm658_vm0, %v3565_v33 }
  0x41   : > { %3401 = vmatprep.mubr.msk.bf16.mxu0 %vm658_vm0, %v3534_v20  ;;  %3465 = vmatprep.mubr.msk.bf16.mxu1 %vm658_vm0, %v3566_v34 }
  0x48   : > { %3402 = vmatmul.mubr.msk.bf16.gmra.mxu0 %vm658_vm0, %v3535_v23  ;;  %3466 = vmatmul.mubr.msk.bf16.gmra.mxu1 %vm658_vm0, %v3567_v37 }
  0x49   : > { %3405 = vmatprep.mubr.msk.bf16.mxu0 %vm658_vm0, %v3536_v24  ;;  %3469 = vmatprep.mubr.msk.bf16.mxu1 %vm658_vm0, %v3568_v38 }
  0x50   : > { %3406 = vmatmul.mubr.msk.bf16.gmra.mxu0 %vm658_vm0, %v3537_v27  ;;  %3470 = vmatmul.mubr.msk.bf16.gmra.mxu1 %vm658_vm0, %v3569_v41 }
  0x51   : > { %3409 = vmatprep.mubr.msk.bf16.mxu0 %vm658_vm0, %v3538_v28  ;;  %3473 = vmatprep.mubr.msk.bf16.mxu1 %vm658_vm0, %v3570_v42 }
  0x58   : > { %3410 = vmatmul.mubr.msk.bf16.gmra.mxu0 %vm658_vm0, %v3539_v31  ;;  %3474 = vmatmul.mubr.msk.bf16.gmra.mxu1 %vm658_vm0, %v3571_v45 }
  0x59   : > { %3413 = vmatprep.mubr.msk.bf16.mxu0 %vm658_vm0, %v3540_v32  ;;  %3477 = vmatprep.mubr.msk.bf16.mxu1 %vm658_vm0, %v3572_v46 }
  0x60   : > { %3414 = vmatmul.mubr.msk.bf16.gmra.mxu0 %vm658_vm0, %v3541_v35  ;;  %3478 = vmatmul.mubr.msk.bf16.gmra.mxu1 %vm658_vm0, %v3573_v49 }
  0x61   : > { %3417 = vmatprep.mubr.msk.bf16.mxu0 %vm658_vm0, %v3542_v36  ;;  %3481 = vmatprep.mubr.msk.bf16.mxu1 %vm658_vm0, %v3574_v50 }
  0x68   : > { %3418 = vmatmul.mubr.msk.bf16.gmra.mxu0 %vm658_vm0, %v3543_v39  ;;  %3482 = vmatmul.mubr.msk.bf16.gmra.mxu1 %vm658_vm0, %v3575_v53 }
  0x69   : > { %3421 = vmatprep.mubr.msk.bf16.mxu0 %vm658_vm0, %v3544_v40  ;;  %3485 = vmatprep.mubr.msk.bf16.mxu1 %vm658_vm0, %v3576_v54 }
  0x70   : > { %3422 = vmatmul.mubr.msk.bf16.gmra.mxu0 %vm658_vm0, %v3545_v43  ;;  %3486 = vmatmul.mubr.msk.bf16.gmra.mxu1 %vm658_vm0, %v3577_v57 }
  0x71   : > { %3425 = vmatprep.mubr.msk.bf16.mxu0 %vm658_vm0, %v3546_v44  ;;  %3489 = vmatprep.mubr.msk.bf16.mxu1 %vm658_vm0, %v3578_v58 }
  0x78   : > { %3426 = vmatmul.mubr.msk.bf16.gmra.mxu0 %vm658_vm0, %v3547_v47  ;;  %3490 = vmatmul.mubr.msk.bf16.gmra.mxu1 %vm658_vm0, %v3579_v60 }
  0x79   : > { %3429 = vmatprep.mubr.msk.bf16.mxu0 %vm658_vm0, %v3548_v48  ;;  %3493 = vmatprep.mubr.msk.bf16.mxu1 %vm658_vm0, %v3580_v61 }
  0x80   : > { %3430 = vmatmul.mubr.msk.bf16.gmra.mxu0 %vm658_vm0, %v3549_v51  ;;  %3494 = vmatmul.mubr.msk.bf16.gmra.mxu1 %vm658_vm0, %v3581_v62 }
  0x81   : > { %3433 = vmatprep.mubr.msk.bf16.mxu0 %vm658_vm0, %v3550_v52  ;;  %3497 = vmatprep.mubr.msk.bf16.mxu1 %vm658_vm0, %v3582_v63 }
  0x88   : > { %3434 = vmatmul.mubr.msk.bf16.gmra.mxu0 %vm658_vm0, %v3551_v55  ;;  %3498 = vmatmul.mubr.msk.bf16.gmra.mxu1 %vm658_vm0, %v3583_v0 }
  0x89   : > { %3437 = vmatprep.mubr.msk.bf16.mxu0 %vm658_vm0, %v3552_v56  ;;  %3501 = vmatprep.mubr.msk.bf16.mxu1 %vm658_vm0, %v3584_v1 }
  0x90   : > { %3438 = vmatmul.mubr.msk.bf16.gmra.mxu0 %vm658_vm0, %v3553_v59  ;;  %3502 = vmatmul.mubr.msk.bf16.gmra.mxu1 %vm658_vm0, %v3585_v2 }
  0xd8   : > { %v3379_v3 = vpop.f32.mrf.mxu0  ;;  %v3785_v57 = vpop.f32.mrf.mxu1 }
  0xd9   : > { %v2171_v13 = vmul.f32 %v3379_v3, %v3379_v3 }
  0xda   : > { %v885_v4 = vpop.f32.mrf.mxu0  ;;  %v3787_v63 = vpop.f32.mrf.mxu1 }
  0xdb   : > { %v2169_v8 = vmul.f32 %v885_v4, %v885_v4 }
  0xdc   : > { %v3380_v5 = vpop.f32.mrf.mxu0 }
  0xdd   : > { %v2929_v6 = vpack.c.bf16 %v3380_v5, %v3379_v3  ;;  %v2172_v17 = vmul.f32 %v3380_v5, %v3380_v5 }
  0xde   : > { %v888_v7 = vpop.f32.mrf.mxu0 }
  0xdf   : > { %3241 = vst [vmem:[%s3777_s27 + $0x8] sm:$0xff] %v2929_v6   ;;  %v2924_v9 = vpack.c.bf16 %v888_v7, %v885_v4  ;;  %v2036_v10 = vadd.f32 %v888_v7, %v885_v4  ;;  %v2170_v11 = vmul.f32 %v888_v7, %v888_v7 }
  0xe0   : > { %v3383_v12 = vpop.f32.mrf.mxu0 }
  0xe1   : > { %2925 = vst [vmem:[%s3777_s27] sm:$0xff] %v2924_v9   ;;  %v2037_v14 = vadd.f32 %v3379_v3, %v2036_v10  ;;  %v2297_v15 = vadd.f32 %v2170_v11, %v2169_v8  ;;  %v2175_v31 = vmul.f32 %v3383_v12, %v3383_v12 }
  0xe2   : > { %v901_v16 = vpop.f32.mrf.mxu0 }
  0xe3   : > { %v2298_v18 = vadd.f32 %v2297_v15, %v2171_v13  ;;  %v2038_v19 = vadd.f32 %v3380_v5, %v2037_v14  ;;  %v2173_v22 = vmul.f32 %v901_v16, %v901_v16  ;;  %v3790_v5 = vpop.f32.mrf.mxu1 }
  0xe4   : > { %v3384_v20 = vpop.f32.mrf.mxu0  ;;  %v3089_v9 = vpack.c.bf16 %v3790_v5, %v3785_v57 }
  0xe5   : > { %v2039_v21 = vadd.f32 %v2038_v19, %v901_v16  ;;  %v2299_v23 = vadd.f32 %v2298_v18, %v2172_v17  ;;  %v2939_v24 = vpack.c.bf16 %v3384_v20, %v3383_v12  ;;  %v2176_v35 = vmul.f32 %v3384_v20, %v3384_v20  ;;  %v3795_v11 = vpop.f32.mrf.mxu1 }
  0xe6   : > { %v904_v25 = vpop.f32.mrf.mxu0  ;;  %3273 = vst [vmem:[%s3777_s27 + $0x108] sm:$0xff] %v3089_v9   ;;  %v3084_v15 = vpack.c.bf16 %v3795_v11, %v3787_v63 }
  0xe7   : > { %v2300_v26 = vadd.f32 %v2299_v23, %v2173_v22  ;;  %3243 = vst [vmem:[%s3777_s27 + $0x18] sm:$0xff] %v2939_v24   ;;  %v2934_v27 = vpack.c.bf16 %v904_v25, %v901_v16  ;;  %v2040_v28 = vadd.f32 %v2039_v21, %v904_v25  ;;  %v2174_v29 = vmul.f32 %v904_v25, %v904_v25  ;;  %v3800_v17 = vpop.f32.mrf.mxu1 }
  0xe8   : > { %v3387_v30 = vpop.f32.mrf.mxu0  ;;  %3272 = vst [vmem:[%s3777_s27 + $0x100] sm:$0xff] %v3084_v15  }
  0xe9   : > { %3242 = vst [vmem:[%s3777_s27 + $0x10] sm:$0xff] %v2934_v27   ;;  %v2041_v32 = vadd.f32 %v3383_v12, %v2040_v28  ;;  %v2301_v33 = vadd.f32 %v2300_v26, %v2174_v29  ;;  %v2179_v49 = vmul.f32 %v3387_v30, %v3387_v30  ;;  %v3803_v23 = vpop.f32.mrf.mxu1 }
  0xea   : > { %v917_v34 = vpop.f32.mrf.mxu0 }
  0xeb   : > { %v2302_v36 = vadd.f32 %v2301_v33, %v2175_v31  ;;  %v2042_v37 = vadd.f32 %v3384_v20, %v2041_v32  ;;  %v2177_v40 = vmul.f32 %v917_v34, %v917_v34  ;;  %v3806_v29 = vpop.f32.mrf.mxu1 }
  0xec   : > { %v3388_v38 = vpop.f32.mrf.mxu0  ;;  %v3099_v33 = vpack.c.bf16 %v3806_v29, %v3800_v17 }
  0xed   : > { %v2043_v39 = vadd.f32 %v2042_v37, %v917_v34  ;;  %v2303_v41 = vadd.f32 %v2302_v36, %v2176_v35  ;;  %v2949_v42 = vpack.c.bf16 %v3388_v38, %v3387_v30  ;;  %v2180_v53 = vmul.f32 %v3388_v38, %v3388_v38  ;;  %v3811_v35 = vpop.f32.mrf.mxu1 }
  0xee   : > { %v920_v43 = vpop.f32.mrf.mxu0  ;;  %3275 = vst [vmem:[%s3777_s27 + $0x118] sm:$0xff] %v3099_v33  }
  0xef   : > { %v2304_v44 = vadd.f32 %v2303_v41, %v2177_v40  ;;  %3245 = vst [vmem:[%s3777_s27 + $0x28] sm:$0xff] %v2949_v42   ;;  %v2944_v45 = vpack.c.bf16 %v920_v43, %v917_v34  ;;  %v2044_v46 = vadd.f32 %v2043_v39, %v920_v43  ;;  %v2178_v47 = vmul.f32 %v920_v43, %v920_v43  ;;  %v3816_v41 = vpop.f32.mrf.mxu1 }
  0xf0   : > { %v3391_v48 = vpop.f32.mrf.mxu0  ;;  %v3094_v39 = vpack.c.bf16 %v3811_v35, %v3803_v23 }
  0xf1   : > { %3244 = vst [vmem:[%s3777_s27 + $0x20] sm:$0xff] %v2944_v45   ;;  %v2045_v50 = vadd.f32 %v3387_v30, %v2044_v46  ;;  %v2305_v51 = vadd.f32 %v2304_v44, %v2178_v47  ;;  %v2183_v6 = vmul.f32 %v3391_v48, %v3391_v48  ;;  %v3819_v47 = vpop.f32.mrf.mxu1 }
  0xf2   : > { %v933_v52 = vpop.f32.mrf.mxu0  ;;  %3274 = vst [vmem:[%s3777_s27 + $0x110] sm:$0xff] %v3094_v39  }
  0xf3   : > { %v2306_v54 = vadd.f32 %v2305_v51, %v2179_v49  ;;  %v2046_v55 = vadd.f32 %v3388_v38, %v2045_v50  ;;  %v2181_v59 = vmul.f32 %v933_v52, %v933_v52 }
  0xf4   : > { %v3392_v56 = vpop.f32.mrf.mxu0 }
  0xf5   : > { %v2047_v58 = vadd.f32 %v2046_v55, %v933_v52  ;;  %v2307_v60 = vadd.f32 %v2306_v54, %v2180_v53  ;;  %v2959_v61 = vpack.c.bf16 %v3392_v56, %v3391_v48  ;;  %v2184_v12 = vmul.f32 %v3392_v56, %v3392_v56  ;;  %v3822_v53 = vpop.f32.mrf.mxu1 }
  0xf6   : > { %v936_v62 = vpop.f32.mrf.mxu0 }
  0xf7   : > { %v2308_v0 = vadd.f32 %v2307_v60, %v2181_v59  ;;  %3247 = vst [vmem:[%s3777_s27 + $0x38] sm:$0xff] %v2959_v61   ;;  %v2954_v1 = vpack.c.bf16 %v936_v62, %v933_v52  ;;  %v2048_v2 = vadd.f32 %v2047_v58, %v936_v62  ;;  %v2182_v3 = vmul.f32 %v936_v62, %v936_v62  ;;  %v3827_v60 = vpop.f32.mrf.mxu1 }
  0xf8   : > { %v3395_v4 = vpop.f32.mrf.mxu0  ;;  %v3109_v58 = vpack.c.bf16 %v3822_v53, %v3816_v41 }
  0xf9   : > { %3246 = vst [vmem:[%s3777_s27 + $0x30] sm:$0xff] %v2954_v1   ;;  %v2049_v7 = vadd.f32 %v3391_v48, %v2048_v2  ;;  %v2309_v8 = vadd.f32 %v2308_v0, %v2182_v3  ;;  %v2187_v30 = vmul.f32 %v3395_v4, %v3395_v4  ;;  %v3104_v1 = vpack.c.bf16 %v3827_v60, %v3819_v47  ;;  %v3832_v3 = vpop.f32.mrf.mxu1 }
  0xfa   : > { %v949_v10 = vpop.f32.mrf.mxu0  ;;  %3277 = vst [vmem:[%s3777_s27 + $0x128] sm:$0xff] %v3109_v58  }
  0xfb   : > { %v2310_v13 = vadd.f32 %v2309_v8, %v2183_v6  ;;  %v2050_v14 = vadd.f32 %v3392_v56, %v2049_v7  ;;  %v2185_v19 = vmul.f32 %v949_v10, %v949_v10  ;;  %3276 = vst [vmem:[%s3777_s27 + $0x120] sm:$0xff] %v3104_v1  }
  0xfc   : > { %v3396_v16 = vpop.f32.mrf.mxu0 }
  0xfd   : > { %v2051_v18 = vadd.f32 %v2050_v14, %v949_v10  ;;  %v2311_v20 = vadd.f32 %v2310_v13, %v2184_v12  ;;  %v2969_v21 = vpack.c.bf16 %v3396_v16, %v3395_v4  ;;  %v2188_v36 = vmul.f32 %v3396_v16, %v3396_v16 }
  0xfe   : > { %v952_v22 = vpop.f32.mrf.mxu0 }
  0xff   : > { %v2312_v24 = vadd.f32 %v2311_v20, %v2185_v19  ;;  %3249 = vst [vmem:[%s3777_s27 + $0x48] sm:$0xff] %v2969_v21   ;;  %v2964_v25 = vpack.c.bf16 %v952_v22, %v949_v10  ;;  %v2052_v26 = vadd.f32 %v2051_v18, %v952_v22  ;;  %v2186_v27 = vmul.f32 %v952_v22, %v952_v22  ;;  %v3835_v10 = vpop.f32.mrf.mxu1 }
 0x100   : > { %v3399_v28 = vpop.f32.mrf.mxu0 }
 0x101   : > { %3248 = vst [vmem:[%s3777_s27 + $0x40] sm:$0xff] %v2964_v25   ;;  %v2053_v31 = vadd.f32 %v3395_v4, %v2052_v26  ;;  %v2313_v32 = vadd.f32 %v2312_v24, %v2186_v27  ;;  %v2191_v54 = vmul.f32 %v3399_v28, %v3399_v28  ;;  %v3838_v18 = vpop.f32.mrf.mxu1 }
 0x102   : > { %v965_v34 = vpop.f32.mrf.mxu0  ;;  %v3119_v22 = vpack.c.bf16 %v3838_v18, %v3832_v3 }
 0x103   : > { %v2314_v37 = vadd.f32 %v2313_v32, %v2187_v30  ;;  %v2054_v38 = vadd.f32 %v3396_v16, %v2053_v31  ;;  %v2189_v43 = vmul.f32 %v965_v34, %v965_v34  ;;  %v3843_v25 = vpop.f32.mrf.mxu1 }
 0x104   : > { %v3400_v40 = vpop.f32.mrf.mxu0  ;;  %3279 = vst [vmem:[%s3777_s27 + $0x138] sm:$0xff] %v3119_v22   ;;  %v3114_v30 = vpack.c.bf16 %v3843_v25, %v3835_v10 }
 0x105   : > { %v2055_v42 = vadd.f32 %v2054_v38, %v965_v34  ;;  %v2315_v44 = vadd.f32 %v2314_v37, %v2188_v36  ;;  %v2979_v45 = vpack.c.bf16 %v3400_v40, %v3399_v28  ;;  %v2192_v61 = vmul.f32 %v3400_v40, %v3400_v40  ;;  %v3848_v32 = vpop.f32.mrf.mxu1 }
 0x106   : > { %v968_v46 = vpop.f32.mrf.mxu0  ;;  %3278 = vst [vmem:[%s3777_s27 + $0x130] sm:$0xff] %v3114_v30  }
 0x107   : > { %v2316_v48 = vadd.f32 %v2315_v44, %v2189_v43  ;;  %3251 = vst [vmem:[%s3777_s27 + $0x58] sm:$0xff] %v2979_v45   ;;  %v2974_v49 = vpack.c.bf16 %v968_v46, %v965_v34  ;;  %v2056_v50 = vadd.f32 %v2055_v42, %v968_v46  ;;  %v2190_v51 = vmul.f32 %v968_v46, %v968_v46  ;;  %v3851_v39 = vpop.f32.mrf.mxu1 }
 0x108   : > { %v3403_v52 = vpop.f32.mrf.mxu0 }
 0x109   : > { %3250 = vst [vmem:[%s3777_s27 + $0x50] sm:$0xff] %v2974_v49   ;;  %v2057_v55 = vadd.f32 %v3399_v28, %v2056_v50  ;;  %v2317_v56 = vadd.f32 %v2316_v48, %v2190_v51  ;;  %v2195_v19 = vmul.f32 %v3403_v52, %v3403_v52  ;;  %v3854_v46 = vpop.f32.mrf.mxu1 }
 0x10a   : > { %v981_v59 = vpop.f32.mrf.mxu0  ;;  %v3129_v51 = vpack.c.bf16 %v3854_v46, %v3848_v32 }
 0x10b   : > { %v2318_v62 = vadd.f32 %v2317_v56, %v2191_v54  ;;  %v2058_v0 = vadd.f32 %v3400_v40, %v2057_v55  ;;  %v2193_v6 = vmul.f32 %v981_v59, %v981_v59  ;;  %v3859_v54 = vpop.f32.mrf.mxu1 }
 0x10c   : > { %v3404_v2 = vpop.f32.mrf.mxu0  ;;  %3281 = vst [vmem:[%s3777_s27 + $0x148] sm:$0xff] %v3129_v51  }
 0x10d   : > { %v2059_v4 = vadd.f32 %v2058_v0, %v981_v59  ;;  %v2319_v7 = vadd.f32 %v2318_v62, %v2192_v61  ;;  %v2989_v8 = vpack.c.bf16 %v3404_v2, %v3403_v52  ;;  %v2196_v26 = vmul.f32 %v3404_v2, %v3404_v2  ;;  %v3864_v62 = vpop.f32.mrf.mxu1 }
 0x10e   : > { %v984_v9 = vpop.f32.mrf.mxu0 }
 0x10f   : > { %v2320_v12 = vadd.f32 %v2319_v7, %v2193_v6  ;;  %3253 = vst [vmem:[%s3777_s27 + $0x68] sm:$0xff] %v2989_v8   ;;  %v2984_v13 = vpack.c.bf16 %v984_v9, %v981_v59  ;;  %v2060_v14 = vadd.f32 %v2059_v4, %v984_v9  ;;  %v2194_v15 = vmul.f32 %v984_v9, %v984_v9  ;;  %v3867_v7 = vpop.f32.mrf.mxu1 }
 0x110   : > { %v3407_v16 = vpop.f32.mrf.mxu0  ;;  %v3124_v59 = vpack.c.bf16 %v3859_v54, %v3851_v39 }
 0x111   : > { %3252 = vst [vmem:[%s3777_s27 + $0x60] sm:$0xff] %v2984_v13   ;;  %v2061_v20 = vadd.f32 %v3403_v52, %v2060_v14  ;;  %v2321_v21 = vadd.f32 %v2320_v12, %v2194_v15  ;;  %v2199_v48 = vmul.f32 %v3407_v16, %v3407_v16  ;;  %v3870_v15 = vpop.f32.mrf.mxu1 }
 0x112   : > { %v997_v24 = vpop.f32.mrf.mxu0  ;;  %3280 = vst [vmem:[%s3777_s27 + $0x140] sm:$0xff] %v3124_v59  }
 0x113   : > { %v2322_v27 = vadd.f32 %v2321_v21, %v2195_v19  ;;  %v2062_v28 = vadd.f32 %v3404_v2, %v2061_v20  ;;  %v2197_v34 = vmul.f32 %v997_v24, %v997_v24  ;;  %v3139_v21 = vpack.c.bf16 %v3870_v15, %v3864_v62 }
 0x114   : > { %v3408_v31 = vpop.f32.mrf.mxu0 }
 0x115   : > { %v2063_v33 = vadd.f32 %v2062_v28, %v997_v24  ;;  %v2323_v36 = vadd.f32 %v2322_v27, %v2196_v26  ;;  %v2999_v37 = vpack.c.bf16 %v3408_v31, %v3407_v16  ;;  %v2200_v55 = vmul.f32 %v3408_v31, %v3408_v31  ;;  %3283 = vst [vmem:[%s3777_s27 + $0x158] sm:$0xff] %v3139_v21  }
 0x116   : > { %v1000_v38 = vpop.f32.mrf.mxu0 }
 0x117   : > { %v2324_v40 = vadd.f32 %v2323_v36, %v2197_v34  ;;  %3255 = vst [vmem:[%s3777_s27 + $0x78] sm:$0xff] %v2999_v37   ;;  %v2994_v42 = vpack.c.bf16 %v1000_v38, %v997_v24  ;;  %v2064_v43 = vadd.f32 %v2063_v33, %v1000_v38  ;;  %v2198_v44 = vmul.f32 %v1000_v38, %v1000_v38  ;;  %v3875_v24 = vpop.f32.mrf.mxu1 }
 0x118   : > { %v3411_v45 = vpop.f32.mrf.mxu0  ;;  %v3134_v30 = vpack.c.bf16 %v3875_v24, %v3867_v7 }
 0x119   : > { %3254 = vst [vmem:[%s3777_s27 + $0x70] sm:$0xff] %v2994_v42   ;;  %v2065_v49 = vadd.f32 %v3407_v16, %v2064_v43  ;;  %v2325_v50 = vadd.f32 %v2324_v40, %v2198_v44  ;;  %v2203_v16 = vmul.f32 %v3411_v45, %v3411_v45  ;;  %v3880_v33 = vpop.f32.mrf.mxu1 }
 0x11a   : > { %v1013_v52 = vpop.f32.mrf.mxu0  ;;  %3282 = vst [vmem:[%s3777_s27 + $0x150] sm:$0xff] %v3134_v30  }
 0x11b   : > { %v2326_v56 = vadd.f32 %v2325_v50, %v2199_v48  ;;  %v2066_v58 = vadd.f32 %v3408_v31, %v2065_v49  ;;  %v2201_v1 = vmul.f32 %v1013_v52, %v1013_v52  ;;  %v3883_v42 = vpop.f32.mrf.mxu1 }
 0x11c   : > { %v3412_v61 = vpop.f32.mrf.mxu0 }
 0x11d   : > { %v2067_v0 = vadd.f32 %v2066_v58, %v1013_v52  ;;  %v2327_v2 = vadd.f32 %v2326_v56, %v2200_v55  ;;  %v3009_v4 = vpack.c.bf16 %v3412_v61, %v3411_v45  ;;  %v2204_v26 = vmul.f32 %v3412_v61, %v3412_v61  ;;  %v3886_v50 = vpop.f32.mrf.mxu1 }
 0x11e   : > { %v1016_v6 = vpop.f32.mrf.mxu0  ;;  %v3149_v56 = vpack.c.bf16 %v3886_v50, %v3880_v33 }
 0x11f   : > { %v2328_v8 = vadd.f32 %v2327_v2, %v2201_v1  ;;  %3257 = vst [vmem:[%s3777_s27 + $0x88] sm:$0xff] %v3009_v4   ;;  %v3004_v9 = vpack.c.bf16 %v1016_v6, %v1013_v52  ;;  %v2068_v12 = vadd.f32 %v2067_v0, %v1016_v6  ;;  %v2202_v13 = vmul.f32 %v1016_v6, %v1016_v6  ;;  %v3891_v59 = vpop.f32.mrf.mxu1 }
 0x120   : > { %v3415_v14 = vpop.f32.mrf.mxu0  ;;  %3285 = vst [vmem:[%s3777_s27 + $0x168] sm:$0xff] %v3149_v56   ;;  %v3144_v2 = vpack.c.bf16 %v3891_v59, %v3883_v42 }
 0x121   : > { %3256 = vst [vmem:[%s3777_s27 + $0x80] sm:$0xff] %v3004_v9   ;;  %v2069_v19 = vadd.f32 %v3411_v45, %v2068_v12  ;;  %v2329_v20 = vadd.f32 %v2328_v8, %v2202_v13  ;;  %v2207_v51 = vmul.f32 %v3415_v14, %v3415_v14  ;;  %v3896_v6 = vpop.f32.mrf.mxu1 }
 0x122   : > { %v1029_v22 = vpop.f32.mrf.mxu0  ;;  %3284 = vst [vmem:[%s3777_s27 + $0x160] sm:$0xff] %v3144_v2  }
 0x123   : > { %v2330_v27 = vadd.f32 %v2329_v20, %v2203_v16  ;;  %v2070_v28 = vadd.f32 %v3412_v61, %v2069_v19  ;;  %v2205_v36 = vmul.f32 %v1029_v22, %v1029_v22  ;;  %v3899_v16 = vpop.f32.mrf.mxu1 }
 0x124   : > { %v3416_v31 = vpop.f32.mrf.mxu0 }
 0x125   : > { %v2071_v34 = vadd.f32 %v2070_v28, %v1029_v22  ;;  %v2331_v37 = vadd.f32 %v2330_v27, %v2204_v26  ;;  %v3019_v38 = vpack.c.bf16 %v3416_v31, %v3415_v14  ;;  %v2208_v61 = vmul.f32 %v3416_v31, %v3416_v31  ;;  %v3902_v27 = vpop.f32.mrf.mxu1 }
 0x126   : > { %v1032_v40 = vpop.f32.mrf.mxu0 }
 0x127   : > { %v2332_v43 = vadd.f32 %v2331_v37, %v2205_v36  ;;  %3259 = vst [vmem:[%s3777_s27 + $0x98] sm:$0xff] %v3019_v38   ;;  %v3014_v44 = vpack.c.bf16 %v1032_v40, %v1029_v22  ;;  %v2072_v45 = vadd.f32 %v2071_v34, %v1032_v40  ;;  %v2206_v48 = vmul.f32 %v1032_v40, %v1032_v40  ;;  %v3907_v37 = vpop.f32.mrf.mxu1 }
 0x128   : > { %v3419_v49 = vpop.f32.mrf.mxu0  ;;  %v3159_v34 = vpack.c.bf16 %v3902_v27, %v3896_v6 }
 0x129   : > { %3258 = vst [vmem:[%s3777_s27 + $0x90] sm:$0xff] %v3014_v44   ;;  %v2073_v52 = vadd.f32 %v3415_v14, %v2072_v45  ;;  %v2333_v55 = vadd.f32 %v2332_v43, %v2206_v48  ;;  %v2211_v28 = vmul.f32 %v3419_v49, %v3419_v49  ;;  %v3154_v44 = vpack.c.bf16 %v3907_v37, %v3899_v16  ;;  %v3912_v48 = vpop.f32.mrf.mxu1 }
 0x12a   : > { %v1045_v58 = vpop.f32.mrf.mxu0  ;;  %3287 = vst [vmem:[%s3777_s27 + $0x178] sm:$0xff] %v3159_v34  }
 0x12b   : > { %v2334_v0 = vadd.f32 %v2333_v55, %v2207_v51  ;;  %v2074_v1 = vadd.f32 %v3416_v31, %v2073_v52  ;;  %v2209_v9 = vmul.f32 %v1045_v58, %v1045_v58  ;;  %3286 = vst [vmem:[%s3777_s27 + $0x170] sm:$0xff] %v3154_v44  }
 0x12c   : > { %v3420_v4 = vpop.f32.mrf.mxu0 }
 0x12d   : > { %v2075_v8 = vadd.f32 %v2074_v1, %v1045_v58  ;;  %v2335_v12 = vadd.f32 %v2334_v0, %v2208_v61  ;;  %v3029_v13 = vpack.c.bf16 %v3420_v4, %v3419_v49  ;;  %v2212_v38 = vmul.f32 %v3420_v4, %v3420_v4 }
 0x12e   : > { %v1048_v14 = vpop.f32.mrf.mxu0 }
 0x12f   : > { %v2336_v19 = vadd.f32 %v2335_v12, %v2209_v9  ;;  %3261 = vst [vmem:[%s3777_s27 + $0xa8] sm:$0xff] %v3029_v13   ;;  %v3024_v20 = vpack.c.bf16 %v1048_v14, %v1045_v58  ;;  %v2076_v21 = vadd.f32 %v2075_v8, %v1048_v14  ;;  %v2210_v22 = vmul.f32 %v1048_v14, %v1048_v14  ;;  %v3915_v58 = vpop.f32.mrf.mxu1 }
 0x130   : > { %v3423_v26 = vpop.f32.mrf.mxu0 }
 0x131   : > { %3260 = vst [vmem:[%s3777_s27 + $0xa0] sm:$0xff] %v3024_v20   ;;  %v2077_v30 = vadd.f32 %v3419_v49, %v2076_v21  ;;  %v2337_v31 = vadd.f32 %v2336_v19, %v2210_v22  ;;  %v3918_v8 = vpop.f32.mrf.mxu1  ;;  %v2215_v9 = vmul.f32 %v3423_v26, %v3423_v26 }
 0x132   : > { %v1061_v36 = vpop.f32.mrf.mxu0  ;;  %v3169_v14 = vpack.c.bf16 %v3918_v8, %v3912_v48 }
 0x133   : > { %v2338_v40 = vadd.f32 %v2337_v31, %v2211_v28  ;;  %v2078_v43 = vadd.f32 %v3420_v4, %v2077_v30  ;;  %v2213_v51 = vmul.f32 %v1061_v36, %v1061_v36  ;;  %v3923_v20 = vpop.f32.mrf.mxu1 }
 0x134   : > { %v3424_v45 = vpop.f32.mrf.mxu0  ;;  %3289 = vst [vmem:[%s3777_s27 + $0x188] sm:$0xff] %v3169_v14   ;;  %v3164_v30 = vpack.c.bf16 %v3923_v20, %v3915_v58 }
 0x135   : > { %v2079_v49 = vadd.f32 %v2078_v43, %v1061_v36  ;;  %v2339_v52 = vadd.f32 %v2338_v40, %v2212_v38  ;;  %v3039_v55 = vpack.c.bf16 %v3424_v45, %v3423_v26  ;;  %v2216_v21 = vmul.f32 %v3424_v45, %v3424_v45  ;;  %v3928_v34 = vpop.f32.mrf.mxu1 }
 0x136   : > { %v1064_v56 = vpop.f32.mrf.mxu0  ;;  %3288 = vst [vmem:[%s3777_s27 + $0x180] sm:$0xff] %v3164_v30  }
 0x137   : > { %v2340_v61 = vadd.f32 %v2339_v52, %v2213_v51  ;;  %3263 = vst [vmem:[%s3777_s27 + $0xb8] sm:$0xff] %v3039_v55   ;;  %v3034_v0 = vpack.c.bf16 %v1064_v56, %v1061_v36  ;;  %v2080_v1 = vadd.f32 %v2079_v49, %v1064_v56  ;;  %v2214_v2 = vmul.f32 %v1064_v56, %v1064_v56  ;;  %v3931_v44 = vpop.f32.mrf.mxu1 }
 0x138   : > { %v3427_v4 = vpop.f32.mrf.mxu0 }
 0x139   : > { %3262 = vst [vmem:[%s3777_s27 + $0xb0] sm:$0xff] %v3034_v0   ;;  %v2081_v12 = vadd.f32 %v3423_v26, %v2080_v1  ;;  %v2341_v13 = vadd.f32 %v2340_v61, %v2214_v2  ;;  %v3934_v56 = vpop.f32.mrf.mxu1  ;;  %v2219_v61 = vmul.f32 %v3427_v4, %v3427_v4 }
 0x13a   : > { %v1077_v19 = vpop.f32.mrf.mxu0  ;;  %v3179_v2 = vpack.c.bf16 %v3934_v56, %v3928_v34 }
 0x13b   : > { %v2342_v22 = vadd.f32 %v2341_v13, %v2215_v9  ;;  %v2082_v28 = vadd.f32 %v3424_v45, %v2081_v12  ;;  %v2217_v36 = vmul.f32 %v1077_v19, %v1077_v19  ;;  %v3939_v12 = vpop.f32.mrf.mxu1 }
 0x13c   : > { %v3428_v31 = vpop.f32.mrf.mxu0  ;;  %3291 = vst [vmem:[%s3777_s27 + $0x198] sm:$0xff] %v3179_v2  }
 0x13d   : > { %v2083_v26 = vadd.f32 %v2082_v28, %v1077_v19  ;;  %v2343_v38 = vadd.f32 %v2342_v22, %v2216_v21  ;;  %v3049_v40 = vpack.c.bf16 %v3428_v31, %v3427_v4  ;;  %v2220_v13 = vmul.f32 %v3428_v31, %v3428_v31  ;;  %v3944_v28 = vpop.f32.mrf.mxu1 }
 0x13e   : > { %v1080_v43 = vpop.f32.mrf.mxu0  ;;  %v3174_v21 = vpack.c.bf16 %v3939_v12, %v3931_v44  ;;  %4253 = vst [vmem:[#allocation2_spill] sm:$0xff] %v3944_v28 }
 0x13f   : > { %v2344_v49 = vadd.f32 %v2343_v38, %v2217_v36  ;;  %3265 = vst [vmem:[%s3777_s27 + $0xc8] sm:$0xff] %v3049_v40   ;;  %v3044_v45 = vpack.c.bf16 %v1080_v43, %v1077_v19  ;;  %v2084_v51 = vadd.f32 %v2083_v26, %v1080_v43  ;;  %v2218_v52 = vmul.f32 %v1080_v43, %v1080_v43  ;;  %v3947_v40 = vpop.f32.mrf.mxu1 }
 0x140   : > { %v3431_v55 = vpop.f32.mrf.mxu0  ;;  %3290 = vst [vmem:[%s3777_s27 + $0x190] sm:$0xff] %v3174_v21  }
 0x141   : > { %3264 = vst [vmem:[%s3777_s27 + $0xc0] sm:$0xff] %v3044_v45   ;;  %v2085_v0 = vadd.f32 %v3427_v4, %v2084_v51  ;;  %v2345_v1 = vadd.f32 %v2344_v49, %v2218_v52  ;;  %v3950_v52 = vpop.f32.mrf.mxu1 }
 0x142   : > { %v1093_v9 = vpop.f32.mrf.mxu0  ;;  %4254 = vst [vmem:[#allocation3_spill] sm:$0xff] %v3950_v52  ;;  %v3189_v2 = vpack.c.bf16 %v3950_v52, %v3944_v28 }
 0x143   : > { %v2346_v14 = vadd.f32 %v2345_v1, %v2219_v61  ;;  %v2086_v19 = vadd.f32 %v3428_v31, %v2085_v0  ;;  %v2221_v30 = vmul.f32 %v1093_v9, %v1093_v9  ;;  %v2223_v61 = vmul.f32 %v3431_v55, %v3431_v55 }
 0x144   : > { %v3432_v22 = vpop.f32.mrf.mxu0  ;;  %3293 = vst [vmem:[%s3777_s27 + $0x1a8] sm:$0xff] %v3189_v2  }
 0x145   : > { %v2087_v4 = vadd.f32 %v2086_v19, %v1093_v9  ;;  %v2347_v26 = vadd.f32 %v2346_v14, %v2220_v13  ;;  %v3059_v36 = vpack.c.bf16 %v3432_v22, %v3431_v55  ;;  %v3955_v14 = vpop.f32.mrf.mxu1  ;;  %v2224_v19 = vmul.f32 %v3432_v22, %v3432_v22 }
 0x146   : > { %v1096_v38 = vpop.f32.mrf.mxu0  ;;  %4255 = vst [vmem:[#allocation4_spill] sm:$0xff] %v3955_v14 }
 0x147   : > { %v2348_v43 = vadd.f32 %v2347_v26, %v2221_v30  ;;  %3267 = vst [vmem:[%s3777_s27 + $0xd8] sm:$0xff] %v3059_v36   ;;  %v3054_v31 = vpack.c.bf16 %v1096_v38, %v1093_v9  ;;  %v2088_v49 = vadd.f32 %v2087_v4, %v1096_v38  ;;  %v2222_v45 = vmul.f32 %v1096_v38, %v1096_v38  ;;  %v3960_v26 = vpop.f32.mrf.mxu1 }
 0x148   : > { %v3435_v51 = vpop.f32.mrf.mxu0  ;;  %v3184_v4 = vpack.c.bf16 %v3955_v14, %v3947_v40  ;;  %4256 = vst [vmem:[#allocation5_spill] sm:$0xff] %v3960_v26 }
 0x149   : > { %3266 = vst [vmem:[%s3777_s27 + $0xd0] sm:$0xff] %v3054_v31   ;;  %v2089_v0 = vadd.f32 %v3431_v55, %v2088_v49  ;;  %v2349_v1 = vadd.f32 %v2348_v43, %v2222_v45  ;;  %v3963_v49 = vpop.f32.mrf.mxu1  ;;  %v2227_v52 = vmul.f32 %v3435_v51, %v3435_v51 }
 0x14a   : > { %v1109_v13 = vpop.f32.mrf.mxu0  ;;  %3292 = vst [vmem:[%s3777_s27 + $0x1a0] sm:$0xff] %v3184_v4   ;;  %4257 = vst [vmem:[#allocation6_spill] sm:$0xff] %v3963_v49 }
 0x14b   : > { %v2350_v21 = vadd.f32 %v2349_v1, %v2223_v61  ;;  %v2090_v9 = vadd.f32 %v3432_v22, %v2089_v0  ;;  %v2225_v36 = vmul.f32 %v1109_v13, %v1109_v13  ;;  %v3966_v2 = vpop.f32.mrf.mxu1 }
 0x14c   : > { %v3436_v30 = vpop.f32.mrf.mxu0  ;;  %4258 = vst [vmem:[#allocation7_spill] sm:$0xff] %v3966_v2 }
 0x14d   : > { %v2091_v55 = vadd.f32 %v2090_v9, %v1109_v13  ;;  %v2351_v38 = vadd.f32 %v2350_v21, %v2224_v19  ;;  %v3069_v43 = vpack.c.bf16 %v3436_v30, %v3435_v51  ;;  %v3199_v19 = vpack.c.bf16 %v3966_v2, %v3960_v26  ;;  %v3971_v4 = vpop.f32.mrf.mxu1 }
 0x14e   : > { %v1112_v31 = vpop.f32.mrf.mxu0  ;;  %4259 = vst [vmem:[#allocation8_spill] sm:$0xff] %v3971_v4 }
 0x14f   : > { %v2352_v45 = vadd.f32 %v2351_v38, %v2225_v36  ;;  %3269 = vst [vmem:[%s3777_s27 + $0xe8] sm:$0xff] %v3069_v43   ;;  %v3064_v22 = vpack.c.bf16 %v1112_v31, %v1109_v13  ;;  %v2092_v61 = vadd.f32 %v2091_v55, %v1112_v31  ;;  %v2226_v0 = vmul.f32 %v1112_v31, %v1112_v31  ;;  %v3976_v31 = vpop.f32.mrf.mxu1 }
 0x150   : > { %v3439_v1 = vpop.f32.mrf.mxu0  ;;  %v2228_v36 = vmul.f32 %v3436_v30, %v3436_v30  ;;  %3295 = vst [vmem:[%s3777_s27 + $0x1b8] sm:$0xff] %v3199_v19   ;;  %v3194_v55 = vpack.c.bf16 %v3971_v4, %v3963_v49 }
 0x151   : > { %3268 = vst [vmem:[%s3777_s27 + $0xe0] sm:$0xff] %v3064_v22   ;;  %v2093_v28 = vadd.f32 %v3435_v51, %v2092_v61  ;;  %v2353_v9 = vadd.f32 %v2352_v45, %v2226_v0  ;;  %v3979_v2 = vpop.f32.mrf.mxu1  ;;  %v2231_v19 = vmul.f32 %v3439_v1, %v3439_v1 }
 0x152   : > { %v1125_v21 = vpop.f32.mrf.mxu0  ;;  %3294 = vst [vmem:[%s3777_s27 + $0x1b0] sm:$0xff] %v3194_v55  }
 0x153   : > { %v2354_v38 = vadd.f32 %v2353_v9, %v2227_v52  ;;  %v2094_v13 = vadd.f32 %v3436_v30, %v2093_v28  ;;  %v2229_v45 = vmul.f32 %v1125_v21, %v1125_v21  ;;  %v3982_v9 = vpop.f32.mrf.mxu1 }
 0x154   : > { %v3440_v43 = vpop.f32.mrf.mxu0 }
 0x155   : > { %v2095_v51 = vadd.f32 %v2094_v13, %v1125_v21  ;;  %v2355_v22 = vadd.f32 %v2354_v38, %v2228_v36  ;;  %v3079_v61 = vpack.c.bf16 %v3440_v43, %v3439_v1  ;;  %v3209_v36 = vpack.c.bf16 %v3982_v9, %v3976_v31  ;;  %v3987_v38 = vpop.f32.mrf.mxu1 }
 0x156   : > { %v1128_v0 = vpop.f32.mrf.mxu0  ;;  %v2232_v55 = vmul.f32 %v3440_v43, %v3440_v43 }
 0x157   : > { %v2356_v26 = vadd.f32 %v2355_v22, %v2229_v45  ;;  %3271 = vst [vmem:[%s3777_s27 + $0xf8] sm:$0xff] %v3079_v61   ;;  %v3074_v28 = vpack.c.bf16 %v1128_v0, %v1125_v21  ;;  %v2096_v52 = vadd.f32 %v2095_v51, %v1128_v0  ;;  %v2230_v30 = vmul.f32 %v1128_v0, %v1128_v0  ;;  %v3992_v51 = vpop.f32.mrf.mxu1 }
 0x158   : > { %3297 = vst [vmem:[%s3777_s27 + $0x1c8] sm:$0xff] %v3209_v36   ;;  %v3204_v21 = vpack.c.bf16 %v3987_v38, %v3979_v2  ;;  %v2233_v45 = vmul.f32 %v3787_v63, %v3787_v63 }
 0x159   : > { %3270 = vst [vmem:[%s3777_s27 + $0xf0] sm:$0xff] %v3074_v28   ;;  %v2097_v4 = vadd.f32 %v3439_v1, %v2096_v52  ;;  %v2357_v13 = vadd.f32 %v2356_v26, %v2230_v30  ;;  %v3998_v22 = vpop.f32.mrf.mxu1  ;;  %v2235_v28 = vmul.f32 %v3785_v57, %v3785_v57  ;;  %v2236_v30 = vmul.f32 %v3790_v5, %v3790_v5 }
 0x15a   : > { %3296 = vst [vmem:[%s3777_s27 + $0x1c0] sm:$0xff] %v3204_v21  }
 0x15b   : > { %v2098_v49 = vadd.f32 %v3440_v43, %v2097_v4  ;;  %v2358_v14 = vadd.f32 %v2357_v13, %v2231_v19  ;;  %v2234_v43 = vmul.f32 %v3795_v11, %v3795_v11  ;;  %v4003_v0 = vpop.f32.mrf.mxu1 }
 0x15d   : > { %v2099_v1 = vadd.f32 %v2098_v49, %v3787_v63  ;;  %v2359_v26 = vadd.f32 %v2358_v14, %v2232_v55  ;;  %v3219_v14 = vpack.c.bf16 %v4003_v0, %v3992_v51  ;;  %v4010_v49 = vpop.f32.mrf.mxu1  ;;  %v2237_v55 = vmul.f32 %v3803_v23, %v3803_v23 }
 0x15e   : > { %v3214_v13 = vpack.c.bf16 %v4010_v49, %v3998_v22 }
 0x15f   : > { %v2360_v61 = vadd.f32 %v2359_v26, %v2233_v45  ;;  %v2100_v4 = vadd.f32 %v2099_v1, %v3795_v11  ;;  %3299 = vst [vmem:[%s3777_s27 + $0x1d8] sm:$0xff] %v3219_v14   ;;  %v4018_v36 = vpop.f32.mrf.mxu1 }
 0x160   : > { %3298 = vst [vmem:[%s3777_s27 + $0x1d0] sm:$0xff] %v3214_v13  }
 0x161   : > { %v2101_v52 = vadd.f32 %v3785_v57, %v2100_v4  ;;  %v2361_v63 = vadd.f32 %v2360_v61, %v2234_v43  ;;  %v4024_v45 = vpop.f32.mrf.mxu1  ;;  %v2239_v4 = vmul.f32 %v3800_v17, %v3800_v17 }
 0x163   : > { %v2362_v19 = vadd.f32 %v2361_v63, %v2235_v28  ;;  %v2102_v11 = vadd.f32 %v3790_v5, %v2101_v52  ;;  %v2238_v5 = vmul.f32 %v3811_v35, %v3811_v35  ;;  %v4029_v61 = vpop.f32.mrf.mxu1  ;;  %v2240_v63 = vmul.f32 %v3806_v29, %v3806_v29 }
 0x164   : > { %v3229_v28 = vpack.c.bf16 %v4029_v61, %v4018_v36 }
 0x165   : > { %v2103_v57 = vadd.f32 %v2102_v11, %v3803_v23  ;;  %v2363_v21 = vadd.f32 %v2362_v19, %v2236_v30  ;;  %v4036_v52 = vpop.f32.mrf.mxu1  ;;  %v2241_v11 = vmul.f32 %v3819_v47, %v3819_v47 }
 0x166   : > { %3301 = vst [vmem:[%s3777_s27 + $0x1e8] sm:$0xff] %v3229_v28   ;;  %v3224_v30 = vpack.c.bf16 %v4036_v52, %v4024_v45 }
 0x167   : > { %v2364_v1 = vadd.f32 %v2363_v21, %v2237_v55  ;;  %v2104_v26 = vadd.f32 %v2103_v57, %v3811_v35  ;;  %v4044_v19 = vpop.f32.mrf.mxu1 }
 0x168   : > { %3300 = vst [vmem:[%s3777_s27 + $0x1e0] sm:$0xff] %v3224_v30  }
 0x169   : > { %v2105_v43 = vadd.f32 %v3800_v17, %v2104_v26  ;;  %v2365_v23 = vadd.f32 %v2364_v1, %v2238_v5  ;;  %v4050_v57 = vpop.f32.mrf.mxu1  ;;  %v2243_v26 = vmul.f32 %v3816_v41, %v3816_v41 }
 0x16b   : > { %v2366_v14 = vadd.f32 %v2365_v23, %v2239_v4  ;;  %v2106_v35 = vadd.f32 %v3806_v29, %v2105_v43  ;;  %v2242_v29 = vmul.f32 %v3827_v60, %v3827_v60  ;;  %v4055_v1 = vpop.f32.mrf.mxu1  ;;  %v2244_v23 = vmul.f32 %v3822_v53, %v3822_v53 }
 0x16c   : > { %v3239_v4 = vpack.c.bf16 %v4055_v1, %v4044_v19 }
 0x16d   : > { %v2107_v17 = vadd.f32 %v2106_v35, %v3819_v47  ;;  %v2367_v13 = vadd.f32 %v2366_v14, %v2240_v63  ;;  %v4062_v43 = vpop.f32.mrf.mxu1 }
 0x16e   : > { %3303 = vst [vmem:[%s3777_s27 + $0x1f8] sm:$0xff] %v3239_v4  }
 0x16f   : > { %v2368_v55 = vadd.f32 %v2367_v13, %v2241_v11  ;;  %v2108_v21 = vadd.f32 %v2107_v17, %v3827_v60  ;;  %v3234_v60 = vpack.c.bf16 %v4062_v43, %v4050_v57  ;;  %v2246_v11 = vmul.f32 %v3843_v25, %v3843_v25 }
 0x171   : > { %v2109_v5 = vadd.f32 %v3816_v41, %v2108_v21  ;;  %v2369_v47 = vadd.f32 %v2368_v55, %v2242_v29  ;;  %v2245_v41 = vmul.f32 %v3835_v10, %v3835_v10  ;;  %3302 = vst [vmem:[%s3777_s27 + $0x1f0] sm:$0xff] %v3234_v60   ;;  %v2248_v21 = vmul.f32 %v3838_v18, %v3838_v18 }
 0x173   : > { %v2370_v28 = vadd.f32 %v2369_v47, %v2243_v26  ;;  %v2110_v63 = vadd.f32 %v3822_v53, %v2109_v5  ;;  %v2247_v53 = vmul.f32 %v3832_v3, %v3832_v3  ;;  %v2249_v5 = vmul.f32 %v3851_v39, %v3851_v39 }
 0x175   : > { %v2111_v14 = vadd.f32 %v2110_v63, %v3835_v10  ;;  %v2371_v35 = vadd.f32 %v2370_v28, %v2244_v23  ;;  %v2250_v23 = vmul.f32 %v3859_v54, %v3859_v54 }
 0x177   : > { %v2372_v30 = vadd.f32 %v2371_v35, %v2245_v41  ;;  %v2112_v17 = vadd.f32 %v2111_v14, %v3843_v25  ;;  %v2253_v41 = vmul.f32 %v3867_v7, %v3867_v7 }
 0x179   : > { %v2113_v13 = vadd.f32 %v3832_v3, %v2112_v17  ;;  %v2373_v55 = vadd.f32 %v2372_v30, %v2246_v11  ;;  %v2251_v3 = vmul.f32 %v3848_v32, %v3848_v32  ;;  %v2254_v17 = vmul.f32 %v3875_v24, %v3875_v24 }
 0x17b   : > { %v2374_v29 = vadd.f32 %v2373_v55, %v2247_v53  ;;  %v2114_v10 = vadd.f32 %v3838_v18, %v2113_v13  ;;  %v2252_v18 = vmul.f32 %v3854_v46, %v3854_v46 }
 0x17d   : > { %v2115_v26 = vadd.f32 %v2114_v10, %v3851_v39  ;;  %v2375_v47 = vadd.f32 %v2374_v29, %v2248_v21  ;;  %v2257_v21 = vmul.f32 %v3883_v42, %v3883_v42 }
 0x17f   : > { %v2376_v4 = vadd.f32 %v2375_v47, %v2249_v5  ;;  %v2116_v25 = vadd.f32 %v2115_v26, %v3859_v54  ;;  %v2258_v26 = vmul.f32 %v3891_v59, %v3891_v59 }
 0x181   : > { %v2117_v28 = vadd.f32 %v3848_v32, %v2116_v25  ;;  %v2377_v63 = vadd.f32 %v2376_v4, %v2250_v23  ;;  %v2255_v32 = vmul.f32 %v3864_v62, %v3864_v62  ;;  %v2261_v23 = vmul.f32 %v3899_v16, %v3899_v16 }
 0x183   : > { %v2378_v60 = vadd.f32 %v2377_v63, %v2251_v3  ;;  %v2118_v14 = vadd.f32 %v3854_v46, %v2117_v28  ;;  %v2256_v46 = vmul.f32 %v3870_v15, %v3870_v15  ;;  %v2262_v63 = vmul.f32 %v3907_v37, %v3907_v37 }
 0x185   : > { %v2119_v39 = vadd.f32 %v2118_v14, %v3867_v7  ;;  %v2379_v35 = vadd.f32 %v2378_v60, %v2252_v18 }
 0x187   : > { %v2380_v30 = vadd.f32 %v2379_v35, %v2253_v41  ;;  %v2120_v54 = vadd.f32 %v2119_v39, %v3875_v24  ;;  %v2265_v41 = vmul.f32 %v3915_v58, %v3915_v58 }
 0x189   : > { %v2121_v11 = vadd.f32 %v3864_v62, %v2120_v54  ;;  %v2381_v53 = vadd.f32 %v2380_v30, %v2254_v17  ;;  %v2259_v62 = vmul.f32 %v3880_v33, %v3880_v33  ;;  %v2266_v54 = vmul.f32 %v3923_v20, %v3923_v20 }
 0x18b   : > { %v2382_v13 = vadd.f32 %v2381_v53, %v2255_v32  ;;  %v2122_v55 = vadd.f32 %v3870_v15, %v2121_v11  ;;  %v2260_v15 = vmul.f32 %v3886_v50, %v3886_v50 }
 0x18d   : > { %v2123_v7 = vadd.f32 %v2122_v55, %v3883_v42  ;;  %v2383_v29 = vadd.f32 %v2382_v13, %v2256_v46  ;;  %v2269_v46 = vmul.f32 %v3931_v44, %v3931_v44 }
 0x18f   : > { %v2384_v10 = vadd.f32 %v2383_v29, %v2257_v21  ;;  %v2124_v24 = vadd.f32 %v2123_v7, %v3891_v59  ;;  %v2270_v7 = vmul.f32 %v3939_v12, %v3939_v12 }
 0x191   : > { %v2125_v5 = vadd.f32 %v3880_v33, %v2124_v24  ;;  %v2385_v47 = vadd.f32 %v2384_v10, %v2258_v26  ;;  %v2263_v33 = vmul.f32 %v3896_v6, %v3896_v6  ;;  %v2273_v26 = vmul.f32 %v3947_v40, %v3947_v40 }
 0x193   : > { %v2386_v4 = vadd.f32 %v2385_v47, %v2259_v62  ;;  %v2126_v25 = vadd.f32 %v3886_v50, %v2125_v5  ;;  %v2264_v50 = vmul.f32 %v3902_v27, %v3902_v27 }
 0x195   : > { %v2127_v42 = vadd.f32 %v2126_v25, %v3899_v16  ;;  %v2387_v3 = vadd.f32 %v2386_v4, %v2260_v15 }
 0x197   : > { %v2388_v28 = vadd.f32 %v2387_v3, %v2261_v23  ;;  %v2128_v59 = vadd.f32 %v2127_v42, %v3907_v37  ;;  %v4262_v23 = vld [vmem:[#allocation3_spill] sm:$0xff] }
 0x199   : > { %v2129_v18 = vadd.f32 %v3896_v6, %v2128_v59  ;;  %v2389_v60 = vadd.f32 %v2388_v28, %v2262_v63  ;;  %v2267_v6 = vmul.f32 %v3912_v48, %v3912_v48 }
 0x19b   : > { %v2390_v14 = vadd.f32 %v2389_v60, %v2263_v33  ;;  %v2130_v39 = vadd.f32 %v3902_v27, %v2129_v18  ;;  %v2268_v27 = vmul.f32 %v3918_v8, %v3918_v8  ;;  %v4264_v60 = vld [vmem:[#allocation8_spill] sm:$0xff] }
 0x19d   : > { %v2131_v16 = vadd.f32 %v2130_v39, %v3915_v58  ;;  %v2391_v35 = vadd.f32 %v2390_v14, %v2264_v50  ;;  %v2278_v14 = vmul.f32 %v4264_v60, %v4264_v60  ;;  %v4265_v39 = vld [vmem:[#allocation5_spill] sm:$0xff] }
 0x19f   : > { %v2392_v30 = vadd.f32 %v2391_v35, %v2265_v41  ;;  %v2132_v37 = vadd.f32 %v2131_v16, %v3923_v20  ;;  %v2279_v16 = vmul.f32 %v4265_v39, %v4265_v39 }
 0x1a1   : > { %v2133_v17 = vadd.f32 %v3912_v48, %v2132_v37  ;;  %v2393_v32 = vadd.f32 %v2392_v30, %v2266_v54  ;;  %v2271_v48 = vmul.f32 %v3928_v34, %v3928_v34  ;;  %v4266_v30 = vld [vmem:[#allocation7_spill] sm:$0xff] }
 0x1a2   : > { %v2280_v37 = vmul.f32 %v4266_v30, %v4266_v30 }
 0x1a3   : > { %v2394_v11 = vadd.f32 %v2393_v32, %v2267_v6  ;;  %v2134_v53 = vadd.f32 %v3918_v8, %v2133_v17  ;;  %v2272_v8 = vmul.f32 %v3934_v56, %v3934_v56  ;;  %v2281_v32 = vmul.f32 %v3979_v2, %v3979_v2 }
 0x1a5   : > { %v2135_v58 = vadd.f32 %v2134_v53, %v3931_v44  ;;  %v2395_v13 = vadd.f32 %v2394_v11, %v2268_v27 }
 0x1a7   : > { %v2396_v55 = vadd.f32 %v2395_v13, %v2269_v46  ;;  %v2136_v20 = vadd.f32 %v2135_v58, %v3939_v12  ;;  %v4260_v12 = vld [vmem:[#allocation4_spill] sm:$0xff]  ;;  %v2282_v58 = vmul.f32 %v3987_v38, %v3987_v38  ;;  %v2283_v46 = vmul.f32 %v3976_v31, %v3976_v31 }
 0x1a8   : > { %v2274_v15 = vmul.f32 %v4260_v12, %v4260_v12 }
 0x1a9   : > { %v2137_v21 = vadd.f32 %v3928_v34, %v2136_v20  ;;  %v2397_v29 = vadd.f32 %v2396_v55, %v2270_v7  ;;  %v4261_v34 = vld [vmem:[#allocation2_spill] sm:$0xff]  ;;  %v2284_v20 = vmul.f32 %v3982_v9, %v3982_v9 }
 0x1aa   : > { %v2275_v4 = vmul.f32 %v4261_v34, %v4261_v34 }
 0x1ab   : > { %v2398_v10 = vadd.f32 %v2397_v29, %v2271_v48  ;;  %v2138_v24 = vadd.f32 %v3934_v56, %v2137_v21  ;;  %v2276_v56 = vmul.f32 %v4262_v23, %v4262_v23  ;;  %v2285_v21 = vmul.f32 %v3998_v22, %v3998_v22 }
 0x1ad   : > { %v2139_v44 = vadd.f32 %v2138_v24, %v3947_v40  ;;  %v2399_v62 = vadd.f32 %v2398_v10, %v2272_v8  ;;  %v4263_v40 = vld [vmem:[#allocation6_spill] sm:$0xff]  ;;  %v2286_v10 = vmul.f32 %v4010_v49, %v4010_v49 }
 0x1ae   : > { %v2277_v63 = vmul.f32 %v4263_v40, %v4263_v40 }
 0x1af   : > { %v2400_v5 = vadd.f32 %v2399_v62, %v2273_v26  ;;  %v2140_v47 = vadd.f32 %v2139_v44, %v4260_v12 }
 0x1b1   : > { %v2141_v25 = vadd.f32 %v4261_v34, %v2140_v47  ;;  %v2401_v42 = vadd.f32 %v2400_v5, %v2274_v15  ;;  %v2289_v5 = vmul.f32 %v4024_v45, %v4024_v45  ;;  %v2290_v15 = vmul.f32 %v4036_v52, %v4036_v52 }
 0x1b3   : > { %v2402_v3 = vadd.f32 %v2401_v42, %v2275_v4  ;;  %v2142_v28 = vadd.f32 %v4262_v23, %v2141_v25  ;;  %v2293_v23 = vmul.f32 %v4050_v57, %v4050_v57 }
 0x1b5   : > { %v2143_v59 = vadd.f32 %v2142_v28, %v4263_v40  ;;  %v2403_v33 = vadd.f32 %v2402_v3, %v2276_v56  ;;  %v2295_v28 = vmul.f32 %v4044_v19, %v4044_v19 }
 0x1b7   : > { %v2404_v18 = vadd.f32 %v2403_v33, %v2277_v63  ;;  %v2144_v50 = vadd.f32 %v2143_v59, %v4264_v60 }
 0x1b9   : > { %v2145_v41 = vadd.f32 %v4265_v39, %v2144_v50  ;;  %v2405_v35 = vadd.f32 %v2404_v18, %v2278_v14 }
 0x1bb   : > { %v2406_v54 = vadd.f32 %v2405_v35, %v2279_v16  ;;  %v2146_v6 = vadd.f32 %v4266_v30, %v2145_v41 }
 0x1bd   : > { %v2147_v17 = vadd.f32 %v2146_v6, %v3979_v2  ;;  %v2407_v27 = vadd.f32 %v2406_v54, %v2280_v37 }
 0x1bf   : > { %v2408_v11 = vadd.f32 %v2407_v27, %v2281_v32  ;;  %v2148_v53 = vadd.f32 %v2147_v17, %v3987_v38 }
 0x1c1   : > { %v2149_v13 = vadd.f32 %v3976_v31, %v2148_v53  ;;  %v2409_v55 = vadd.f32 %v2408_v11, %v2282_v58  ;;  %v2287_v31 = vmul.f32 %v3992_v51, %v3992_v51 }
 0x1c3   : > { %v2410_v7 = vadd.f32 %v2409_v55, %v2283_v46  ;;  %v2150_v48 = vadd.f32 %v3982_v9, %v2149_v13  ;;  %v2288_v9 = vmul.f32 %v4003_v0, %v4003_v0 }
 0x1c5   : > { %v2151_v2 = vadd.f32 %v2150_v48, %v3998_v22  ;;  %v2411_v29 = vadd.f32 %v2410_v7, %v2284_v20 }
 0x1c7   : > { %v2412_v8 = vadd.f32 %v2411_v29, %v2285_v21  ;;  %v2152_v38 = vadd.f32 %v2151_v2, %v4010_v49 }
 0x1c9   : > { %v2153_v24 = vadd.f32 %v3992_v51, %v2152_v38  ;;  %v2413_v44 = vadd.f32 %v2412_v8, %v2286_v10  ;;  %v2291_v51 = vmul.f32 %v4018_v36, %v4018_v36 }
 0x1cb   : > { %v2414_v26 = vadd.f32 %v2413_v44, %v2287_v31  ;;  %v2154_v62 = vadd.f32 %v4003_v0, %v2153_v24  ;;  %v2292_v0 = vmul.f32 %v4029_v61, %v4029_v61 }
 0x1cd   : > { %v2155_v22 = vadd.f32 %v2154_v62, %v4024_v45  ;;  %v2415_v12 = vadd.f32 %v2414_v26, %v2288_v9 }
 0x1cf   : > { %v2416_v47 = vadd.f32 %v2415_v12, %v2289_v5  ;;  %v2156_v49 = vadd.f32 %v2155_v22, %v4036_v52 }
 0x1d1   : > { %v2157_v34 = vadd.f32 %v4018_v36, %v2156_v49  ;;  %v2417_v4 = vadd.f32 %v2416_v47, %v2290_v15  ;;  %v2294_v36 = vmul.f32 %v4062_v43, %v4062_v43 }
 0x1d3   : > { %v2418_v25 = vadd.f32 %v2417_v4, %v2291_v51  ;;  %v2158_v45 = vadd.f32 %v4029_v61, %v2157_v34  ;;  %v2296_v61 = vmul.f32 %v4055_v1, %v4055_v1 }
 0x1d5   : > { %v2159_v42 = vadd.f32 %v2158_v45, %v4050_v57  ;;  %v2419_v56 = vadd.f32 %v2418_v25, %v2292_v0 }
 0x1d7   : > { %v2420_v52 = vadd.f32 %v2419_v56, %v2293_v23  ;;  %v2160_v3 = vadd.f32 %v2159_v42, %v4062_v43 }
 0x1d9   : > { %v2161_v40 = vadd.f32 %v4044_v19, %v2160_v3  ;;  %v2421_v59 = vadd.f32 %v2420_v52, %v2294_v36 }
 0x1db   : > { %v2162_v63 = vadd.f32 %v4055_v1, %v2161_v40  ;;  %v2422_v57 = vadd.f32 %v2421_v59, %v2295_v28 }
 0x1dd   : > { %v2163_v33 = vrot.slane %v2162_v63, 4  ;;  %v2423_v18 = vadd.f32 %v2422_v57, %v2296_v61 }
 0x1df   : > { %v2164_v60 = vadd.f32 %v2163_v33, %v2162_v63  ;;  %v2424_v50 = vrot.slane %v2423_v18, 4 }
 0x1e1   : > { %v2165_v14 = vrot.slane %v2164_v60, 2  ;;  %v2425_v39 = vadd.f32 %v2424_v50, %v2423_v18 }
 0x1e3   : > { %v2166_v43 = vadd.f32 %v2165_v14, %v2164_v60  ;;  %v2426_v16 = vrot.slane %v2425_v39, 2 }
 0x1e5   : > { %v2167_v41 = vrot.slane %v2166_v43, 1  ;;  %v2427_v35 = vadd.f32 %v2426_v16, %v2425_v39 }
 0x1e7   : > { %v2428_v19 = vrot.slane %v2427_v35, 1  ;;  %v2168_v30 = vadd.f32 %v2167_v41, %v2166_v43 }
 0x1e9   : > { %v2429_v37 = vadd.f32 %v2428_v19, %v2427_v35 }
 0x1eb   : > { %v2431_v1 = vsel %vm2430_vm1, %v2168_v30, %v2429_v37 }
 0x1ec   : > { %v2433_v54 = vsel %vm2432_vm2, %v2431_v1, 0.0 }
 0x1ed   : > { %2434 = vst [vmem:[%s184_s4] sm:$0xff] %v2433_v54 }
 0x1ee PF: > { %s14_s12 = sadd.s32 1, %s3592_s12  }
 0x1ef   : > { %p11_p5 = scmp.ge.s32.totalorder %s14_s12, 4  }
 0x1f1   :  { %13 = sbr.rel (!%p11_p5) target bundleno = 1 (0x1), region = 70 }

// kernel: discriminator_forward.11
= control target key start
LH: loop header
LB: loop body
LE: loop exit
PB: predicated region body
PF: predicated region fallthrough
CT: control target
= control target key end

     0   :  { %vm1145_vm0 = vcmask 1040384   ;;  %vm1147_vm1 = vcmask 1041408   ;;  %s2124_s1 = inlined_call_operand.vmem [shape: bf16[128,128], index: 1, kind: input, shape index: {}]   ;;  %s2125_s0 = inlined_call_operand.vmem [shape: bf16[512,128], index: 0, kind: input, shape index: {}]   ;;  %s2126_s2 = inlined_call_operand.vmem [shape: bf16[512,128], index: 2, kind: output, shape index: {0}]   ;;  %s2127_s3 = inlined_call_operand.vmem [shape: f32[8,128], index: 3, kind: output, shape index: {1}]  }
   0x1   :  { %v1653_v0 = vld [vmem:[%s2124_s1 + $0x38] sm:$0xff]   ;;  %v1654_v1 = vld [vmem:[%s2124_s1 + $0x30] sm:$0xff]   ;;  %v1655_v2 = vld [vmem:[%s2124_s1 + $0x28] sm:$0xff]  }
   0x2   :  { %1557 = vmatprep.subr.bf16.mxu0 %v1653_v0  ;;  %1637 = vmatprep.subr.bf16.mxu1 %v1653_v0  ;;  %v1656_v3 = vld [vmem:[%s2124_s1 + $0x20] sm:$0xff]   ;;  %v1657_v5 = vld [vmem:[%s2124_s1 + $0x18] sm:$0xff]   ;;  %v1658_v6 = vld [vmem:[%s2124_s1 + $0x10] sm:$0xff]  }
   0x3   :  { %1558 = vmatpush3.bf16.msra.mxu0 %v1653_v0  ;;  %1645 = vmatpush3.bf16.msra.mxu1 %v1653_v0  ;;  %v1661_v4 = vld [vmem:[%s2125_s0] sm:$0xff]   ;;  %v1659_v7 = vld [vmem:[%s2124_s1 + $0x8] sm:$0xff]   ;;  %v1663_v11 = vld [vmem:[%s2125_s0 + $0x10] sm:$0xff]  }
   0x4   :  { %1559 = vmatprep.subr.bf16.mxu0 %v1654_v1  ;;  %1638 = vmatprep.subr.bf16.mxu1 %v1654_v1  ;;  %v1660_v8 = vld [vmem:[%s2124_s1] sm:$0xff]   ;;  %v1662_v10 = vld [vmem:[%s2125_s0 + $0x8] sm:$0xff]   ;;  %v1679_v13 = vld [vmem:[%s2125_s0 + $0x90] sm:$0xff]  }
   0x5   :  { %1573 = vmatprep.mubr.bf16.mxu0 %v1661_v4  ;;  %v1677_v9 = vld [vmem:[%s2125_s0 + $0x80] sm:$0xff]   ;;  %v1678_v12 = vld [vmem:[%s2125_s0 + $0x88] sm:$0xff]   ;;  %v1664_v14 = vld [vmem:[%s2125_s0 + $0x18] sm:$0xff]  }
   0x6   :  { %1605 = vmatprep.mubr.bf16.mxu1 %v1677_v9  ;;  %v1665_v15 = vld [vmem:[%s2125_s0 + $0x20] sm:$0xff]   ;;  %v1680_v16 = vld [vmem:[%s2125_s0 + $0x98] sm:$0xff]   ;;  %v1666_v18 = vld [vmem:[%s2125_s0 + $0x28] sm:$0xff]  }
   0x7   :  { %1560 = vmatpush3.bf16.msra.mxu0 %v1654_v1  ;;  %1646 = vmatpush3.bf16.msra.mxu1 %v1654_v1  ;;  %v1681_v17 = vld [vmem:[%s2125_s0 + $0xa0] sm:$0xff]   ;;  %v1682_v19 = vld [vmem:[%s2125_s0 + $0xa8] sm:$0xff]   ;;  %v1667_v20 = vld [vmem:[%s2125_s0 + $0x30] sm:$0xff]  }
   0x8   :  { %1561 = vmatprep.subr.bf16.mxu0 %v1655_v2  ;;  %1639 = vmatprep.subr.bf16.mxu1 %v1655_v2  ;;  %v1683_v21 = vld [vmem:[%s2125_s0 + $0xb0] sm:$0xff]   ;;  %v1668_v22 = vld [vmem:[%s2125_s0 + $0x38] sm:$0xff]   ;;  %v1669_v24 = vld [vmem:[%s2125_s0 + $0x40] sm:$0xff]  }
   0x9   :  { %v1684_v23 = vld [vmem:[%s2125_s0 + $0xb8] sm:$0xff]   ;;  %v1685_v25 = vld [vmem:[%s2125_s0 + $0xc0] sm:$0xff]   ;;  %v1670_v26 = vld [vmem:[%s2125_s0 + $0x48] sm:$0xff]  }
   0xa   :  { %v1686_v27 = vld [vmem:[%s2125_s0 + $0xc8] sm:$0xff]   ;;  %v1671_v28 = vld [vmem:[%s2125_s0 + $0x50] sm:$0xff]   ;;  %v1672_v30 = vld [vmem:[%s2125_s0 + $0x58] sm:$0xff]  }
   0xb   :  { %1562 = vmatpush3.bf16.msra.mxu0 %v1655_v2  ;;  %1647 = vmatpush3.bf16.msra.mxu1 %v1655_v2  ;;  %v1687_v29 = vld [vmem:[%s2125_s0 + $0xd0] sm:$0xff]   ;;  %v1688_v31 = vld [vmem:[%s2125_s0 + $0xd8] sm:$0xff]   ;;  %v1673_v32 = vld [vmem:[%s2125_s0 + $0x60] sm:$0xff]  }
   0xc   :  { %1563 = vmatprep.subr.bf16.mxu0 %v1656_v3  ;;  %1640 = vmatprep.subr.bf16.mxu1 %v1656_v3  ;;  %v1689_v33 = vld [vmem:[%s2125_s0 + $0xe0] sm:$0xff]   ;;  %v1674_v34 = vld [vmem:[%s2125_s0 + $0x68] sm:$0xff]   ;;  %v1675_v36 = vld [vmem:[%s2125_s0 + $0x70] sm:$0xff]  }
   0xd   :  { %v1690_v35 = vld [vmem:[%s2125_s0 + $0xe8] sm:$0xff]   ;;  %v1691_v37 = vld [vmem:[%s2125_s0 + $0xf0] sm:$0xff]   ;;  %v1676_v38 = vld [vmem:[%s2125_s0 + $0x78] sm:$0xff]  }
   0xe   :  { %v1692_v39 = vld [vmem:[%s2125_s0 + $0xf8] sm:$0xff]  }
   0xf   :  { %1564 = vmatpush3.bf16.msra.mxu0 %v1656_v3  ;;  %1648 = vmatpush3.bf16.msra.mxu1 %v1656_v3 }
  0x10   :  { %1565 = vmatprep.subr.bf16.mxu0 %v1657_v5  ;;  %1641 = vmatprep.subr.bf16.mxu1 %v1657_v5 }
  0x13   :  { %1566 = vmatpush3.bf16.msra.mxu0 %v1657_v5  ;;  %1649 = vmatpush3.bf16.msra.mxu1 %v1657_v5 }
  0x14   :  { %1567 = vmatprep.subr.bf16.mxu0 %v1658_v6  ;;  %1642 = vmatprep.subr.bf16.mxu1 %v1658_v6 }
  0x17   :  { %1568 = vmatpush3.bf16.msra.mxu0 %v1658_v6  ;;  %1650 = vmatpush3.bf16.msra.mxu1 %v1658_v6 }
  0x18   :  { %1569 = vmatprep.subr.bf16.mxu0 %v1659_v7  ;;  %1643 = vmatprep.subr.bf16.mxu1 %v1659_v7 }
  0x1b   :  { %1570 = vmatpush3.bf16.msra.mxu0 %v1659_v7  ;;  %1651 = vmatpush3.bf16.msra.mxu1 %v1659_v7 }
  0x1c   :  { %1571 = vmatprep.subr.bf16.mxu0 %v1660_v8  ;;  %1644 = vmatprep.subr.bf16.mxu1 %v1660_v8 }
  0x1f   :  { %1572 = vmatpush3.bf16.msra.mxu0 %v1660_v8  ;;  %1652 = vmatpush3.bf16.msra.mxu1 %v1660_v8 }
  0x22   :  { %1574 = vmatmul.mubr.bf16.vlgmr.msra.gmra.mxu0 %v1662_v10  ;;  %1606 = vmatmul.mubr.bf16.vlgmr.msra.gmra.mxu1 %v1678_v12 }
  0x23   :  { %1577 = vmatprep.mubr.bf16.mxu0 %v1663_v11  ;;  %1609 = vmatprep.mubr.bf16.mxu1 %v1679_v13 }
  0x2a   :  { %1578 = vmatmul.mubr.bf16.gmra.mxu0 %v1664_v14  ;;  %1610 = vmatmul.mubr.bf16.gmra.mxu1 %v1680_v16 }
  0x2b   :  { %1581 = vmatprep.mubr.bf16.mxu0 %v1665_v15  ;;  %1613 = vmatprep.mubr.bf16.mxu1 %v1681_v17 }
  0x32   :  { %1582 = vmatmul.mubr.bf16.gmra.mxu0 %v1666_v18  ;;  %1614 = vmatmul.mubr.bf16.gmra.mxu1 %v1682_v19 }
  0x33   :  { %1585 = vmatprep.mubr.bf16.mxu0 %v1667_v20  ;;  %1617 = vmatprep.mubr.bf16.mxu1 %v1683_v21 }
  0x3a   :  { %1586 = vmatmul.mubr.bf16.gmra.mxu0 %v1668_v22  ;;  %1618 = vmatmul.mubr.bf16.gmra.mxu1 %v1684_v23 }
  0x3b   :  { %1589 = vmatprep.mubr.bf16.mxu0 %v1669_v24  ;;  %1621 = vmatprep.mubr.bf16.mxu1 %v1685_v25 }
  0x42   :  { %1590 = vmatmul.mubr.bf16.gmra.mxu0 %v1670_v26  ;;  %1622 = vmatmul.mubr.bf16.gmra.mxu1 %v1686_v27 }
  0x43   :  { %1593 = vmatprep.mubr.bf16.mxu0 %v1671_v28  ;;  %1625 = vmatprep.mubr.bf16.mxu1 %v1687_v29 }
  0x4a   :  { %1594 = vmatmul.mubr.bf16.gmra.mxu0 %v1672_v30  ;;  %1626 = vmatmul.mubr.bf16.gmra.mxu1 %v1688_v31 }
  0x4b   :  { %1597 = vmatprep.mubr.bf16.mxu0 %v1673_v32  ;;  %1629 = vmatprep.mubr.bf16.mxu1 %v1689_v33 }
  0x52   :  { %1598 = vmatmul.mubr.bf16.gmra.mxu0 %v1674_v34  ;;  %1630 = vmatmul.mubr.bf16.gmra.mxu1 %v1690_v35 }
  0x53   :  { %1601 = vmatprep.mubr.bf16.mxu0 %v1675_v36  ;;  %1633 = vmatprep.mubr.bf16.mxu1 %v1691_v37 }
  0x5a   :  { %1602 = vmatmul.mubr.bf16.gmra.mxu0 %v1676_v38  ;;  %1634 = vmatmul.mubr.bf16.gmra.mxu1 %v1692_v39 }
  0xe2   :  { %v1575_v40 = vpop.f32.mrf.mxu0  ;;  %v1833_v41 = vpop.f32.mrf.mxu1 }
  0xe3   :  { %v1014_v57 = vmul.f32 %v1575_v40, %v1575_v40 }
  0xe4   :  { %v368_v42 = vpop.f32.mrf.mxu0  ;;  %v1835_v43 = vpop.f32.mrf.mxu1 }
  0xe5   :  { %v1012_v48 = vmul.f32 %v368_v42, %v368_v42 }
  0xe6   :  { %v1576_v44 = vpop.f32.mrf.mxu0  ;;  %v1837_v45 = vpop.f32.mrf.mxu1 }
  0xe7   :  { %v1334_v46 = vpack.c.bf16 %v1576_v44, %v1575_v40  ;;  %v1414_v47 = vpack.c.bf16 %v1837_v45, %v1833_v41  ;;  %v1015_v62 = vmul.f32 %v1576_v44, %v1576_v44 }
  0xe8   :  { %v371_v49 = vpop.f32.mrf.mxu0  ;;  %v1841_v50 = vpop.f32.mrf.mxu1 }
  0xe9   :  { %1486 = vst [vmem:[%s2126_s2 + $0x8] sm:$0xff] %v1334_v46   ;;  %v1329_v51 = vpack.c.bf16 %v371_v49, %v368_v42  ;;  %v943_v52 = vadd.f32 %v371_v49, %v368_v42  ;;  %v1013_v53 = vmul.f32 %v371_v49, %v371_v49  ;;  %1502 = vst [vmem:[%s2126_s2 + $0x88] sm:$0xff] %v1414_v47  }
  0xea   :  { %v1409_v54 = vpack.c.bf16 %v1841_v50, %v1835_v43  ;;  %v1579_v55 = vpop.f32.mrf.mxu0  ;;  %v1851_v56 = vpop.f32.mrf.mxu1 }
  0xeb   :  { %1330 = vst [vmem:[%s2126_s2] sm:$0xff] %v1329_v51   ;;  %v944_v58 = vadd.f32 %v1575_v40, %v943_v52  ;;  %v1076_v59 = vadd.f32 %v1013_v53, %v1012_v48  ;;  %v1018_v17 = vmul.f32 %v1579_v55, %v1579_v55 }
  0xec   :  { %1501 = vst [vmem:[%s2126_s2 + $0x80] sm:$0xff] %v1409_v54   ;;  %v384_v60 = vpop.f32.mrf.mxu0  ;;  %v1859_v61 = vpop.f32.mrf.mxu1 }
  0xed   :  { %v1077_v63 = vadd.f32 %v1076_v59, %v1014_v57  ;;  %v945_v0 = vadd.f32 %v1576_v44, %v944_v58  ;;  %v1016_v4 = vmul.f32 %v384_v60, %v384_v60 }
  0xee   :  { %v1580_v1 = vpop.f32.mrf.mxu0  ;;  %v1861_v2 = vpop.f32.mrf.mxu1 }
  0xef   :  { %v946_v3 = vadd.f32 %v945_v0, %v384_v60  ;;  %v1078_v5 = vadd.f32 %v1077_v63, %v1015_v62  ;;  %v1344_v6 = vpack.c.bf16 %v1580_v1, %v1579_v55  ;;  %v1424_v8 = vpack.c.bf16 %v1861_v2, %v1851_v56 }
  0xf0   :  { %v387_v7 = vpop.f32.mrf.mxu0  ;;  %v1865_v9 = vpop.f32.mrf.mxu1  ;;  %v1019_v22 = vmul.f32 %v1580_v1, %v1580_v1 }
  0xf1   :  { %v1079_v10 = vadd.f32 %v1078_v5, %v1016_v4  ;;  %1488 = vst [vmem:[%s2126_s2 + $0x18] sm:$0xff] %v1344_v6   ;;  %v1339_v11 = vpack.c.bf16 %v387_v7, %v384_v60  ;;  %v947_v12 = vadd.f32 %v946_v3, %v387_v7  ;;  %v1017_v13 = vmul.f32 %v387_v7, %v387_v7 }
  0xf2   :  { %v1583_v14 = vpop.f32.mrf.mxu0  ;;  %1504 = vst [vmem:[%s2126_s2 + $0x98] sm:$0xff] %v1424_v8   ;;  %v1419_v15 = vpack.c.bf16 %v1865_v9, %v1859_v61  ;;  %v1875_v16 = vpop.f32.mrf.mxu1 }
  0xf3   :  { %1487 = vst [vmem:[%s2126_s2 + $0x10] sm:$0xff] %v1339_v11   ;;  %v948_v18 = vadd.f32 %v1579_v55, %v947_v12  ;;  %v1080_v19 = vadd.f32 %v1079_v10, %v1017_v13  ;;  %v1022_v42 = vmul.f32 %v1583_v14, %v1583_v14 }
  0xf4   :  { %v400_v20 = vpop.f32.mrf.mxu0  ;;  %1503 = vst [vmem:[%s2126_s2 + $0x90] sm:$0xff] %v1419_v15   ;;  %v1883_v21 = vpop.f32.mrf.mxu1 }
  0xf5   :  { %v1081_v23 = vadd.f32 %v1080_v19, %v1018_v17  ;;  %v949_v24 = vadd.f32 %v1580_v1, %v948_v18  ;;  %v1020_v28 = vmul.f32 %v400_v20, %v400_v20 }
  0xf6   :  { %v1584_v25 = vpop.f32.mrf.mxu0  ;;  %v1885_v26 = vpop.f32.mrf.mxu1 }
  0xf7   :  { %v950_v27 = vadd.f32 %v949_v24, %v400_v20  ;;  %v1082_v29 = vadd.f32 %v1081_v23, %v1019_v22  ;;  %v1354_v30 = vpack.c.bf16 %v1584_v25, %v1583_v14  ;;  %v1434_v32 = vpack.c.bf16 %v1885_v26, %v1875_v16 }
  0xf8   :  { %v403_v31 = vpop.f32.mrf.mxu0  ;;  %v1889_v33 = vpop.f32.mrf.mxu1  ;;  %v1023_v49 = vmul.f32 %v1584_v25, %v1584_v25 }
  0xf9   :  { %v1083_v34 = vadd.f32 %v1082_v29, %v1020_v28  ;;  %1490 = vst [vmem:[%s2126_s2 + $0x28] sm:$0xff] %v1354_v30   ;;  %v1349_v35 = vpack.c.bf16 %v403_v31, %v400_v20  ;;  %v951_v36 = vadd.f32 %v950_v27, %v403_v31  ;;  %v1021_v37 = vmul.f32 %v403_v31, %v403_v31 }
  0xfa   :  { %v1587_v38 = vpop.f32.mrf.mxu0  ;;  %1506 = vst [vmem:[%s2126_s2 + $0xa8] sm:$0xff] %v1434_v32   ;;  %v1429_v39 = vpack.c.bf16 %v1889_v33, %v1883_v21  ;;  %v1899_v40 = vpop.f32.mrf.mxu1 }
  0xfb   :  { %1489 = vst [vmem:[%s2126_s2 + $0x20] sm:$0xff] %v1349_v35   ;;  %v952_v44 = vadd.f32 %v1583_v14, %v951_v36  ;;  %v1084_v46 = vadd.f32 %v1083_v34, %v1021_v37  ;;  %v1026_v8 = vmul.f32 %v1587_v38, %v1587_v38 }
  0xfc   :  { %v416_v47 = vpop.f32.mrf.mxu0  ;;  %1505 = vst [vmem:[%s2126_s2 + $0xa0] sm:$0xff] %v1429_v39   ;;  %v1907_v48 = vpop.f32.mrf.mxu1 }
  0xfd   :  { %v1085_v51 = vadd.f32 %v1084_v46, %v1022_v42  ;;  %v953_v52 = vadd.f32 %v1584_v25, %v952_v44  ;;  %v1024_v57 = vmul.f32 %v416_v47, %v416_v47 }
  0xfe   :  { %v1588_v53 = vpop.f32.mrf.mxu0  ;;  %v1909_v54 = vpop.f32.mrf.mxu1 }
  0xff   :  { %v954_v55 = vadd.f32 %v953_v52, %v416_v47  ;;  %v1086_v58 = vadd.f32 %v1085_v51, %v1023_v49  ;;  %v1364_v59 = vpack.c.bf16 %v1588_v53, %v1587_v38  ;;  %v1444_v62 = vpack.c.bf16 %v1909_v54, %v1899_v40 }
 0x100   :  { %v419_v60 = vpop.f32.mrf.mxu0  ;;  %v1913_v63 = vpop.f32.mrf.mxu1  ;;  %v1027_v14 = vmul.f32 %v1588_v53, %v1588_v53 }
 0x101   :  { %v1087_v0 = vadd.f32 %v1086_v58, %v1024_v57  ;;  %1492 = vst [vmem:[%s2126_s2 + $0x38] sm:$0xff] %v1364_v59   ;;  %v1359_v1 = vpack.c.bf16 %v419_v60, %v416_v47  ;;  %v955_v3 = vadd.f32 %v954_v55, %v419_v60  ;;  %v1025_v4 = vmul.f32 %v419_v60, %v419_v60 }
 0x102   :  { %v1591_v5 = vpop.f32.mrf.mxu0  ;;  %1508 = vst [vmem:[%s2126_s2 + $0xb8] sm:$0xff] %v1444_v62   ;;  %v1439_v6 = vpack.c.bf16 %v1913_v63, %v1907_v48  ;;  %v1923_v7 = vpop.f32.mrf.mxu1 }
 0x103   :  { %1491 = vst [vmem:[%s2126_s2 + $0x30] sm:$0xff] %v1359_v1   ;;  %v956_v10 = vadd.f32 %v1587_v38, %v955_v3  ;;  %v1088_v11 = vadd.f32 %v1087_v0, %v1025_v4  ;;  %v1030_v37 = vmul.f32 %v1591_v5, %v1591_v5 }
 0x104   :  { %v432_v12 = vpop.f32.mrf.mxu0  ;;  %1507 = vst [vmem:[%s2126_s2 + $0xb0] sm:$0xff] %v1439_v6   ;;  %v1931_v13 = vpop.f32.mrf.mxu1 }
 0x105   :  { %v1089_v15 = vadd.f32 %v1088_v11, %v1026_v8  ;;  %v957_v17 = vadd.f32 %v1588_v53, %v956_v10  ;;  %v1028_v22 = vmul.f32 %v432_v12, %v432_v12 }
 0x106   :  { %v1592_v18 = vpop.f32.mrf.mxu0  ;;  %v1933_v19 = vpop.f32.mrf.mxu1 }
 0x107   :  { %v958_v20 = vadd.f32 %v957_v17, %v432_v12  ;;  %v1090_v23 = vadd.f32 %v1089_v15, %v1027_v14  ;;  %v1374_v24 = vpack.c.bf16 %v1592_v18, %v1591_v5  ;;  %v1454_v27 = vpack.c.bf16 %v1933_v19, %v1923_v7 }
 0x108   :  { %v435_v25 = vpop.f32.mrf.mxu0  ;;  %v1937_v28 = vpop.f32.mrf.mxu1  ;;  %v1031_v46 = vmul.f32 %v1592_v18, %v1592_v18 }
 0x109   :  { %v1091_v29 = vadd.f32 %v1090_v23, %v1028_v22  ;;  %1494 = vst [vmem:[%s2126_s2 + $0x48] sm:$0xff] %v1374_v24   ;;  %v1369_v30 = vpack.c.bf16 %v435_v25, %v432_v12  ;;  %v959_v31 = vadd.f32 %v958_v20, %v435_v25  ;;  %v1029_v32 = vmul.f32 %v435_v25, %v435_v25 }
 0x10a   :  { %v1595_v34 = vpop.f32.mrf.mxu0  ;;  %1510 = vst [vmem:[%s2126_s2 + $0xc8] sm:$0xff] %v1454_v27   ;;  %v1449_v35 = vpack.c.bf16 %v1937_v28, %v1931_v13  ;;  %v1947_v36 = vpop.f32.mrf.mxu1 }
 0x10b   :  { %1493 = vst [vmem:[%s2126_s2 + $0x40] sm:$0xff] %v1369_v30   ;;  %v960_v38 = vadd.f32 %v1591_v5, %v959_v31  ;;  %v1092_v39 = vadd.f32 %v1091_v29, %v1029_v32  ;;  %v1034_v10 = vmul.f32 %v1595_v34, %v1595_v34 }
 0x10c   :  { %v448_v42 = vpop.f32.mrf.mxu0  ;;  %1509 = vst [vmem:[%s2126_s2 + $0xc0] sm:$0xff] %v1449_v35   ;;  %v1955_v44 = vpop.f32.mrf.mxu1 }
 0x10d   :  { %v1093_v47 = vadd.f32 %v1092_v39, %v1030_v37  ;;  %v961_v49 = vadd.f32 %v1592_v18, %v960_v38  ;;  %v1032_v55 = vmul.f32 %v448_v42, %v448_v42 }
 0x10e   :  { %v1596_v51 = vpop.f32.mrf.mxu0  ;;  %v1957_v52 = vpop.f32.mrf.mxu1 }
 0x10f   :  { %v962_v53 = vadd.f32 %v961_v49, %v448_v42  ;;  %v1094_v57 = vadd.f32 %v1093_v47, %v1031_v46  ;;  %v1384_v58 = vpack.c.bf16 %v1596_v51, %v1595_v34  ;;  %v1464_v60 = vpack.c.bf16 %v1957_v52, %v1947_v36 }
 0x110   :  { %v451_v59 = vpop.f32.mrf.mxu0  ;;  %v1961_v62 = vpop.f32.mrf.mxu1  ;;  %v1035_v17 = vmul.f32 %v1596_v51, %v1596_v51 }
 0x111   :  { %v1095_v0 = vadd.f32 %v1094_v57, %v1032_v55  ;;  %1496 = vst [vmem:[%s2126_s2 + $0x58] sm:$0xff] %v1384_v58   ;;  %v1379_v1 = vpack.c.bf16 %v451_v59, %v448_v42  ;;  %v963_v3 = vadd.f32 %v962_v53, %v451_v59  ;;  %v1033_v4 = vmul.f32 %v451_v59, %v451_v59 }
 0x112   :  { %v1599_v5 = vpop.f32.mrf.mxu0  ;;  %1512 = vst [vmem:[%s2126_s2 + $0xd8] sm:$0xff] %v1464_v60   ;;  %v1459_v6 = vpack.c.bf16 %v1961_v62, %v1955_v44  ;;  %v1971_v8 = vpop.f32.mrf.mxu1 }
 0x113   :  { %1495 = vst [vmem:[%s2126_s2 + $0x50] sm:$0xff] %v1379_v1   ;;  %v964_v11 = vadd.f32 %v1595_v34, %v963_v3  ;;  %v1096_v12 = vadd.f32 %v1095_v0, %v1033_v4  ;;  %v1038_v47 = vmul.f32 %v1599_v5, %v1599_v5 }
 0x114   :  { %v464_v14 = vpop.f32.mrf.mxu0  ;;  %1511 = vst [vmem:[%s2126_s2 + $0xd0] sm:$0xff] %v1459_v6   ;;  %v1979_v15 = vpop.f32.mrf.mxu1 }
 0x115   :  { %v1097_v18 = vadd.f32 %v1096_v12, %v1034_v10  ;;  %v965_v20 = vadd.f32 %v1596_v51, %v964_v11  ;;  %v1036_v25 = vmul.f32 %v464_v14, %v464_v14 }
 0x116   :  { %v1600_v22 = vpop.f32.mrf.mxu0  ;;  %v1981_v23 = vpop.f32.mrf.mxu1 }
 0x117   :  { %v966_v24 = vadd.f32 %v965_v20, %v464_v14  ;;  %v1098_v27 = vadd.f32 %v1097_v18, %v1035_v17  ;;  %v1394_v29 = vpack.c.bf16 %v1600_v22, %v1599_v5  ;;  %v1474_v31 = vpack.c.bf16 %v1981_v23, %v1971_v8 }
 0x118   :  { %v467_v30 = vpop.f32.mrf.mxu0  ;;  %v1985_v32 = vpop.f32.mrf.mxu1  ;;  %v1039_v57 = vmul.f32 %v1600_v22, %v1600_v22 }
 0x119   :  { %v1099_v34 = vadd.f32 %v1098_v27, %v1036_v25  ;;  %1498 = vst [vmem:[%s2126_s2 + $0x68] sm:$0xff] %v1394_v29   ;;  %v1389_v35 = vpack.c.bf16 %v467_v30, %v464_v14  ;;  %v967_v37 = vadd.f32 %v966_v24, %v467_v30  ;;  %v1037_v38 = vmul.f32 %v467_v30, %v467_v30 }
 0x11a   :  { %v1603_v39 = vpop.f32.mrf.mxu0  ;;  %1514 = vst [vmem:[%s2126_s2 + $0xe8] sm:$0xff] %v1474_v31   ;;  %v1469_v42 = vpack.c.bf16 %v1985_v32, %v1979_v15  ;;  %v1995_v46 = vpop.f32.mrf.mxu1  ;;  %v1044_v31 = vmul.f32 %v1835_v43, %v1835_v43 }
 0x11b   :  { %1497 = vst [vmem:[%s2126_s2 + $0x60] sm:$0xff] %v1389_v35   ;;  %v968_v49 = vadd.f32 %v1599_v5, %v967_v37  ;;  %v1100_v51 = vadd.f32 %v1099_v34, %v1037_v38  ;;  %v1045_v38 = vmul.f32 %v1841_v50, %v1841_v50 }
 0x11c   :  { %v480_v53 = vpop.f32.mrf.mxu0  ;;  %1513 = vst [vmem:[%s2126_s2 + $0xe0] sm:$0xff] %v1469_v42   ;;  %v2003_v55 = vpop.f32.mrf.mxu1  ;;  %v1046_v42 = vmul.f32 %v1833_v41, %v1833_v41 }
 0x11d   :  { %v1101_v58 = vadd.f32 %v1100_v51, %v1038_v47  ;;  %v969_v59 = vadd.f32 %v1600_v22, %v968_v49  ;;  %v1040_v3 = vmul.f32 %v480_v53, %v480_v53  ;;  %v1042_v22 = vmul.f32 %v1603_v39, %v1603_v39 }
 0x11e   :  { %v1604_v60 = vpop.f32.mrf.mxu0  ;;  %v2005_v0 = vpop.f32.mrf.mxu1  ;;  %v1047_v51 = vmul.f32 %v1837_v45, %v1837_v45 }
 0x11f   :  { %v970_v1 = vadd.f32 %v969_v59, %v480_v53  ;;  %v1102_v4 = vadd.f32 %v1101_v58, %v1039_v57  ;;  %v1404_v6 = vpack.c.bf16 %v1604_v60, %v1603_v39  ;;  %v1484_v5 = vpack.c.bf16 %v2005_v0, %v1995_v46 }
 0x120   :  { %v483_v10 = vpop.f32.mrf.mxu0  ;;  %v2009_v11 = vpop.f32.mrf.mxu1  ;;  %v1043_v27 = vmul.f32 %v1604_v60, %v1604_v60  ;;  %v1048_v58 = vmul.f32 %v1859_v61, %v1859_v61 }
 0x121   :  { %v1103_v12 = vadd.f32 %v1102_v4, %v1040_v3  ;;  %1500 = vst [vmem:[%s2126_s2 + $0x78] sm:$0xff] %v1404_v6   ;;  %v1399_v14 = vpack.c.bf16 %v483_v10, %v480_v53  ;;  %v971_v17 = vadd.f32 %v970_v1, %v483_v10  ;;  %v1041_v18 = vmul.f32 %v483_v10, %v483_v10 }
 0x122   :  { %1516 = vst [vmem:[%s2126_s2 + $0xf8] sm:$0xff] %v1484_v5   ;;  %v1479_v20 = vpack.c.bf16 %v2009_v11, %v2003_v55  ;;  %v1049_v1 = vmul.f32 %v1865_v9, %v1865_v9  ;;  %v1052_v5 = vmul.f32 %v1883_v21, %v1883_v21 }
 0x123   :  { %1499 = vst [vmem:[%s2126_s2 + $0x70] sm:$0xff] %v1399_v14   ;;  %v972_v24 = vadd.f32 %v1603_v39, %v971_v17  ;;  %v1104_v25 = vadd.f32 %v1103_v12, %v1041_v18  ;;  %v1053_v17 = vmul.f32 %v1889_v33, %v1889_v33 }
 0x124   :  { %1515 = vst [vmem:[%s2126_s2 + $0xf0] sm:$0xff] %v1479_v20  }
 0x125   :  { %v973_v29 = vadd.f32 %v1604_v60, %v972_v24  ;;  %v1105_v30 = vadd.f32 %v1104_v25, %v1042_v22  ;;  %v1056_v25 = vmul.f32 %v1907_v48, %v1907_v48 }
 0x127   :  { %v1106_v34 = vadd.f32 %v1105_v30, %v1043_v27  ;;  %v974_v35 = vadd.f32 %v973_v29, %v1835_v43  ;;  %v1057_v30 = vmul.f32 %v1913_v63, %v1913_v63 }
 0x129   :  { %v975_v37 = vadd.f32 %v974_v35, %v1841_v50  ;;  %v1107_v39 = vadd.f32 %v1106_v34, %v1044_v31 }
 0x12b   :  { %v976_v47 = vadd.f32 %v1833_v41, %v975_v37  ;;  %v1108_v49 = vadd.f32 %v1107_v39, %v1045_v38  ;;  %v1050_v41 = vmul.f32 %v1851_v56, %v1851_v56  ;;  %v1060_v38 = vmul.f32 %v1931_v13, %v1931_v13 }
 0x12d   :  { %v1109_v53 = vadd.f32 %v1108_v49, %v1046_v42  ;;  %v977_v57 = vadd.f32 %v1837_v45, %v976_v47  ;;  %v1051_v45 = vmul.f32 %v1861_v2, %v1861_v2  ;;  %v1061_v47 = vmul.f32 %v1937_v28, %v1937_v28 }
 0x12f   :  { %v978_v43 = vadd.f32 %v977_v57, %v1859_v61  ;;  %v1110_v59 = vadd.f32 %v1109_v53, %v1047_v51 }
 0x131   :  { %v1111_v50 = vadd.f32 %v1110_v59, %v1048_v58  ;;  %v979_v60 = vadd.f32 %v978_v43, %v1865_v9  ;;  %v1064_v43 = vmul.f32 %v1955_v44, %v1955_v44 }
 0x133   :  { %v980_v3 = vadd.f32 %v1851_v56, %v979_v60  ;;  %v1112_v4 = vadd.f32 %v1111_v50, %v1049_v1  ;;  %v1054_v56 = vmul.f32 %v1875_v16, %v1875_v16  ;;  %v1065_v50 = vmul.f32 %v1961_v62, %v1961_v62 }
 0x135   :  { %v1113_v6 = vadd.f32 %v1112_v4, %v1050_v41  ;;  %v981_v10 = vadd.f32 %v1861_v2, %v980_v3  ;;  %v1055_v2 = vmul.f32 %v1885_v26, %v1885_v26  ;;  %v1068_v4 = vmul.f32 %v1979_v15, %v1979_v15 }
 0x137   :  { %v982_v61 = vadd.f32 %v981_v10, %v1883_v21  ;;  %v1114_v12 = vadd.f32 %v1113_v6, %v1051_v45  ;;  %v1069_v10 = vmul.f32 %v1985_v32, %v1985_v32 }
 0x139   :  { %v1115_v14 = vadd.f32 %v1114_v12, %v1052_v5  ;;  %v983_v9 = vadd.f32 %v982_v61, %v1889_v33 }
 0x13b   :  { %v984_v18 = vadd.f32 %v1875_v16, %v983_v9  ;;  %v1116_v20 = vadd.f32 %v1115_v14, %v1053_v17  ;;  %v1058_v16 = vmul.f32 %v1899_v40, %v1899_v40  ;;  %v1072_v9 = vmul.f32 %v2003_v55, %v2003_v55 }
 0x13d   :  { %v1117_v22 = vadd.f32 %v1116_v20, %v1054_v56  ;;  %v985_v24 = vadd.f32 %v1885_v26, %v984_v18  ;;  %v1059_v26 = vmul.f32 %v1909_v54, %v1909_v54  ;;  %v1073_v18 = vmul.f32 %v2009_v11, %v2009_v11 }
 0x13f   :  { %v986_v21 = vadd.f32 %v985_v24, %v1907_v48  ;;  %v1118_v27 = vadd.f32 %v1117_v22, %v1055_v2 }
 0x141   :  { %v1119_v29 = vadd.f32 %v1118_v27, %v1056_v25  ;;  %v987_v33 = vadd.f32 %v986_v21, %v1913_v63 }
 0x143   :  { %v988_v31 = vadd.f32 %v1899_v40, %v987_v33  ;;  %v1120_v34 = vadd.f32 %v1119_v29, %v1057_v30  ;;  %v1062_v40 = vmul.f32 %v1923_v7, %v1923_v7 }
 0x145   :  { %v1121_v35 = vadd.f32 %v1120_v34, %v1058_v16  ;;  %v989_v37 = vadd.f32 %v1909_v54, %v988_v31  ;;  %v1063_v54 = vmul.f32 %v1933_v19, %v1933_v19 }
 0x147   :  { %v990_v48 = vadd.f32 %v989_v37, %v1931_v13  ;;  %v1122_v39 = vadd.f32 %v1121_v35, %v1059_v26 }
 0x149   :  { %v1123_v42 = vadd.f32 %v1122_v39, %v1060_v38  ;;  %v991_v63 = vadd.f32 %v990_v48, %v1937_v28 }
 0x14b   :  { %v992_v49 = vadd.f32 %v1923_v7, %v991_v63  ;;  %v1124_v51 = vadd.f32 %v1123_v42, %v1061_v47  ;;  %v1066_v7 = vmul.f32 %v1947_v36, %v1947_v36 }
 0x14d   :  { %v1125_v53 = vadd.f32 %v1124_v51, %v1062_v40  ;;  %v993_v57 = vadd.f32 %v1933_v19, %v992_v49  ;;  %v1067_v19 = vmul.f32 %v1957_v52, %v1957_v52 }
 0x14f   :  { %v994_v13 = vadd.f32 %v993_v57, %v1955_v44  ;;  %v1126_v58 = vadd.f32 %v1125_v53, %v1063_v54 }
 0x151   :  { %v1127_v59 = vadd.f32 %v1126_v58, %v1064_v43  ;;  %v995_v28 = vadd.f32 %v994_v13, %v1961_v62 }
 0x153   :  { %v996_v60 = vadd.f32 %v1947_v36, %v995_v28  ;;  %v1128_v1 = vadd.f32 %v1127_v59, %v1065_v50  ;;  %v1070_v36 = vmul.f32 %v1971_v8, %v1971_v8 }
 0x155   :  { %v1129_v41 = vadd.f32 %v1128_v1, %v1066_v7  ;;  %v997_v3 = vadd.f32 %v1957_v52, %v996_v60  ;;  %v1071_v52 = vmul.f32 %v1981_v23, %v1981_v23 }
 0x157   :  { %v998_v44 = vadd.f32 %v997_v3, %v1979_v15  ;;  %v1130_v45 = vadd.f32 %v1129_v41, %v1067_v19 }
 0x159   :  { %v1131_v6 = vadd.f32 %v1130_v45, %v1068_v4  ;;  %v999_v62 = vadd.f32 %v998_v44, %v1985_v32 }
 0x15b   :  { %v1000_v61 = vadd.f32 %v1971_v8, %v999_v62  ;;  %v1132_v5 = vadd.f32 %v1131_v6, %v1069_v10  ;;  %v1074_v8 = vmul.f32 %v1995_v46, %v1995_v46 }
 0x15d   :  { %v1133_v12 = vadd.f32 %v1132_v5, %v1070_v36  ;;  %v1001_v14 = vadd.f32 %v1981_v23, %v1000_v61  ;;  %v1075_v23 = vmul.f32 %v2005_v0, %v2005_v0 }
 0x15f   :  { %v1002_v15 = vadd.f32 %v1001_v14, %v2003_v55  ;;  %v1134_v17 = vadd.f32 %v1133_v12, %v1071_v52 }
 0x161   :  { %v1135_v56 = vadd.f32 %v1134_v17, %v1072_v9  ;;  %v1003_v32 = vadd.f32 %v1002_v15, %v2009_v11 }
 0x163   :  { %v1004_v20 = vadd.f32 %v1995_v46, %v1003_v32  ;;  %v1136_v2 = vadd.f32 %v1135_v56, %v1073_v18 }
 0x165   :  { %v1005_v22 = vadd.f32 %v2005_v0, %v1004_v20  ;;  %v1137_v24 = vadd.f32 %v1136_v2, %v1074_v8 }
 0x167   :  { %v1006_v55 = vrot.slane %v1005_v22, 4  ;;  %v1138_v21 = vadd.f32 %v1137_v24, %v1075_v23 }
 0x169   :  { %v1007_v25 = vadd.f32 %v1006_v55, %v1005_v22  ;;  %v1139_v27 = vrot.slane %v1138_v21, 4 }
 0x16b   :  { %v1008_v29 = vrot.slane %v1007_v25, 2  ;;  %v1140_v33 = vadd.f32 %v1139_v27, %v1138_v21 }
 0x16d   :  { %v1009_v30 = vadd.f32 %v1008_v29, %v1007_v25  ;;  %v1141_v11 = vrot.slane %v1140_v33, 2 }
 0x16f   :  { %v1010_v16 = vrot.slane %v1009_v30, 1  ;;  %v1142_v31 = vadd.f32 %v1141_v11, %v1140_v33 }
 0x171   :  { %v1143_v34 = vrot.slane %v1142_v31, 1  ;;  %v1011_v46 = vadd.f32 %v1010_v16, %v1009_v30 }
 0x173   :  { %v1144_v26 = vadd.f32 %v1143_v34, %v1142_v31 }
 0x175   :  { %v1146_v35 = vsel %vm1145_vm0, %v1011_v46, %v1144_v26 }
 0x176   :  { %v1148_v37 = vsel %vm1147_vm1, %v1146_v35, 0.0 }
 0x177   :  { %1149 = vst [vmem:[%s2127_s3] sm:$0xff] %v1148_v37 }

// kernel: discriminator_forward.12
= control target key start
LH: loop header
LB: loop body
LE: loop exit
PB: predicated region body
PF: predicated region fallthrough
CT: control target
= control target key end

     0   :  { %s1566_s0 = inlined_call_operand.vmem [shape: bf16[512,128], index: 0, kind: input, shape index: {}, may-alias: {0,3}]   ;;  %s1567_s1 = inlined_call_operand.vmem [shape: f32[1,128], index: 1, kind: input, shape index: {}]   ;;  %s1568_s2 = inlined_call_operand.vmem [shape: f32[1,128], index: 2, kind: input, shape index: {}]   ;;  %s1569_s3 = inlined_call_operand.vmem [shape: bf16[512,128], index: 3, kind: output, shape index: {}, may-alias: {0,3}]  }
   0x1   :  { %v867_v0 = vld [vmem:[%s1566_s0] sm:$0xff]   ;;  %v1154_v4 = vld [vmem:[%s1566_s0 + $0x8] sm:$0xff]   ;;  %v1155_v5 = vld [vmem:[%s1566_s0 + $0x10] sm:$0xff]  }
   0x2   :  { %v1242_v1 = vld [vmem:[%s1567_s1] ss:$0 sm:$0xff]  ;;  %v868_v2 = vunpack.c.l.bf16 %v867_v0  ;;  %v869_v3 = vunpack.c.h.bf16 %v867_v0  ;;  %v1156_v6 = vld [vmem:[%s1566_s0 + $0x18] sm:$0xff]   ;;  %v872_v8 = vunpack.c.l.bf16 %v1154_v4  ;;  %v873_v9 = vunpack.c.h.bf16 %v1154_v4  ;;  %v1158_v41 = vld [vmem:[%s1566_s0 + $0x28] sm:$0xff]  }
   0x3   :  { %v1256_v7 = vld [vmem:[%s1568_s2] ss:$0 sm:$0xff]  ;;  %v876_v10 = vunpack.c.l.bf16 %v1155_v5  ;;  %v877_v11 = vunpack.c.h.bf16 %v1155_v5  ;;  %v880_v14 = vunpack.c.l.bf16 %v1156_v6  ;;  %v881_v15 = vunpack.c.h.bf16 %v1156_v6  ;;  %v1159_v46 = vld [vmem:[%s1566_s0 + $0x30] sm:$0xff]   ;;  %v1160_v55 = vld [vmem:[%s1566_s0 + $0x38] sm:$0xff]  }
   0x4   :  { %v149_v12 = vmul.f32 %v868_v2, %v1242_v1  ;;  %v150_v13 = vmul.f32 %v869_v3, %v1242_v1  ;;  %v151_v16 = vmul.f32 %v872_v8, %v1242_v1  ;;  %v152_v17 = vmul.f32 %v873_v9, %v1242_v1  ;;  %v1157_v24 = vld [vmem:[%s1566_s0 + $0x20] sm:$0xff]  }
   0x5   :  { %v153_v18 = vmul.f32 %v876_v10, %v1242_v1  ;;  %v154_v19 = vmul.f32 %v877_v11, %v1242_v1  ;;  %v155_v22 = vmul.f32 %v880_v14, %v1242_v1  ;;  %v156_v23 = vmul.f32 %v881_v15, %v1242_v1 }
   0x6   :  { %v220_v20 = vadd.f32 %v1256_v7, %v149_v12  ;;  %v221_v21 = vadd.f32 %v1256_v7, %v150_v13  ;;  %v222_v25 = vadd.f32 %v1256_v7, %v151_v16  ;;  %v223_v26 = vadd.f32 %v1256_v7, %v152_v17 }
   0x7   :  { %v224_v27 = vadd.f32 %v1256_v7, %v153_v18  ;;  %v225_v28 = vadd.f32 %v1256_v7, %v154_v19  ;;  %v226_v31 = vadd.f32 %v1256_v7, %v155_v22  ;;  %v227_v32 = vadd.f32 %v1256_v7, %v156_v23 }
   0x8   :  { %v284_v29 = vmul.f32 0.2, %v220_v20  ;;  %v285_v30 = vmul.f32 0.2, %v221_v21  ;;  %v286_v33 = vmul.f32 0.2, %v222_v25  ;;  %v884_v36 = vunpack.c.l.bf16 %v1157_v24 }
   0x9   :  { %v287_v34 = vmul.f32 0.2, %v223_v26  ;;  %v288_v35 = vmul.f32 0.2, %v224_v27  ;;  %v289_v39 = vmul.f32 0.2, %v225_v28  ;;  %v885_v50 = vunpack.c.h.bf16 %v1157_v24 }
   0xa   :  { %v348_v37 = vmax.f32 %v220_v20, %v284_v29  ;;  %v349_v38 = vmax.f32 %v221_v21, %v285_v30  ;;  %v290_v40 = vmul.f32 0.2, %v226_v31  ;;  %v350_v42 = vmax.f32 %v222_v25, %v286_v33 }
   0xb   :  { %v351_v43 = vmax.f32 %v223_v26, %v287_v34  ;;  %v352_v44 = vmax.f32 %v224_v27, %v288_v35  ;;  %v291_v45 = vmul.f32 0.2, %v227_v32  ;;  %v353_v48 = vmax.f32 %v225_v28, %v289_v39 }
   0xc   :  { %v997_v47 = vpack.c.bf16 %v349_v38, %v348_v37  ;;  %v354_v49 = vmax.f32 %v226_v31, %v290_v40  ;;  %v157_v53 = vmul.f32 %v884_v36, %v1242_v1  ;;  %v888_v54 = vunpack.c.l.bf16 %v1158_v41 }
   0xd   :  { %v1002_v51 = vpack.c.bf16 %v351_v43, %v350_v42  ;;  %v355_v52 = vmax.f32 %v227_v32, %v291_v45  ;;  %v1007_v56 = vpack.c.bf16 %v353_v48, %v352_v44  ;;  %v158_v57 = vmul.f32 %v885_v50, %v1242_v1 }
   0xe   :  { %998 = vst [vmem:[%s1569_s3] sm:$0xff] %v997_v47   ;;  %v889_v58 = vunpack.c.h.bf16 %v1158_v41  ;;  %v892_v59 = vunpack.c.l.bf16 %v1159_v46  ;;  %v228_v61 = vadd.f32 %v1256_v7, %v157_v53  ;;  %v159_v62 = vmul.f32 %v888_v54, %v1242_v1 }
   0xf   :  { %1185 = vst [vmem:[%s1569_s3 + $0x8] sm:$0xff] %v1002_v51   ;;  %v1012_v60 = vpack.c.bf16 %v355_v52, %v354_v49  ;;  %v893_v63 = vunpack.c.h.bf16 %v1159_v46  ;;  %1186 = vst [vmem:[%s1569_s3 + $0x10] sm:$0xff] %v1007_v56   ;;  %v229_v0 = vadd.f32 %v1256_v7, %v158_v57  ;;  %v896_v4 = vunpack.c.l.bf16 %v1160_v55 }
  0x10   :  { %v160_v2 = vmul.f32 %v889_v58, %v1242_v1  ;;  %v161_v3 = vmul.f32 %v892_v59, %v1242_v1  ;;  %v292_v5 = vmul.f32 0.2, %v228_v61  ;;  %v230_v6 = vadd.f32 %v1256_v7, %v159_v62 }
  0x11   :  { %1187 = vst [vmem:[%s1569_s3 + $0x18] sm:$0xff] %v1012_v60   ;;  %v162_v8 = vmul.f32 %v893_v63, %v1242_v1  ;;  %v897_v9 = vunpack.c.h.bf16 %v1160_v55  ;;  %v293_v10 = vmul.f32 0.2, %v229_v0  ;;  %v163_v13 = vmul.f32 %v896_v4, %v1242_v1 }
  0x12   :  { %v231_v11 = vadd.f32 %v1256_v7, %v160_v2  ;;  %v232_v12 = vadd.f32 %v1256_v7, %v161_v3  ;;  %v356_v15 = vmax.f32 %v228_v61, %v292_v5  ;;  %v294_v16 = vmul.f32 0.2, %v230_v6 }
  0x13   :  { %v233_v17 = vadd.f32 %v1256_v7, %v162_v8  ;;  %v164_v18 = vmul.f32 %v897_v9, %v1242_v1  ;;  %v357_v19 = vmax.f32 %v229_v0, %v293_v10  ;;  %v234_v22 = vadd.f32 %v1256_v7, %v163_v13 }
  0x14   :  { %v295_v20 = vmul.f32 0.2, %v231_v11  ;;  %v296_v21 = vmul.f32 0.2, %v232_v12  ;;  %v358_v23 = vmax.f32 %v230_v6, %v294_v16 }
  0x15   :  { %v297_v24 = vmul.f32 0.2, %v233_v17  ;;  %v235_v25 = vadd.f32 %v1256_v7, %v164_v18  ;;  %v1017_v28 = vpack.c.bf16 %v357_v19, %v356_v15  ;;  %v298_v31 = vmul.f32 0.2, %v234_v22 }
  0x16   :  { %v359_v29 = vmax.f32 %v231_v11, %v295_v20  ;;  %v360_v30 = vmax.f32 %v232_v12, %v296_v21 }
  0x17   :  { %v361_v32 = vmax.f32 %v233_v17, %v297_v24  ;;  %v299_v33 = vmul.f32 0.2, %v235_v25  ;;  %v362_v38 = vmax.f32 %v234_v22, %v298_v31 }
  0x18   :  { %v1161_v14 = vld [vmem:[%s1566_s0 + $0x40] sm:$0xff]   ;;  %v1162_v27 = vld [vmem:[%s1566_s0 + $0x48] sm:$0xff]   ;;  %v1163_v36 = vld [vmem:[%s1566_s0 + $0x50] sm:$0xff]   ;;  %v1022_v37 = vpack.c.bf16 %v359_v29, %v358_v23 }
  0x19   :  { %v900_v26 = vunpack.c.l.bf16 %v1161_v14  ;;  %v901_v34 = vunpack.c.h.bf16 %v1161_v14  ;;  %1188 = vst [vmem:[%s1569_s3 + $0x20] sm:$0xff] %v1017_v28   ;;  %v904_v39 = vunpack.c.l.bf16 %v1162_v27  ;;  %v905_v40 = vunpack.c.h.bf16 %v1162_v27 }
  0x1a   :  { %v1027_v42 = vpack.c.bf16 %v361_v32, %v360_v30  ;;  %v363_v43 = vmax.f32 %v235_v25, %v299_v33  ;;  %v908_v48 = vunpack.c.l.bf16 %v1163_v36  ;;  %v909_v49 = vunpack.c.h.bf16 %v1163_v36 }
  0x1b   :  { %v165_v35 = vmul.f32 %v900_v26, %v1242_v1  ;;  %v166_v44 = vmul.f32 %v901_v34, %v1242_v1  ;;  %v167_v46 = vmul.f32 %v904_v39, %v1242_v1  ;;  %v168_v47 = vmul.f32 %v905_v40, %v1242_v1 }
  0x1c   :  { %v1032_v50 = vpack.c.bf16 %v363_v43, %v362_v38  ;;  %v169_v56 = vmul.f32 %v908_v48, %v1242_v1  ;;  %v170_v57 = vmul.f32 %v909_v49, %v1242_v1 }
  0x1d   :  { %v236_v45 = vadd.f32 %v1256_v7, %v165_v35  ;;  %v237_v51 = vadd.f32 %v1256_v7, %v166_v44  ;;  %v238_v54 = vadd.f32 %v1256_v7, %v167_v46  ;;  %v239_v55 = vadd.f32 %v1256_v7, %v168_v47 }
  0x1e   :  { %v240_v2 = vadd.f32 %v1256_v7, %v169_v56  ;;  %v241_v3 = vadd.f32 %v1256_v7, %v170_v57 }
  0x1f   :  { %v300_v52 = vmul.f32 0.2, %v236_v45  ;;  %v301_v59 = vmul.f32 0.2, %v237_v51  ;;  %v302_v63 = vmul.f32 0.2, %v238_v54 }
  0x20   :  { %v1164_v41 = vld [vmem:[%s1566_s0 + $0x58] sm:$0xff]   ;;  %v303_v0 = vmul.f32 0.2, %v239_v55  ;;  %v304_v11 = vmul.f32 0.2, %v240_v2 }
  0x21   :  { %1189 = vst [vmem:[%s1569_s3 + $0x28] sm:$0xff] %v1022_v37   ;;  %1190 = vst [vmem:[%s1569_s3 + $0x30] sm:$0xff] %v1027_v42   ;;  %v912_v53 = vunpack.c.l.bf16 %v1164_v41  ;;  %v364_v60 = vmax.f32 %v236_v45, %v300_v52  ;;  %v913_v61 = vunpack.c.h.bf16 %v1164_v41  ;;  %v365_v4 = vmax.f32 %v237_v51, %v301_v59 }
  0x22   :  { %v366_v9 = vmax.f32 %v238_v54, %v302_v63  ;;  %v367_v10 = vmax.f32 %v239_v55, %v303_v0  ;;  %v305_v12 = vmul.f32 0.2, %v241_v3  ;;  %v368_v20 = vmax.f32 %v240_v2, %v304_v11 }
  0x23   :  { %v171_v62 = vmul.f32 %v912_v53, %v1242_v1  ;;  %v172_v5 = vmul.f32 %v913_v61, %v1242_v1  ;;  %v1037_v14 = vpack.c.bf16 %v365_v4, %v364_v60 }
  0x24   :  { %v1042_v19 = vpack.c.bf16 %v367_v10, %v366_v9  ;;  %v369_v21 = vmax.f32 %v241_v3, %v305_v12 }
  0x25   :  { %v242_v6 = vadd.f32 %v1256_v7, %v171_v62  ;;  %v243_v15 = vadd.f32 %v1256_v7, %v172_v5 }
  0x26   :  { %v1047_v28 = vpack.c.bf16 %v369_v21, %v368_v20 }
  0x27   :  { %v306_v16 = vmul.f32 0.2, %v242_v6  ;;  %v307_v23 = vmul.f32 0.2, %v243_v15 }
  0x28   :  { %v1165_v58 = vld [vmem:[%s1566_s0 + $0x60] sm:$0xff]  }
  0x29   :  { %1191 = vst [vmem:[%s1569_s3 + $0x38] sm:$0xff] %v1032_v50   ;;  %v916_v8 = vunpack.c.l.bf16 %v1165_v58  ;;  %v917_v17 = vunpack.c.h.bf16 %v1165_v58  ;;  %v370_v24 = vmax.f32 %v242_v6, %v306_v16  ;;  %v371_v32 = vmax.f32 %v243_v15, %v307_v23 }
  0x2b   :  { %v173_v22 = vmul.f32 %v916_v8, %v1242_v1  ;;  %v174_v25 = vmul.f32 %v917_v17, %v1242_v1  ;;  %v1052_v40 = vpack.c.bf16 %v371_v32, %v370_v24 }
  0x2d   :  { %v244_v29 = vadd.f32 %v1256_v7, %v173_v22  ;;  %v245_v33 = vadd.f32 %v1256_v7, %v174_v25 }
  0x2f   :  { %v308_v36 = vmul.f32 0.2, %v244_v29  ;;  %v309_v41 = vmul.f32 0.2, %v245_v33 }
  0x30   :  { %v1166_v13 = vld [vmem:[%s1566_s0 + $0x68] sm:$0xff]   ;;  %v1167_v18 = vld [vmem:[%s1566_s0 + $0x70] sm:$0xff]  }
  0x31   :  { %1192 = vst [vmem:[%s1569_s3 + $0x40] sm:$0xff] %v1037_v14   ;;  %v920_v26 = vunpack.c.l.bf16 %v1166_v13  ;;  %v921_v30 = vunpack.c.h.bf16 %v1166_v13  ;;  %v924_v31 = vunpack.c.l.bf16 %v1167_v18  ;;  %v925_v35 = vunpack.c.h.bf16 %v1167_v18 }
  0x32   :  { %v372_v45 = vmax.f32 %v244_v29, %v308_v36  ;;  %v373_v49 = vmax.f32 %v245_v33, %v309_v41 }
  0x33   :  { %v175_v34 = vmul.f32 %v920_v26, %v1242_v1  ;;  %v176_v37 = vmul.f32 %v921_v30, %v1242_v1  ;;  %v177_v38 = vmul.f32 %v924_v31, %v1242_v1  ;;  %v178_v43 = vmul.f32 %v925_v35, %v1242_v1 }
  0x34   :  { %v1057_v58 = vpack.c.bf16 %v373_v49, %v372_v45 }
  0x35   :  { %v246_v42 = vadd.f32 %v1256_v7, %v175_v34  ;;  %v247_v46 = vadd.f32 %v1256_v7, %v176_v37  ;;  %v248_v47 = vadd.f32 %v1256_v7, %v177_v38  ;;  %v249_v51 = vadd.f32 %v1256_v7, %v178_v43 }
  0x37   :  { %v310_v50 = vmul.f32 0.2, %v246_v42  ;;  %v311_v53 = vmul.f32 0.2, %v247_v46  ;;  %v312_v54 = vmul.f32 0.2, %v248_v47 }
  0x38   :  { %v1168_v27 = vld [vmem:[%s1566_s0 + $0x78] sm:$0xff]   ;;  %v313_v60 = vmul.f32 0.2, %v249_v51 }
  0x39   :  { %1193 = vst [vmem:[%s1569_s3 + $0x48] sm:$0xff] %v1042_v19   ;;  %1194 = vst [vmem:[%s1569_s3 + $0x50] sm:$0xff] %v1047_v28   ;;  %v928_v39 = vunpack.c.l.bf16 %v1168_v27  ;;  %v929_v48 = vunpack.c.h.bf16 %v1168_v27  ;;  %v374_v59 = vmax.f32 %v246_v42, %v310_v50  ;;  %v375_v62 = vmax.f32 %v247_v46, %v311_v53 }
  0x3a   :  { %v376_v63 = vmax.f32 %v248_v47, %v312_v54  ;;  %v377_v3 = vmax.f32 %v249_v51, %v313_v60 }
  0x3b   :  { %v179_v52 = vmul.f32 %v928_v39, %v1242_v1  ;;  %v180_v55 = vmul.f32 %v929_v48, %v1242_v1  ;;  %v1062_v9 = vpack.c.bf16 %v375_v62, %v374_v59 }
  0x3c   :  { %v1067_v14 = vpack.c.bf16 %v377_v3, %v376_v63 }
  0x3d   :  { %v250_v61 = vadd.f32 %v1256_v7, %v179_v52  ;;  %v251_v0 = vadd.f32 %v1256_v7, %v180_v55 }
  0x3f   :  { %v314_v4 = vmul.f32 0.2, %v250_v61  ;;  %v315_v10 = vmul.f32 0.2, %v251_v0 }
  0x40   :  { %v1169_v44 = vld [vmem:[%s1566_s0 + $0x80] sm:$0xff]  }
  0x41   :  { %1195 = vst [vmem:[%s1569_s3 + $0x58] sm:$0xff] %v1052_v40   ;;  %v932_v56 = vunpack.c.l.bf16 %v1169_v44  ;;  %v933_v2 = vunpack.c.h.bf16 %v1169_v44  ;;  %v378_v15 = vmax.f32 %v250_v61, %v314_v4  ;;  %v379_v18 = vmax.f32 %v251_v0, %v315_v10 }
  0x43   :  { %v181_v5 = vmul.f32 %v932_v56, %v1242_v1  ;;  %v182_v11 = vmul.f32 %v933_v2, %v1242_v1  ;;  %v1072_v26 = vpack.c.bf16 %v379_v18, %v378_v15 }
  0x45   :  { %v252_v16 = vadd.f32 %v1256_v7, %v181_v5  ;;  %v253_v19 = vadd.f32 %v1256_v7, %v182_v11 }
  0x47   :  { %v316_v22 = vmul.f32 0.2, %v252_v16  ;;  %v317_v27 = vmul.f32 0.2, %v253_v19 }
  0x48   :  { %v1170_v57 = vld [vmem:[%s1566_s0 + $0x88] sm:$0xff]  }
  0x49   :  { %1196 = vst [vmem:[%s1569_s3 + $0x60] sm:$0xff] %v1057_v58   ;;  %v936_v6 = vunpack.c.l.bf16 %v1170_v57  ;;  %v937_v12 = vunpack.c.h.bf16 %v1170_v57  ;;  %v380_v31 = vmax.f32 %v252_v16, %v316_v22  ;;  %v381_v35 = vmax.f32 %v253_v19, %v317_v27 }
  0x4b   :  { %v183_v17 = vmul.f32 %v936_v6, %v1242_v1  ;;  %v184_v20 = vmul.f32 %v937_v12, %v1242_v1  ;;  %v1077_v44 = vpack.c.bf16 %v381_v35, %v380_v31 }
  0x4d   :  { %v254_v23 = vadd.f32 %v1256_v7, %v183_v17  ;;  %v255_v28 = vadd.f32 %v1256_v7, %v184_v20 }
  0x4f   :  { %v318_v32 = vmul.f32 0.2, %v254_v23  ;;  %v319_v36 = vmul.f32 0.2, %v255_v28 }
  0x50   :  { %v1171_v8 = vld [vmem:[%s1566_s0 + $0x90] sm:$0xff]   ;;  %v1172_v13 = vld [vmem:[%s1566_s0 + $0x98] sm:$0xff]  }
  0x51   :  { %1197 = vst [vmem:[%s1569_s3 + $0x68] sm:$0xff] %v1062_v9   ;;  %v940_v21 = vunpack.c.l.bf16 %v1171_v8  ;;  %1198 = vst [vmem:[%s1569_s3 + $0x70] sm:$0xff] %v1067_v14   ;;  %v941_v24 = vunpack.c.h.bf16 %v1171_v8  ;;  %v944_v25 = vunpack.c.l.bf16 %v1172_v13  ;;  %v945_v34 = vunpack.c.h.bf16 %v1172_v13 }
  0x52   :  { %v382_v39 = vmax.f32 %v254_v23, %v318_v32  ;;  %v383_v45 = vmax.f32 %v255_v28, %v319_v36 }
  0x53   :  { %v185_v29 = vmul.f32 %v940_v21, %v1242_v1  ;;  %v186_v33 = vmul.f32 %v941_v24, %v1242_v1  ;;  %v187_v38 = vmul.f32 %v944_v25, %v1242_v1  ;;  %v188_v41 = vmul.f32 %v945_v34, %v1242_v1 }
  0x54   :  { %v1082_v53 = vpack.c.bf16 %v383_v45, %v382_v39 }
  0x55   :  { %v256_v37 = vadd.f32 %v1256_v7, %v185_v29  ;;  %v257_v40 = vadd.f32 %v1256_v7, %v186_v33  ;;  %v258_v47 = vadd.f32 %v1256_v7, %v187_v38  ;;  %v259_v49 = vadd.f32 %v1256_v7, %v188_v41 }
  0x57   :  { %v320_v46 = vmul.f32 0.2, %v256_v37  ;;  %v321_v48 = vmul.f32 0.2, %v257_v40  ;;  %v322_v55 = vmul.f32 0.2, %v258_v47 }
  0x58   :  { %v1173_v30 = vld [vmem:[%s1566_s0 + $0xa0] sm:$0xff]   ;;  %v323_v58 = vmul.f32 0.2, %v259_v49 }
  0x59   :  { %1199 = vst [vmem:[%s1569_s3 + $0x78] sm:$0xff] %v1072_v26   ;;  %v948_v42 = vunpack.c.l.bf16 %v1173_v30  ;;  %v949_v50 = vunpack.c.h.bf16 %v1173_v30  ;;  %v384_v54 = vmax.f32 %v256_v37, %v320_v46  ;;  %v385_v57 = vmax.f32 %v257_v40, %v321_v48 }
  0x5a   :  { %v386_v61 = vmax.f32 %v258_v47, %v322_v55  ;;  %v387_v4 = vmax.f32 %v259_v49, %v323_v58 }
  0x5b   :  { %v189_v51 = vmul.f32 %v948_v42, %v1242_v1  ;;  %v190_v59 = vmul.f32 %v949_v50, %v1242_v1  ;;  %v1087_v3 = vpack.c.bf16 %v385_v57, %v384_v54 }
  0x5c   :  { %v1092_v13 = vpack.c.bf16 %v387_v4, %v386_v61 }
  0x5d   :  { %v260_v60 = vadd.f32 %v1256_v7, %v189_v51  ;;  %v261_v5 = vadd.f32 %v1256_v7, %v190_v59 }
  0x5f   :  { %v324_v6 = vmul.f32 0.2, %v260_v60  ;;  %v325_v14 = vmul.f32 0.2, %v261_v5 }
  0x60   :  { %v1174_v43 = vld [vmem:[%s1566_s0 + $0xa8] sm:$0xff]   ;;  %v1175_v52 = vld [vmem:[%s1566_s0 + $0xb0] sm:$0xff]  }
  0x61   :  { %1200 = vst [vmem:[%s1569_s3 + $0x80] sm:$0xff] %v1077_v44   ;;  %v952_v56 = vunpack.c.l.bf16 %v1174_v43  ;;  %1201 = vst [vmem:[%s1569_s3 + $0x88] sm:$0xff] %v1082_v53   ;;  %v953_v62 = vunpack.c.h.bf16 %v1174_v43  ;;  %v956_v0 = vunpack.c.l.bf16 %v1175_v52  ;;  %v957_v10 = vunpack.c.h.bf16 %v1175_v52 }
  0x62   :  { %v388_v15 = vmax.f32 %v260_v60, %v324_v6  ;;  %v389_v21 = vmax.f32 %v261_v5, %v325_v14 }
  0x63   :  { %v191_v63 = vmul.f32 %v952_v56, %v1242_v1  ;;  %v192_v8 = vmul.f32 %v953_v62, %v1242_v1  ;;  %v193_v11 = vmul.f32 %v956_v0, %v1242_v1  ;;  %v194_v19 = vmul.f32 %v957_v10, %v1242_v1 }
  0x64   :  { %v1097_v30 = vpack.c.bf16 %v389_v21, %v388_v15 }
  0x65   :  { %v262_v9 = vadd.f32 %v1256_v7, %v191_v63  ;;  %v263_v17 = vadd.f32 %v1256_v7, %v192_v8  ;;  %v264_v20 = vadd.f32 %v1256_v7, %v193_v11  ;;  %v265_v27 = vadd.f32 %v1256_v7, %v194_v19 }
  0x67   :  { %v326_v18 = vmul.f32 0.2, %v262_v9  ;;  %v327_v25 = vmul.f32 0.2, %v263_v17  ;;  %v328_v28 = vmul.f32 0.2, %v264_v20 }
  0x68   :  { %v1176_v2 = vld [vmem:[%s1566_s0 + $0xb8] sm:$0xff]   ;;  %v1177_v12 = vld [vmem:[%s1566_s0 + $0xc0] sm:$0xff]   ;;  %v329_v35 = vmul.f32 0.2, %v265_v27 }
  0x69   :  { %1202 = vst [vmem:[%s1569_s3 + $0x90] sm:$0xff] %v1087_v3   ;;  %v960_v16 = vunpack.c.l.bf16 %v1176_v2  ;;  %1203 = vst [vmem:[%s1569_s3 + $0x98] sm:$0xff] %v1092_v13   ;;  %v961_v22 = vunpack.c.h.bf16 %v1176_v2  ;;  %v964_v24 = vunpack.c.l.bf16 %v1177_v12  ;;  %v390_v26 = vmax.f32 %v262_v9, %v326_v18 }
  0x6a   :  { %v965_v33 = vunpack.c.h.bf16 %v1177_v12  ;;  %v391_v34 = vmax.f32 %v263_v17, %v327_v25  ;;  %v392_v36 = vmax.f32 %v264_v20, %v328_v28  ;;  %v393_v44 = vmax.f32 %v265_v27, %v329_v35 }
  0x6b   :  { %v195_v23 = vmul.f32 %v960_v16, %v1242_v1  ;;  %v196_v31 = vmul.f32 %v961_v22, %v1242_v1  ;;  %v197_v37 = vmul.f32 %v964_v24, %v1242_v1 }
  0x6c   :  { %v198_v40 = vmul.f32 %v965_v33, %v1242_v1  ;;  %v1102_v43 = vpack.c.bf16 %v391_v34, %v390_v26  ;;  %v1107_v52 = vpack.c.bf16 %v393_v44, %v392_v36 }
  0x6d   :  { %v266_v32 = vadd.f32 %v1256_v7, %v195_v23  ;;  %v267_v38 = vadd.f32 %v1256_v7, %v196_v31  ;;  %v268_v45 = vadd.f32 %v1256_v7, %v197_v37 }
  0x6e   :  { %v269_v49 = vadd.f32 %v1256_v7, %v198_v40 }
  0x6f   :  { %v330_v39 = vmul.f32 0.2, %v266_v32  ;;  %v331_v47 = vmul.f32 0.2, %v267_v38  ;;  %v332_v53 = vmul.f32 0.2, %v268_v45 }
  0x70   :  { %v1178_v29 = vld [vmem:[%s1566_s0 + $0xc8] sm:$0xff]   ;;  %v333_v57 = vmul.f32 0.2, %v269_v49 }
  0x71   :  { %1204 = vst [vmem:[%s1569_s3 + $0xa0] sm:$0xff] %v1097_v30   ;;  %v968_v41 = vunpack.c.l.bf16 %v1178_v29  ;;  %v969_v46 = vunpack.c.h.bf16 %v1178_v29  ;;  %v394_v48 = vmax.f32 %v266_v32, %v330_v39  ;;  %v395_v56 = vmax.f32 %v267_v38, %v331_v47 }
  0x72   :  { %v396_v60 = vmax.f32 %v268_v45, %v332_v53  ;;  %v397_v3 = vmax.f32 %v269_v49, %v333_v57 }
  0x73   :  { %v199_v50 = vmul.f32 %v968_v41, %v1242_v1  ;;  %v200_v54 = vmul.f32 %v969_v46, %v1242_v1  ;;  %v1112_v2 = vpack.c.bf16 %v395_v56, %v394_v48 }
  0x74   :  { %v1117_v12 = vpack.c.bf16 %v397_v3, %v396_v60 }
  0x75   :  { %v270_v58 = vadd.f32 %v1256_v7, %v199_v50  ;;  %v271_v61 = vadd.f32 %v1256_v7, %v200_v54 }
  0x77   :  { %v334_v4 = vmul.f32 0.2, %v270_v58  ;;  %v335_v6 = vmul.f32 0.2, %v271_v61 }
  0x78   :  { %v1179_v42 = vld [vmem:[%s1566_s0 + $0xd0] sm:$0xff]   ;;  %v1180_v51 = vld [vmem:[%s1566_s0 + $0xd8] sm:$0xff]  }
  0x79   :  { %1205 = vst [vmem:[%s1569_s3 + $0xa8] sm:$0xff] %v1102_v43   ;;  %v972_v55 = vunpack.c.l.bf16 %v1179_v42  ;;  %v973_v59 = vunpack.c.h.bf16 %v1179_v42  ;;  %1206 = vst [vmem:[%s1569_s3 + $0xb0] sm:$0xff] %v1107_v52   ;;  %v976_v63 = vunpack.c.l.bf16 %v1180_v51  ;;  %v977_v9 = vunpack.c.h.bf16 %v1180_v51 }
  0x7a   :  { %v398_v13 = vmax.f32 %v270_v58, %v334_v4  ;;  %v399_v16 = vmax.f32 %v271_v61, %v335_v6 }
  0x7b   :  { %v201_v62 = vmul.f32 %v972_v55, %v1242_v1  ;;  %v202_v5 = vmul.f32 %v973_v59, %v1242_v1  ;;  %v203_v10 = vmul.f32 %v976_v63, %v1242_v1  ;;  %v204_v18 = vmul.f32 %v977_v9, %v1242_v1 }
  0x7c   :  { %v1122_v25 = vpack.c.bf16 %v399_v16, %v398_v13 }
  0x7d   :  { %v272_v8 = vadd.f32 %v1256_v7, %v201_v62  ;;  %v273_v14 = vadd.f32 %v1256_v7, %v202_v5  ;;  %v274_v19 = vadd.f32 %v1256_v7, %v203_v10  ;;  %v275_v27 = vadd.f32 %v1256_v7, %v204_v18 }
  0x7f   :  { %v336_v17 = vmul.f32 0.2, %v272_v8  ;;  %v337_v20 = vmul.f32 0.2, %v273_v14  ;;  %v338_v28 = vmul.f32 0.2, %v274_v19 }
  0x80   :  { %v1181_v0 = vld [vmem:[%s1566_s0 + $0xe0] sm:$0xff]   ;;  %v1182_v11 = vld [vmem:[%s1566_s0 + $0xe8] sm:$0xff]   ;;  %v339_v33 = vmul.f32 0.2, %v275_v27 }
  0x81   :  { %1207 = vst [vmem:[%s1569_s3 + $0xb8] sm:$0xff] %v1112_v2   ;;  %v980_v15 = vunpack.c.l.bf16 %v1181_v0  ;;  %1208 = vst [vmem:[%s1569_s3 + $0xc0] sm:$0xff] %v1117_v12   ;;  %v981_v21 = vunpack.c.h.bf16 %v1181_v0  ;;  %v984_v23 = vunpack.c.l.bf16 %v1182_v11  ;;  %v400_v26 = vmax.f32 %v272_v8, %v336_v17 }
  0x82   :  { %v401_v29 = vmax.f32 %v273_v14, %v337_v20  ;;  %v985_v32 = vunpack.c.h.bf16 %v1182_v11  ;;  %v402_v34 = vmax.f32 %v274_v19, %v338_v28  ;;  %v403_v42 = vmax.f32 %v275_v27, %v339_v33 }
  0x83   :  { %v205_v22 = vmul.f32 %v980_v15, %v1242_v1  ;;  %v206_v30 = vmul.f32 %v981_v21, %v1242_v1  ;;  %v207_v35 = vmul.f32 %v984_v23, %v1242_v1 }
  0x84   :  { %v1127_v38 = vpack.c.bf16 %v401_v29, %v400_v26  ;;  %v208_v41 = vmul.f32 %v985_v32, %v1242_v1  ;;  %v1132_v50 = vpack.c.bf16 %v403_v42, %v402_v34 }
  0x85   :  { %v276_v31 = vadd.f32 %v1256_v7, %v205_v22  ;;  %v277_v39 = vadd.f32 %v1256_v7, %v206_v30  ;;  %v278_v43 = vadd.f32 %v1256_v7, %v207_v35 }
  0x86   :  { %v279_v48 = vadd.f32 %v1256_v7, %v208_v41 }
  0x87   :  { %v340_v40 = vmul.f32 0.2, %v276_v31  ;;  %v341_v46 = vmul.f32 0.2, %v277_v39  ;;  %v342_v51 = vmul.f32 0.2, %v278_v43 }
  0x88   :  { %v1183_v24 = vld [vmem:[%s1566_s0 + $0xf0] sm:$0xff]   ;;  %v343_v55 = vmul.f32 0.2, %v279_v48 }
  0x89   :  { %1209 = vst [vmem:[%s1569_s3 + $0xc8] sm:$0xff] %v1122_v25   ;;  %v988_v36 = vunpack.c.l.bf16 %v1183_v24  ;;  %v989_v44 = vunpack.c.h.bf16 %v1183_v24  ;;  %v404_v47 = vmax.f32 %v276_v31, %v340_v40  ;;  %v405_v54 = vmax.f32 %v277_v39, %v341_v46 }
  0x8a   :  { %v406_v58 = vmax.f32 %v278_v43, %v342_v51  ;;  %v407_v62 = vmax.f32 %v279_v48, %v343_v55 }
  0x8b   :  { %v209_v45 = vmul.f32 %v988_v36, %v1242_v1  ;;  %v210_v52 = vmul.f32 %v989_v44, %v1242_v1  ;;  %v1137_v61 = vpack.c.bf16 %v405_v54, %v404_v47 }
  0x8c   :  { %v1142_v4 = vpack.c.bf16 %v407_v62, %v406_v58 }
  0x8d   :  { %v280_v53 = vadd.f32 %v1256_v7, %v209_v45  ;;  %v281_v59 = vadd.f32 %v1256_v7, %v210_v52 }
  0x8f   :  { %v344_v60 = vmul.f32 0.2, %v280_v53  ;;  %v345_v2 = vmul.f32 0.2, %v281_v59 }
  0x90   :  { %v1184_v37 = vld [vmem:[%s1566_s0 + $0xf8] sm:$0xff]  }
  0x91   :  { %1210 = vst [vmem:[%s1569_s3 + $0xd0] sm:$0xff] %v1127_v38   ;;  %v992_v49 = vunpack.c.l.bf16 %v1184_v37  ;;  %v993_v56 = vunpack.c.h.bf16 %v1184_v37  ;;  %1211 = vst [vmem:[%s1569_s3 + $0xd8] sm:$0xff] %v1132_v50   ;;  %v408_v3 = vmax.f32 %v280_v53, %v344_v60  ;;  %v409_v8 = vmax.f32 %v281_v59, %v345_v2 }
  0x92   :  { %1212 = vst [vmem:[%s1569_s3 + $0xe0] sm:$0xff] %v1137_v61   ;;  %1213 = vst [vmem:[%s1569_s3 + $0xe8] sm:$0xff] %v1142_v4  }
  0x93   :  { %v211_v57 = vmul.f32 %v992_v49, %v1242_v1  ;;  %v212_v63 = vmul.f32 %v993_v56, %v1242_v1  ;;  %v1147_v1 = vpack.c.bf16 %v409_v8, %v408_v3 }
  0x95   :  { %v282_v0 = vadd.f32 %v1256_v7, %v211_v57  ;;  %v283_v5 = vadd.f32 %v1256_v7, %v212_v63  ;;  %1214 = vst [vmem:[%s1569_s3 + $0xf0] sm:$0xff] %v1147_v1  }
  0x97   :  { %v346_v6 = vmul.f32 0.2, %v282_v0  ;;  %v347_v9 = vmul.f32 0.2, %v283_v5 }
  0x99   :  { %v410_v10 = vmax.f32 %v282_v0, %v346_v6  ;;  %v411_v11 = vmax.f32 %v283_v5, %v347_v9 }
  0x9b   :  { %v1152_v12 = vpack.c.bf16 %v411_v11, %v410_v10 }
  0x9d   :  { %1215 = vst [vmem:[%s1569_s3 + $0xf8] sm:$0xff] %v1152_v12  }

// kernel: discriminator_forward.13
= control target key start
LH: loop header
LB: loop body
LE: loop exit
PB: predicated region body
PF: predicated region fallthrough
CT: control target
= control target key end

     0   :  { %vm473_vm0 = vcmask 1040384   ;;  %vm475_vm1 = vcmask 1041408   ;;  %s884_s1 = inlined_call_operand.vmem [shape: bf16[256,128], index: 1, kind: input, shape index: {}]   ;;  %s885_s0 = inlined_call_operand.vmem [shape: bf16[128,256], index: 0, kind: input, shape index: {}]   ;;  %s886_s2 = inlined_call_operand.vmem [shape: bf16[128,128], index: 2, kind: output, shape index: {0}]   ;;  %s887_s3 = inlined_call_operand.vmem [shape: f32[8,128], index: 3, kind: output, shape index: {1}]  }
   0x1   :  { %v677_v0 = vld [vmem:[%s884_s1 + $0x78] sm:$0xff]   ;;  %v679_v2 = vld [vmem:[%s884_s1 + $0x70] sm:$0xff]   ;;  %v681_v4 = vld [vmem:[%s884_s1 + $0x68] sm:$0xff]  }
   0x2   :  { %v678_v1 = vld [vmem:[%s884_s1 + $0x38] sm:$0xff]   ;;  %597 = vmatprep.subr.bf16.mxu0 %v677_v0  ;;  %661 = vmatprep.subr.bf16.mxu1 %v677_v0  ;;  %v680_v3 = vld [vmem:[%s884_s1 + $0x30] sm:$0xff]   ;;  %v682_v5 = vld [vmem:[%s884_s1 + $0x28] sm:$0xff]  }
   0x3   :  { %598 = vmatpush3.bf16.msra.mxu0 %v678_v1  ;;  %669 = vmatpush3.bf16.msra.mxu1 %v678_v1  ;;  %v683_v6 = vld [vmem:[%s884_s1 + $0x60] sm:$0xff]   ;;  %v685_v8 = vld [vmem:[%s884_s1 + $0x58] sm:$0xff]   ;;  %v687_v10 = vld [vmem:[%s884_s1 + $0x50] sm:$0xff]  }
   0x4   :  { %599 = vmatprep.subr.bf16.mxu0 %v679_v2  ;;  %662 = vmatprep.subr.bf16.mxu1 %v679_v2  ;;  %v684_v7 = vld [vmem:[%s884_s1 + $0x20] sm:$0xff]   ;;  %v686_v9 = vld [vmem:[%s884_s1 + $0x18] sm:$0xff]   ;;  %v688_v12 = vld [vmem:[%s884_s1 + $0x10] sm:$0xff]  }
   0x5   :  { %v695_v11 = vld [vmem:[%s885_s0 + $0x4] ss:$8 sps:$4 sm:$0xff]   ;;  %v693_v18 = vld [vmem:[%s885_s0] ss:$8 sps:$4 sm:$0xff]   ;;  %v696_v20 = vld [vmem:[%s885_s0 + $0x14] ss:$8 sps:$4 sm:$0xff]  }
   0x6   :  { %v701_v13 = vld [vmem:[%s885_s0 + $0x44] ss:$8 sps:$4 sm:$0xff]   ;;  %270 = vmatprep.mubr.bf16.mxu0 %v695_v11  ;;  %v699_v19 = vld [vmem:[%s885_s0 + $0x40] ss:$8 sps:$4 sm:$0xff]   ;;  %v705_v21 = vld [vmem:[%s885_s0 + $0x54] ss:$8 sps:$4 sm:$0xff]  }
   0x7   :  { %600 = vmatpush3.bf16.msra.mxu0 %v680_v3  ;;  %670 = vmatpush3.bf16.msra.mxu1 %v680_v3  ;;  %v689_v14 = vld [vmem:[%s884_s1 + $0x48] sm:$0xff]   ;;  %v691_v16 = vld [vmem:[%s884_s1 + $0x40] sm:$0xff]   ;;  %v698_v22 = vld [vmem:[%s885_s0 + $0x10] ss:$8 sps:$4 sm:$0xff]  }
   0x8   :  { %601 = vmatprep.subr.bf16.mxu0 %v681_v4  ;;  %663 = vmatprep.subr.bf16.mxu1 %v681_v4  ;;  %v690_v15 = vld [vmem:[%s884_s1 + $0x8] sm:$0xff]   ;;  %v692_v17 = vld [vmem:[%s884_s1] sm:$0xff]   ;;  %v707_v23 = vld [vmem:[%s885_s0 + $0x50] ss:$8 sps:$4 sm:$0xff]  }
   0x9   :  { %302 = vmatprep.mubr.bf16.mxu1 %v701_v13  ;;  %v702_v24 = vld [vmem:[%s885_s0 + $0x24] ss:$8 sps:$4 sm:$0xff]   ;;  %v704_v26 = vld [vmem:[%s885_s0 + $0x20] ss:$8 sps:$4 sm:$0xff]   ;;  %v708_v28 = vld [vmem:[%s885_s0 + $0x34] ss:$8 sps:$4 sm:$0xff]  }
   0xa   :  { %v711_v25 = vld [vmem:[%s885_s0 + $0x64] ss:$8 sps:$4 sm:$0xff]   ;;  %v713_v27 = vld [vmem:[%s885_s0 + $0x60] ss:$8 sps:$4 sm:$0xff]   ;;  %v714_v29 = vld [vmem:[%s885_s0 + $0x74] ss:$8 sps:$4 sm:$0xff]  }
   0xb   :  { %602 = vmatpush3.bf16.msra.mxu0 %v682_v5  ;;  %671 = vmatpush3.bf16.msra.mxu1 %v682_v5  ;;  %v710_v30 = vld [vmem:[%s885_s0 + $0x30] ss:$8 sps:$4 sm:$0xff]  }
   0xc   :  { %603 = vmatprep.subr.bf16.mxu0 %v683_v6  ;;  %664 = vmatprep.subr.bf16.mxu1 %v683_v6  ;;  %v716_v31 = vld [vmem:[%s885_s0 + $0x70] ss:$8 sps:$4 sm:$0xff]  }
   0xf   :  { %604 = vmatpush3.bf16.msra.mxu0 %v684_v7  ;;  %672 = vmatpush3.bf16.msra.mxu1 %v684_v7 }
  0x10   :  { %605 = vmatprep.subr.bf16.mxu0 %v685_v8  ;;  %665 = vmatprep.subr.bf16.mxu1 %v685_v8 }
  0x13   :  { %606 = vmatpush3.bf16.msra.mxu0 %v686_v9  ;;  %673 = vmatpush3.bf16.msra.mxu1 %v686_v9 }
  0x14   :  { %607 = vmatprep.subr.bf16.mxu0 %v687_v10  ;;  %666 = vmatprep.subr.bf16.mxu1 %v687_v10 }
  0x17   :  { %608 = vmatpush3.bf16.msra.mxu0 %v688_v12  ;;  %674 = vmatpush3.bf16.msra.mxu1 %v688_v12 }
  0x18   :  { %609 = vmatprep.subr.bf16.mxu0 %v689_v14  ;;  %667 = vmatprep.subr.bf16.mxu1 %v689_v14 }
  0x1b   :  { %610 = vmatpush3.bf16.msra.mxu0 %v690_v15  ;;  %675 = vmatpush3.bf16.msra.mxu1 %v690_v15 }
  0x1c   :  { %611 = vmatprep.subr.bf16.mxu0 %v691_v16  ;;  %668 = vmatprep.subr.bf16.mxu1 %v691_v16 }
  0x1f   :  { %612 = vmatpush3.bf16.msra.mxu0 %v692_v17  ;;  %676 = vmatpush3.bf16.msra.mxu1 %v692_v17 }
  0x22   :  { %271 = vmatmul.mubr.bf16.vlgmr.msra.gmra.mxu0 %v693_v18  ;;  %303 = vmatmul.mubr.bf16.vlgmr.msra.gmra.mxu1 %v699_v19 }
  0x23   :  { %278 = vmatprep.mubr.bf16.mxu0 %v696_v20  ;;  %310 = vmatprep.mubr.bf16.mxu1 %v705_v21 }
  0x2a   :  { %279 = vmatmul.mubr.bf16.gmra.mxu0 %v698_v22  ;;  %311 = vmatmul.mubr.bf16.gmra.mxu1 %v707_v23 }
  0x2b   :  { %286 = vmatprep.mubr.bf16.mxu0 %v702_v24  ;;  %318 = vmatprep.mubr.bf16.mxu1 %v711_v25 }
  0x32   :  { %287 = vmatmul.mubr.bf16.gmra.mxu0 %v704_v26  ;;  %319 = vmatmul.mubr.bf16.gmra.mxu1 %v713_v27 }
  0x33   :  { %294 = vmatprep.mubr.bf16.mxu0 %v708_v28  ;;  %326 = vmatprep.mubr.bf16.mxu1 %v714_v29 }
  0x3a   :  { %295 = vmatmul.mubr.bf16.gmra.mxu0 %v710_v30  ;;  %327 = vmatmul.mubr.bf16.gmra.mxu1 %v716_v31 }
  0xe2   :  { %v613_v32 = vpop.f32.mrf.mxu0  ;;  %v637_v33 = vpop.f32.mrf.mxu1 }
  0xe4   :  { %v614_v34 = vpop.f32.mrf.mxu0  ;;  %v638_v35 = vpop.f32.mrf.mxu1 }
  0xe5   :  { %v833_v38 = vadd.f32 %v638_v35, %v637_v33  ;;  %v615_v41 = vadd.f32 %v614_v34, %v613_v32 }
  0xe6   :  { %v616_v36 = vpop.f32.mrf.mxu0  ;;  %v640_v37 = vpop.f32.mrf.mxu1 }
  0xe7   :  { %v436_v1 = vmul.f32 %v615_v41, %v615_v41 }
  0xe8   :  { %v617_v39 = vpop.f32.mrf.mxu0  ;;  %v641_v40 = vpop.f32.mrf.mxu1 }
  0xe9   :  { %v618_v42 = vadd.f32 %v617_v39, %v616_v36  ;;  %v835_v43 = vadd.f32 %v641_v40, %v640_v37 }
  0xea   :  { %v619_v44 = vpop.f32.mrf.mxu0  ;;  %v643_v45 = vpop.f32.mrf.mxu1 }
  0xeb   :  { %v553_v46 = vpack.c.bf16 %v618_v42, %v615_v41  ;;  %v573_v47 = vpack.c.bf16 %v835_v43, %v833_v38  ;;  %v437_v62 = vmul.f32 %v618_v42, %v618_v42  ;;  %v415_v6 = vadd.f32 %v618_v42, %v615_v41 }
  0xec   :  { %v620_v48 = vpop.f32.mrf.mxu0  ;;  %v644_v49 = vpop.f32.mrf.mxu1 }
  0xed   :  { %554 = vst [vmem:[%s886_s2] sm:$0xff] %v553_v46   ;;  %593 = vst [vmem:[%s886_s2 + $0x20] sm:$0xff] %v573_v47   ;;  %v845_v52 = vadd.f32 %v644_v49, %v643_v45  ;;  %v621_v55 = vadd.f32 %v620_v48, %v619_v44  ;;  %v452_v8 = vadd.f32 %v437_v62, %v436_v1 }
  0xee   :  { %v622_v50 = vpop.f32.mrf.mxu0  ;;  %v646_v51 = vpop.f32.mrf.mxu1  ;;  %v444_v47 = vmul.f32 %v833_v38, %v833_v38 }
  0xef   :  { %v438_v2 = vmul.f32 %v621_v55, %v621_v55  ;;  %v416_v12 = vadd.f32 %v621_v55, %v415_v6 }
  0xf0   :  { %v623_v53 = vpop.f32.mrf.mxu0  ;;  %v647_v54 = vpop.f32.mrf.mxu1 }
  0xf1   :  { %v624_v56 = vadd.f32 %v623_v53, %v622_v50  ;;  %v847_v57 = vadd.f32 %v647_v54, %v646_v51  ;;  %v453_v15 = vadd.f32 %v452_v8, %v438_v2  ;;  %v445_v50 = vmul.f32 %v835_v43, %v835_v43 }
  0xf2   :  { %v625_v58 = vpop.f32.mrf.mxu0  ;;  %v649_v59 = vpop.f32.mrf.mxu1  ;;  %v446_v54 = vmul.f32 %v845_v52, %v845_v52 }
  0xf3   :  { %v558_v60 = vpack.c.bf16 %v624_v56, %v621_v55  ;;  %v578_v61 = vpack.c.bf16 %v847_v57, %v845_v52  ;;  %v439_v9 = vmul.f32 %v624_v56, %v624_v56  ;;  %v417_v19 = vadd.f32 %v624_v56, %v416_v12 }
  0xf4   :  { %v626_v63 = vpop.f32.mrf.mxu0  ;;  %v650_v0 = vpop.f32.mrf.mxu1 }
  0xf5   :  { %590 = vst [vmem:[%s886_s2 + $0x8] sm:$0xff] %v558_v60   ;;  %594 = vst [vmem:[%s886_s2 + $0x28] sm:$0xff] %v578_v61   ;;  %v627_v3 = vadd.f32 %v626_v63, %v625_v58  ;;  %v651_v7 = vadd.f32 %v650_v0, %v649_v59  ;;  %v454_v22 = vadd.f32 %v453_v15, %v439_v9 }
  0xf6   :  { %v628_v4 = vpop.f32.mrf.mxu0  ;;  %v652_v5 = vpop.f32.mrf.mxu1 }
  0xf7   :  { %v440_v16 = vmul.f32 %v627_v3, %v627_v3  ;;  %v418_v26 = vadd.f32 %v627_v3, %v417_v19  ;;  %v448_v60 = vmul.f32 %v651_v7, %v651_v7 }
  0xf8   :  { %v629_v10 = vpop.f32.mrf.mxu0  ;;  %v653_v11 = vpop.f32.mrf.mxu1 }
  0xf9   :  { %v630_v13 = vadd.f32 %v629_v10, %v628_v4  ;;  %v654_v14 = vadd.f32 %v653_v11, %v652_v5  ;;  %v455_v28 = vadd.f32 %v454_v22, %v440_v16 }
  0xfa   :  { %v631_v17 = vpop.f32.mrf.mxu0  ;;  %v655_v18 = vpop.f32.mrf.mxu1 }
  0xfb   :  { %v563_v20 = vpack.c.bf16 %v630_v13, %v627_v3  ;;  %v583_v21 = vpack.c.bf16 %v654_v14, %v651_v7  ;;  %v441_v23 = vmul.f32 %v630_v13, %v630_v13  ;;  %v419_v31 = vadd.f32 %v630_v13, %v418_v26 }
  0xfc   :  { %v632_v24 = vpop.f32.mrf.mxu0  ;;  %v656_v25 = vpop.f32.mrf.mxu1  ;;  %v449_v0 = vmul.f32 %v654_v14, %v654_v14 }
  0xfd   :  { %591 = vst [vmem:[%s886_s2 + $0x10] sm:$0xff] %v563_v20   ;;  %v633_v27 = vadd.f32 %v632_v24, %v631_v17  ;;  %595 = vst [vmem:[%s886_s2 + $0x30] sm:$0xff] %v583_v21   ;;  %v657_v33 = vadd.f32 %v656_v25, %v655_v18  ;;  %v456_v34 = vadd.f32 %v455_v28, %v441_v23 }
  0xfe   :  { %v634_v29 = vpop.f32.mrf.mxu0  ;;  %v658_v30 = vpop.f32.mrf.mxu1 }
  0xff   :  { %v442_v32 = vmul.f32 %v633_v27, %v633_v27  ;;  %v420_v37 = vadd.f32 %v633_v27, %v419_v31  ;;  %v450_v3 = vmul.f32 %v657_v33, %v657_v33 }
 0x100   :  { %v635_v35 = vpop.f32.mrf.mxu0  ;;  %v659_v36 = vpop.f32.mrf.mxu1 }
 0x101   :  { %v636_v39 = vadd.f32 %v635_v35, %v634_v29  ;;  %v660_v40 = vadd.f32 %v659_v36, %v658_v30  ;;  %v457_v41 = vadd.f32 %v456_v34, %v442_v32 }
 0x103   :  { %v568_v42 = vpack.c.bf16 %v636_v39, %v633_v27  ;;  %v421_v44 = vadd.f32 %v636_v39, %v420_v37  ;;  %v443_v45 = vmul.f32 %v636_v39, %v636_v39  ;;  %v588_v46 = vpack.c.bf16 %v660_v40, %v657_v33 }
 0x104   :  { %v451_v6 = vmul.f32 %v660_v40, %v660_v40 }
 0x105   :  { %592 = vst [vmem:[%s886_s2 + $0x18] sm:$0xff] %v568_v42   ;;  %v422_v48 = vadd.f32 %v833_v38, %v421_v44  ;;  %v458_v49 = vadd.f32 %v457_v41, %v443_v45  ;;  %596 = vst [vmem:[%s886_s2 + $0x38] sm:$0xff] %v588_v46   ;;  %v447_v38 = vmul.f32 %v847_v57, %v847_v57 }
 0x107   :  { %v423_v51 = vadd.f32 %v835_v43, %v422_v48  ;;  %v459_v53 = vadd.f32 %v458_v49, %v444_v47 }
 0x109   :  { %v460_v55 = vadd.f32 %v459_v53, %v445_v50  ;;  %v424_v56 = vadd.f32 %v845_v52, %v423_v51 }
 0x10b   :  { %v425_v58 = vadd.f32 %v847_v57, %v424_v56  ;;  %v461_v59 = vadd.f32 %v460_v55, %v446_v54 }
 0x10d   :  { %v426_v61 = vadd.f32 %v651_v7, %v425_v58  ;;  %v462_v62 = vadd.f32 %v461_v59, %v447_v38 }
 0x10f   :  { %v427_v63 = vadd.f32 %v654_v14, %v426_v61  ;;  %v463_v1 = vadd.f32 %v462_v62, %v448_v60 }
 0x111   :  { %v464_v43 = vadd.f32 %v463_v1, %v449_v0  ;;  %v428_v2 = vadd.f32 %v657_v33, %v427_v63 }
 0x113   :  { %v465_v4 = vadd.f32 %v464_v43, %v450_v3  ;;  %v429_v5 = vadd.f32 %v660_v40, %v428_v2 }
 0x115   :  { %v430_v8 = vrot.slane %v429_v5, 4  ;;  %v466_v52 = vadd.f32 %v465_v4, %v451_v6 }
 0x117   :  { %v431_v9 = vadd.f32 %v430_v8, %v429_v5  ;;  %v467_v10 = vrot.slane %v466_v52, 4 }
 0x119   :  { %v432_v11 = vrot.slane %v431_v9, 2  ;;  %v468_v12 = vadd.f32 %v467_v10, %v466_v52 }
 0x11b   :  { %v433_v57 = vadd.f32 %v432_v11, %v431_v9  ;;  %v469_v13 = vrot.slane %v468_v12, 2 }
 0x11d   :  { %v434_v15 = vrot.slane %v433_v57, 1  ;;  %v470_v7 = vadd.f32 %v469_v13, %v468_v12 }
 0x11f   :  { %v471_v16 = vrot.slane %v470_v7, 1  ;;  %v435_v14 = vadd.f32 %v434_v15, %v433_v57 }
 0x121   :  { %v472_v17 = vadd.f32 %v471_v16, %v470_v7 }
 0x123   :  { %v474_v18 = vsel %vm473_vm0, %v435_v14, %v472_v17 }
 0x124   :  { %v476_v19 = vsel %vm475_vm1, %v474_v18, 0.0 }
 0x125   :  { %477 = vst [vmem:[%s887_s3] sm:$0xff] %v476_v19 }

// kernel: discriminator_forward.14
= control target key start
LH: loop header
LB: loop body
LE: loop exit
PB: predicated region body
PF: predicated region fallthrough
CT: control target
= control target key end

     0   :  { %s438_s0 = inlined_call_operand.vmem [shape: bf16[128,128], index: 0, kind: input, shape index: {}, may-alias: {0,3}]   ;;  %s439_s1 = inlined_call_operand.vmem [shape: f32[1,128], index: 1, kind: input, shape index: {}]   ;;  %s440_s2 = inlined_call_operand.vmem [shape: f32[1,128], index: 2, kind: input, shape index: {}]   ;;  %s441_s3 = inlined_call_operand.vmem [shape: bf16[128,128], index: 3, kind: output, shape index: {}, may-alias: {0,3}]  }
   0x1   :  { %v243_v0 = vld [vmem:[%s438_s0] sm:$0xff]   ;;  %v314_v4 = vld [vmem:[%s438_s0 + $0x8] sm:$0xff]   ;;  %v315_v5 = vld [vmem:[%s438_s0 + $0x10] sm:$0xff]  }
   0x2   :  { %v354_v1 = vld [vmem:[%s439_s1] ss:$0 sm:$0xff]  ;;  %v244_v2 = vunpack.c.l.bf16 %v243_v0  ;;  %v245_v3 = vunpack.c.h.bf16 %v243_v0  ;;  %v316_v6 = vld [vmem:[%s438_s0 + $0x18] sm:$0xff]   ;;  %v248_v8 = vunpack.c.l.bf16 %v314_v4  ;;  %v249_v9 = vunpack.c.h.bf16 %v314_v4  ;;  %v318_v41 = vld [vmem:[%s438_s0 + $0x28] sm:$0xff]  }
   0x3   :  { %v368_v7 = vld [vmem:[%s440_s2] ss:$0 sm:$0xff]  ;;  %v252_v10 = vunpack.c.l.bf16 %v315_v5  ;;  %v253_v11 = vunpack.c.h.bf16 %v315_v5  ;;  %v256_v14 = vunpack.c.l.bf16 %v316_v6  ;;  %v257_v15 = vunpack.c.h.bf16 %v316_v6  ;;  %v319_v46 = vld [vmem:[%s438_s0 + $0x30] sm:$0xff]   ;;  %v320_v55 = vld [vmem:[%s438_s0 + $0x38] sm:$0xff]  }
   0x4   :  { %v53_v12 = vmul.f32 %v244_v2, %v354_v1  ;;  %v54_v13 = vmul.f32 %v245_v3, %v354_v1  ;;  %v55_v16 = vmul.f32 %v248_v8, %v354_v1  ;;  %v56_v17 = vmul.f32 %v249_v9, %v354_v1  ;;  %v317_v24 = vld [vmem:[%s438_s0 + $0x20] sm:$0xff]  }
   0x5   :  { %v57_v18 = vmul.f32 %v252_v10, %v354_v1  ;;  %v58_v19 = vmul.f32 %v253_v11, %v354_v1  ;;  %v59_v22 = vmul.f32 %v256_v14, %v354_v1  ;;  %v60_v23 = vmul.f32 %v257_v15, %v354_v1 }
   0x6   :  { %v76_v20 = vadd.f32 %v368_v7, %v53_v12  ;;  %v77_v21 = vadd.f32 %v368_v7, %v54_v13  ;;  %v78_v25 = vadd.f32 %v368_v7, %v55_v16  ;;  %v79_v26 = vadd.f32 %v368_v7, %v56_v17 }
   0x7   :  { %v80_v27 = vadd.f32 %v368_v7, %v57_v18  ;;  %v81_v28 = vadd.f32 %v368_v7, %v58_v19  ;;  %v82_v31 = vadd.f32 %v368_v7, %v59_v22  ;;  %v83_v32 = vadd.f32 %v368_v7, %v60_v23 }
   0x8   :  { %v92_v29 = vmul.f32 0.2, %v76_v20  ;;  %v93_v30 = vmul.f32 0.2, %v77_v21  ;;  %v94_v33 = vmul.f32 0.2, %v78_v25  ;;  %v260_v36 = vunpack.c.l.bf16 %v317_v24 }
   0x9   :  { %v95_v34 = vmul.f32 0.2, %v79_v26  ;;  %v96_v35 = vmul.f32 0.2, %v80_v27  ;;  %v97_v39 = vmul.f32 0.2, %v81_v28  ;;  %v261_v50 = vunpack.c.h.bf16 %v317_v24 }
   0xa   :  { %v108_v37 = vmax.f32 %v76_v20, %v92_v29  ;;  %v109_v38 = vmax.f32 %v77_v21, %v93_v30  ;;  %v98_v40 = vmul.f32 0.2, %v82_v31  ;;  %v110_v42 = vmax.f32 %v78_v25, %v94_v33 }
   0xb   :  { %v111_v43 = vmax.f32 %v79_v26, %v95_v34  ;;  %v112_v44 = vmax.f32 %v80_v27, %v96_v35  ;;  %v99_v45 = vmul.f32 0.2, %v83_v32  ;;  %v113_v48 = vmax.f32 %v81_v28, %v97_v39 }
   0xc   :  { %v277_v47 = vpack.c.bf16 %v109_v38, %v108_v37  ;;  %v114_v49 = vmax.f32 %v82_v31, %v98_v40  ;;  %v61_v53 = vmul.f32 %v260_v36, %v354_v1  ;;  %v264_v54 = vunpack.c.l.bf16 %v318_v41 }
   0xd   :  { %v282_v51 = vpack.c.bf16 %v111_v43, %v110_v42  ;;  %v115_v52 = vmax.f32 %v83_v32, %v99_v45  ;;  %v287_v56 = vpack.c.bf16 %v113_v48, %v112_v44  ;;  %v62_v57 = vmul.f32 %v261_v50, %v354_v1 }
   0xe   :  { %278 = vst [vmem:[%s441_s3] sm:$0xff] %v277_v47   ;;  %v265_v58 = vunpack.c.h.bf16 %v318_v41  ;;  %v268_v59 = vunpack.c.l.bf16 %v319_v46  ;;  %v84_v61 = vadd.f32 %v368_v7, %v61_v53  ;;  %v63_v62 = vmul.f32 %v264_v54, %v354_v1 }
   0xf   :  { %321 = vst [vmem:[%s441_s3 + $0x8] sm:$0xff] %v282_v51   ;;  %v292_v60 = vpack.c.bf16 %v115_v52, %v114_v49  ;;  %v269_v63 = vunpack.c.h.bf16 %v319_v46  ;;  %322 = vst [vmem:[%s441_s3 + $0x10] sm:$0xff] %v287_v56   ;;  %v85_v0 = vadd.f32 %v368_v7, %v62_v57  ;;  %v272_v4 = vunpack.c.l.bf16 %v320_v55 }
  0x10   :  { %v64_v2 = vmul.f32 %v265_v58, %v354_v1  ;;  %v65_v3 = vmul.f32 %v268_v59, %v354_v1  ;;  %v100_v5 = vmul.f32 0.2, %v84_v61  ;;  %v86_v6 = vadd.f32 %v368_v7, %v63_v62 }
  0x11   :  { %323 = vst [vmem:[%s441_s3 + $0x18] sm:$0xff] %v292_v60   ;;  %v66_v8 = vmul.f32 %v269_v63, %v354_v1  ;;  %v273_v9 = vunpack.c.h.bf16 %v320_v55  ;;  %v101_v10 = vmul.f32 0.2, %v85_v0  ;;  %v67_v13 = vmul.f32 %v272_v4, %v354_v1 }
  0x12   :  { %v87_v11 = vadd.f32 %v368_v7, %v64_v2  ;;  %v88_v12 = vadd.f32 %v368_v7, %v65_v3  ;;  %v116_v14 = vmax.f32 %v84_v61, %v100_v5  ;;  %v102_v15 = vmul.f32 0.2, %v86_v6 }
  0x13   :  { %v89_v16 = vadd.f32 %v368_v7, %v66_v8  ;;  %v68_v17 = vmul.f32 %v273_v9, %v354_v1  ;;  %v117_v18 = vmax.f32 %v85_v0, %v101_v10  ;;  %v90_v21 = vadd.f32 %v368_v7, %v67_v13 }
  0x14   :  { %v103_v19 = vmul.f32 0.2, %v87_v11  ;;  %v104_v20 = vmul.f32 0.2, %v88_v12  ;;  %v118_v22 = vmax.f32 %v86_v6, %v102_v15 }
  0x15   :  { %v105_v23 = vmul.f32 0.2, %v89_v16  ;;  %v91_v24 = vadd.f32 %v368_v7, %v68_v17  ;;  %v297_v25 = vpack.c.bf16 %v117_v18, %v116_v14  ;;  %v106_v28 = vmul.f32 0.2, %v90_v21 }
  0x16   :  { %v119_v26 = vmax.f32 %v87_v11, %v103_v19  ;;  %v120_v27 = vmax.f32 %v88_v12, %v104_v20 }
  0x17   :  { %v121_v29 = vmax.f32 %v89_v16, %v105_v23  ;;  %v107_v30 = vmul.f32 0.2, %v91_v24  ;;  %324 = vst [vmem:[%s441_s3 + $0x20] sm:$0xff] %v297_v25   ;;  %v122_v31 = vmax.f32 %v90_v21, %v106_v28 }
  0x18   :  { %v302_v1 = vpack.c.bf16 %v119_v26, %v118_v22 }
  0x19   :  { %v307_v32 = vpack.c.bf16 %v121_v29, %v120_v27  ;;  %v123_v33 = vmax.f32 %v91_v24, %v107_v30 }
  0x1a   :  { %325 = vst [vmem:[%s441_s3 + $0x28] sm:$0xff] %v302_v1  }
  0x1b   :  { %326 = vst [vmem:[%s441_s3 + $0x30] sm:$0xff] %v307_v32   ;;  %v312_v7 = vpack.c.bf16 %v123_v33, %v122_v31 }
  0x1d   :  { %327 = vst [vmem:[%s441_s3 + $0x38] sm:$0xff] %v312_v7  }

// kernel: discriminator_forward.15
= control target key start
LH: loop header
LB: loop body
LE: loop exit
PB: predicated region body
PF: predicated region fallthrough
CT: control target
= control target key end

     0   :  { %vm458_vm0 = vcmask 1040384   ;;  %vm460_vm1 = vcmask 1041408   ;;  %s779_s1 = inlined_call_operand.vmem [shape: bf16[512,128], index: 1, kind: input, shape index: {}]   ;;  %s780_s0 = inlined_call_operand.vmem [shape: bf16[32,512], index: 0, kind: input, shape index: {}]   ;;  %s781_s2 = inlined_call_operand.vmem [shape: bf16[32,128], index: 2, kind: output, shape index: {0}]   ;;  %s782_s3 = inlined_call_operand.vmem [shape: f32[8,128], index: 3, kind: output, shape index: {1}]  }
   0x1   :  { %v586_v0 = vld [vmem:[%s779_s1 + $0x78] sm:$0xff]   ;;  %v590_v4 = vld [vmem:[%s779_s1 + $0x70] sm:$0xff]   ;;  %v594_v8 = vld [vmem:[%s779_s1 + $0x68] sm:$0xff]  }
   0x2   :  { %v587_v1 = vld [vmem:[%s779_s1 + $0xf8] sm:$0xff]   ;;  %530 = vmatprep.subr.bf16.mxu0 %v586_v0  ;;  %v591_v5 = vld [vmem:[%s779_s1 + $0xf0] sm:$0xff]   ;;  %v595_v9 = vld [vmem:[%s779_s1 + $0xe8] sm:$0xff]  }
   0x3   :  { %v588_v2 = vld [vmem:[%s779_s1 + $0x38] sm:$0xff]   ;;  %558 = vmatprep.subr.bf16.mxu1 %v587_v1  ;;  %v592_v6 = vld [vmem:[%s779_s1 + $0x30] sm:$0xff]   ;;  %v596_v10 = vld [vmem:[%s779_s1 + $0x28] sm:$0xff]  }
   0x4   :  { %v589_v3 = vld [vmem:[%s779_s1 + $0xb8] sm:$0xff]   ;;  %531 = vmatpush3.bf16.msra.mxu0 %v588_v2  ;;  %v593_v7 = vld [vmem:[%s779_s1 + $0xb0] sm:$0xff]   ;;  %v597_v11 = vld [vmem:[%s779_s1 + $0xa8] sm:$0xff]  }
   0x5   :  { %559 = vmatpush3.bf16.msra.mxu1 %v589_v3  ;;  %532 = vmatprep.subr.bf16.mxu0 %v590_v4  ;;  %v598_v12 = vld [vmem:[%s779_s1 + $0x60] sm:$0xff]   ;;  %v602_v16 = vld [vmem:[%s779_s1 + $0x58] sm:$0xff]   ;;  %v606_v20 = vld [vmem:[%s779_s1 + $0x50] sm:$0xff]  }
   0x6   :  { %560 = vmatprep.subr.bf16.mxu1 %v591_v5  ;;  %v599_v13 = vld [vmem:[%s779_s1 + $0xe0] sm:$0xff]   ;;  %v603_v17 = vld [vmem:[%s779_s1 + $0xd8] sm:$0xff]   ;;  %v607_v21 = vld [vmem:[%s779_s1 + $0xd0] sm:$0xff]  }
   0x7   :  { %v600_v14 = vld [vmem:[%s779_s1 + $0x20] sm:$0xff]   ;;  %v604_v18 = vld [vmem:[%s779_s1 + $0x18] sm:$0xff]   ;;  %v608_v22 = vld [vmem:[%s779_s1 + $0x10] sm:$0xff]  }
   0x8   :  { %533 = vmatpush3.bf16.msra.mxu0 %v592_v6  ;;  %v601_v15 = vld [vmem:[%s779_s1 + $0xa0] sm:$0xff]   ;;  %v605_v19 = vld [vmem:[%s779_s1 + $0x98] sm:$0xff]   ;;  %v609_v23 = vld [vmem:[%s779_s1 + $0x90] sm:$0xff]  }
   0x9   :  { %561 = vmatpush3.bf16.msra.mxu1 %v593_v7  ;;  %534 = vmatprep.subr.bf16.mxu0 %v594_v8  ;;  %v610_v24 = vld [vmem:[%s779_s1 + $0x48] sm:$0xff]   ;;  %v614_v28 = vld [vmem:[%s779_s1 + $0x40] sm:$0xff]  }
   0xa   :  { %562 = vmatprep.subr.bf16.mxu1 %v595_v9  ;;  %v611_v25 = vld [vmem:[%s779_s1 + $0xc8] sm:$0xff]   ;;  %v615_v29 = vld [vmem:[%s779_s1 + $0xc0] sm:$0xff]  }
   0xb   :  { %v612_v26 = vld [vmem:[%s779_s1 + $0x8] sm:$0xff]   ;;  %v616_v30 = vld [vmem:[%s779_s1] sm:$0xff]  }
   0xc   :  { %535 = vmatpush3.bf16.msra.mxu0 %v596_v10  ;;  %v613_v27 = vld [vmem:[%s779_s1 + $0x88] sm:$0xff]   ;;  %v617_v31 = vld [vmem:[%s779_s1 + $0x80] sm:$0xff]  }
   0xd   :  { %563 = vmatpush3.bf16.msra.mxu1 %v597_v11  ;;  %536 = vmatprep.subr.bf16.mxu0 %v598_v12  ;;  %v618_v32 = vld [vmem:[%s780_s0] ss:$16 sps:$4 sm:$0xff]   ;;  %v620_v33 = vld [vmem:[%s780_s0 + $0x4] ss:$16 sps:$4 sm:$0xff]   ;;  %v621_v34 = vld [vmem:[%s780_s0 + $0x8] ss:$16 sps:$4 sm:$0xff]  }
   0xe   :  { %564 = vmatprep.subr.bf16.mxu1 %v599_v13  ;;  %v623_v35 = vld [vmem:[%s780_s0 + $0xc] ss:$16 sps:$4 sm:$0xff]   ;;  %350 = vmatprep.mubr.bf16.mxu0 %v620_v33  ;;  %v624_v36 = vld [vmem:[%s780_s0 + $0x24] ss:$16 sps:$4 sm:$0xff]   ;;  %v628_v38 = vld [vmem:[%s780_s0 + $0x20] ss:$16 sps:$4 sm:$0xff]  }
   0xf   :  { %399 = vmatprep.mubr.bf16.mxu1 %v623_v35  ;;  %v626_v37 = vld [vmem:[%s780_s0 + $0x2c] ss:$16 sps:$4 sm:$0xff]   ;;  %v629_v39 = vld [vmem:[%s780_s0 + $0x28] ss:$16 sps:$4 sm:$0xff]  }
  0x10   :  { %537 = vmatpush3.bf16.msra.mxu0 %v600_v14 }
  0x11   :  { %565 = vmatpush3.bf16.msra.mxu1 %v601_v15  ;;  %538 = vmatprep.subr.bf16.mxu0 %v602_v16 }
  0x12   :  { %566 = vmatprep.subr.bf16.mxu1 %v603_v17 }
  0x14   :  { %539 = vmatpush3.bf16.msra.mxu0 %v604_v18 }
  0x15   :  { %567 = vmatpush3.bf16.msra.mxu1 %v605_v19  ;;  %540 = vmatprep.subr.bf16.mxu0 %v606_v20 }
  0x16   :  { %568 = vmatprep.subr.bf16.mxu1 %v607_v21 }
  0x18   :  { %541 = vmatpush3.bf16.msra.mxu0 %v608_v22 }
  0x19   :  { %569 = vmatpush3.bf16.msra.mxu1 %v609_v23  ;;  %542 = vmatprep.subr.bf16.mxu0 %v610_v24 }
  0x1a   :  { %570 = vmatprep.subr.bf16.mxu1 %v611_v25 }
  0x1c   :  { %543 = vmatpush3.bf16.msra.mxu0 %v612_v26 }
  0x1d   :  { %571 = vmatpush3.bf16.msra.mxu1 %v613_v27  ;;  %544 = vmatprep.subr.bf16.mxu0 %v614_v28 }
  0x1e   :  { %572 = vmatprep.subr.bf16.mxu1 %v615_v29 }
  0x20   :  { %545 = vmatpush3.bf16.msra.mxu0 %v616_v30 }
  0x21   :  { %573 = vmatpush3.bf16.msra.mxu1 %v617_v31 }
  0x23   :  { %351 = vmatmul.mubr.bf16.vlgmr.msra.gmra.mxu0 %v618_v32 }
  0x24   :  { %400 = vmatmul.mubr.bf16.vlgmr.msra.gmra.mxu1 %v621_v34  ;;  %358 = vmatprep.mubr.bf16.mxu0 %v624_v36 }
  0x25   :  { %407 = vmatprep.mubr.bf16.mxu1 %v626_v37 }
  0x2b   :  { %359 = vmatmul.mubr.bf16.gmra.mxu0 %v628_v38 }
  0x2c   :  { %408 = vmatmul.mubr.bf16.gmra.mxu1 %v629_v39 }
  0xe3   :  { %v546_v40 = vpop.f32.mrf.mxu0 }
  0xe4   :  { %v574_v41 = vpop.f32.mrf.mxu1 }
  0xe5   :  { %v547_v42 = vpop.f32.mrf.mxu0 }
  0xe6   :  { %v575_v43 = vpop.f32.mrf.mxu1  ;;  %v548_v46 = vadd.f32 %v547_v42, %v546_v40 }
  0xe7   :  { %v549_v44 = vpop.f32.mrf.mxu0  ;;  %v576_v47 = vadd.f32 %v575_v43, %v574_v41 }
  0xe8   :  { %v577_v45 = vpop.f32.mrf.mxu1 }
  0xe9   :  { %v550_v48 = vpop.f32.mrf.mxu0  ;;  %v402_v54 = vadd.f32 %v576_v47, %v548_v46 }
  0xea   :  { %v551_v49 = vadd.f32 %v550_v48, %v549_v44  ;;  %v578_v50 = vpop.f32.mrf.mxu1 }
  0xeb   :  { %v579_v51 = vadd.f32 %v578_v50, %v577_v45  ;;  %v552_v52 = vpop.f32.mrf.mxu0  ;;  %v445_v4 = vmul.f32 %v402_v54, %v402_v54 }
  0xec   :  { %v580_v53 = vpop.f32.mrf.mxu1 }
  0xed   :  { %v405_v55 = vadd.f32 %v579_v51, %v551_v49  ;;  %v553_v56 = vpop.f32.mrf.mxu0 }
  0xee   :  { %v554_v57 = vadd.f32 %v553_v56, %v552_v52  ;;  %v581_v58 = vpop.f32.mrf.mxu1 }
  0xef   :  { %v522_v59 = vpack.c.bf16 %v405_v55, %v402_v54  ;;  %v582_v60 = vadd.f32 %v581_v58, %v580_v53  ;;  %v555_v61 = vpop.f32.mrf.mxu0  ;;  %v446_v63 = vmul.f32 %v405_v55, %v405_v55  ;;  %v436_v5 = vadd.f32 %v405_v55, %v402_v54 }
  0xf0   :  { %v583_v62 = vpop.f32.mrf.mxu1 }
  0xf1   :  { %523 = vst [vmem:[%s781_s2] sm:$0xff] %v522_v59   ;;  %v410_v0 = vadd.f32 %v582_v60, %v554_v57  ;;  %v556_v1 = vpop.f32.mrf.mxu0  ;;  %v449_v8 = vadd.f32 %v446_v63, %v445_v4 }
  0xf2   :  { %v557_v2 = vadd.f32 %v556_v1, %v555_v61  ;;  %v584_v3 = vpop.f32.mrf.mxu1 }
  0xf3   :  { %v447_v6 = vmul.f32 %v410_v0, %v410_v0  ;;  %v585_v7 = vadd.f32 %v584_v3, %v583_v62  ;;  %v437_v9 = vadd.f32 %v436_v5, %v410_v0 }
  0xf5   :  { %v413_v10 = vadd.f32 %v585_v7, %v557_v2  ;;  %v450_v11 = vadd.f32 %v449_v8, %v447_v6 }
  0xf7   :  { %v527_v12 = vpack.c.bf16 %v413_v10, %v410_v0  ;;  %v438_v13 = vadd.f32 %v437_v9, %v413_v10  ;;  %v448_v14 = vmul.f32 %v413_v10, %v413_v10 }
  0xf9   :  { %529 = vst [vmem:[%s781_s2 + $0x8] sm:$0xff] %v527_v12   ;;  %v439_v15 = vrot.slane %v438_v13, 4  ;;  %v451_v16 = vadd.f32 %v450_v11, %v448_v14 }
  0xfb   :  { %v440_v17 = vadd.f32 %v439_v15, %v438_v13  ;;  %v452_v18 = vrot.slane %v451_v16, 4 }
  0xfd   :  { %v441_v19 = vrot.slane %v440_v17, 2  ;;  %v453_v20 = vadd.f32 %v452_v18, %v451_v16 }
  0xff   :  { %v442_v21 = vadd.f32 %v441_v19, %v440_v17  ;;  %v454_v22 = vrot.slane %v453_v20, 2 }
 0x101   :  { %v443_v23 = vrot.slane %v442_v21, 1  ;;  %v455_v24 = vadd.f32 %v454_v22, %v453_v20 }
 0x103   :  { %v456_v25 = vrot.slane %v455_v24, 1  ;;  %v444_v26 = vadd.f32 %v443_v23, %v442_v21 }
 0x105   :  { %v457_v27 = vadd.f32 %v456_v25, %v455_v24 }
 0x107   :  { %v459_v28 = vsel %vm458_vm0, %v444_v26, %v457_v27 }
 0x108   :  { %v461_v29 = vsel %vm460_vm1, %v459_v28, 0.0 }
 0x109   :  { %462 = vst [vmem:[%s782_s3] sm:$0xff] %v461_v29 }

// kernel: discriminator_forward.16
= control target key start
LH: loop header
LB: loop body
LE: loop exit
PB: predicated region body
PF: predicated region fallthrough
CT: control target
= control target key end

     0   :  { %s144_s0 = inlined_call_operand.vmem [shape: bf16[32,128], index: 0, kind: input, shape index: {}, may-alias: {0,3}]   ;;  %s145_s1 = inlined_call_operand.vmem [shape: f32[1,128], index: 1, kind: input, shape index: {}]   ;;  %s146_s2 = inlined_call_operand.vmem [shape: f32[1,128], index: 2, kind: input, shape index: {}]   ;;  %s147_s3 = inlined_call_operand.vmem [shape: bf16[32,128], index: 3, kind: output, shape index: {}, may-alias: {0,3}]  }
   0x1   :  { %v87_v0 = vld [vmem:[%s144_s0] sm:$0xff]   ;;  %v104_v4 = vld [vmem:[%s144_s0 + $0x8] sm:$0xff]  }
   0x2   :  { %v76_v1 = vld [vmem:[%s145_s1] ss:$0 sm:$0xff]  ;;  %v88_v2 = vunpack.c.l.bf16 %v87_v0  ;;  %v89_v3 = vunpack.c.h.bf16 %v87_v0  ;;  %v92_v6 = vunpack.c.l.bf16 %v104_v4  ;;  %v93_v7 = vunpack.c.h.bf16 %v104_v4 }
   0x3   :  { %v77_v5 = vld [vmem:[%s146_s2] ss:$0 sm:$0xff] }
   0x4   :  { %v29_v8 = vmul.f32 %v88_v2, %v76_v1  ;;  %v30_v9 = vmul.f32 %v89_v3, %v76_v1  ;;  %v31_v10 = vmul.f32 %v92_v6, %v76_v1  ;;  %v32_v11 = vmul.f32 %v93_v7, %v76_v1 }
   0x6   :  { %v40_v12 = vadd.f32 %v77_v5, %v29_v8  ;;  %v41_v13 = vadd.f32 %v77_v5, %v30_v9  ;;  %v42_v14 = vadd.f32 %v77_v5, %v31_v10  ;;  %v43_v15 = vadd.f32 %v77_v5, %v32_v11 }
   0x8   :  { %v44_v16 = vmul.f32 0.2, %v40_v12  ;;  %v45_v17 = vmul.f32 0.2, %v41_v13  ;;  %v46_v18 = vmul.f32 0.2, %v42_v14 }
   0x9   :  { %v47_v19 = vmul.f32 0.2, %v43_v15 }
   0xa   :  { %v48_v20 = vmax.f32 %v40_v12, %v44_v16  ;;  %v49_v21 = vmax.f32 %v41_v13, %v45_v17  ;;  %v50_v22 = vmax.f32 %v42_v14, %v46_v18 }
   0xb   :  { %v51_v23 = vmax.f32 %v43_v15, %v47_v19 }
   0xc   :  { %v97_v24 = vpack.c.bf16 %v49_v21, %v48_v20 }
   0xd   :  { %v102_v25 = vpack.c.bf16 %v51_v23, %v50_v22 }
   0xe   :  { %98 = vst [vmem:[%s147_s3] sm:$0xff] %v97_v24  }
   0xf   :  { %105 = vst [vmem:[%s147_s3 + $0x8] sm:$0xff] %v102_v25  }

// kernel: discriminator_forward.17
= control target key start
LH: loop header
LB: loop body
LE: loop exit
PB: predicated region body
PF: predicated region fallthrough
CT: control target
= control target key end

     0   :  { %v977_v22 = vmov 1966171168   ;;  %v146_v24 = vlaneseq  ;;  %s1204_s1 = inlined_call_operand.vmem [shape: bf16[1024,128], index: 1, kind: input, shape index: {}]   ;;  %s1205_s0 = inlined_call_operand.vmem [shape: bf16[2,1024], index: 0, kind: input, shape index: {}]   ;;  %s1206_s2 = inlined_call_operand.vmem [shape: f32[2,128], index: 2, kind: output, shape index: {}]  }
   0x1   :  { %v908_v0 = vld [vmem:[%s1204_s1 + $0x78] sm:$0xff]   ;;  %v912_v4 = vld [vmem:[%s1204_s1 + $0x70] sm:$0xff]   ;;  %v916_v8 = vld [vmem:[%s1204_s1 + $0x68] sm:$0xff]   ;;  %v144_v23 = vunpack.c.l.s4 %v977_v22 }
   0x2   :  { %v909_v1 = vld [vmem:[%s1204_s1 + $0xf8] sm:$0xff]   ;;  %819 = vmatprep.subr.bf16.mxu0 %v908_v0  ;;  %v913_v5 = vld [vmem:[%s1204_s1 + $0xf0] sm:$0xff]   ;;  %v917_v9 = vld [vmem:[%s1204_s1 + $0xe8] sm:$0xff]   ;;  %v147_v30 = vshrl.u32 %v146_v24, 7 }
   0x3   :  { %v910_v2 = vld [vmem:[%s1204_s1 + $0x38] sm:$0xff]   ;;  %841 = vmatprep.subr.bf16.mxu1 %v909_v1  ;;  %v914_v6 = vld [vmem:[%s1204_s1 + $0x30] sm:$0xff]   ;;  %v918_v10 = vld [vmem:[%s1204_s1 + $0x28] sm:$0xff]   ;;  %v145_v29 = vunpack.c.0.s8 %v144_v23 }
   0x4   :  { %v911_v3 = vld [vmem:[%s1204_s1 + $0xb8] sm:$0xff]   ;;  %820 = vmatpush3.bf16.msra.mxu0 %v910_v2  ;;  %v915_v7 = vld [vmem:[%s1204_s1 + $0xb0] sm:$0xff]   ;;  %v919_v11 = vld [vmem:[%s1204_s1 + $0xa8] sm:$0xff]  }
   0x5   :  { %842 = vmatpush3.bf16.msra.mxu1 %v911_v3  ;;  %821 = vmatprep.subr.bf16.mxu0 %v912_v4  ;;  %v920_v12 = vld [vmem:[%s1204_s1 + $0x60] sm:$0xff]   ;;  %v924_v16 = vld [vmem:[%s1204_s1 + $0x58] sm:$0xff]   ;;  %v928_v20 = vld [vmem:[%s1204_s1 + $0x50] sm:$0xff]   ;;  %v1083_v35 = vsub.s32 %v145_v29, %v147_v30 }
   0x6   :  { %843 = vmatprep.subr.bf16.mxu1 %v913_v5  ;;  %v921_v13 = vld [vmem:[%s1204_s1 + $0xe0] sm:$0xff]   ;;  %v925_v17 = vld [vmem:[%s1204_s1 + $0xd8] sm:$0xff]   ;;  %v929_v21 = vld [vmem:[%s1204_s1 + $0xd0] sm:$0xff]  }
   0x7   :  { %v922_v14 = vld [vmem:[%s1204_s1 + $0x20] sm:$0xff]   ;;  %v926_v18 = vld [vmem:[%s1204_s1 + $0x18] sm:$0xff]   ;;  %v930_v25 = vld [vmem:[%s1204_s1 + $0x10] sm:$0xff]  }
   0x8   :  { %822 = vmatpush3.bf16.msra.mxu0 %v914_v6  ;;  %v923_v15 = vld [vmem:[%s1204_s1 + $0xa0] sm:$0xff]   ;;  %v927_v19 = vld [vmem:[%s1204_s1 + $0x98] sm:$0xff]   ;;  %v931_v26 = vld [vmem:[%s1204_s1 + $0x90] sm:$0xff]  }
   0x9   :  { %844 = vmatpush3.bf16.msra.mxu1 %v915_v7  ;;  %823 = vmatprep.subr.bf16.mxu0 %v916_v8  ;;  %v932_v27 = vld [vmem:[%s1204_s1 + $0x48] sm:$0xff]   ;;  %v936_v33 = vld [vmem:[%s1204_s1 + $0x40] sm:$0xff]   ;;  %v941_v41 = vld [vmem:[%s1204_s1 + $0x178] sm:$0xff]  }
   0xa   :  { %845 = vmatprep.subr.bf16.mxu1 %v917_v9  ;;  %v933_v28 = vld [vmem:[%s1204_s1 + $0xc8] sm:$0xff]   ;;  %v937_v34 = vld [vmem:[%s1204_s1 + $0xc0] sm:$0xff]   ;;  %v942_v42 = vld [vmem:[%s1204_s1 + $0x1f8] sm:$0xff]  }
   0xb   :  { %v934_v31 = vld [vmem:[%s1204_s1 + $0x8] sm:$0xff]   ;;  %v938_v36 = vld [vmem:[%s1204_s1] sm:$0xff]   ;;  %v943_v47 = vld [vmem:[%s1204_s1 + $0x138] sm:$0xff]  }
   0xc   :  { %824 = vmatpush3.bf16.msra.mxu0 %v918_v10  ;;  %v935_v32 = vld [vmem:[%s1204_s1 + $0x88] sm:$0xff]   ;;  %v939_v37 = vld [vmem:[%s1204_s1 + $0x80] sm:$0xff]   ;;  %v945_v50 = vld [vmem:[%s1204_s1 + $0x170] sm:$0xff]  }
   0xd   :  { %846 = vmatpush3.bf16.msra.mxu1 %v919_v11  ;;  %825 = vmatprep.subr.bf16.mxu0 %v920_v12  ;;  %v12_v38 = vld [vmem:[%s1205_s0] sm:$0xff]  ;;  %v944_v52 = vld [vmem:[%s1204_s1 + $0x1b8] sm:$0xff]   ;;  %v946_v54 = vld [vmem:[%s1204_s1 + $0x1f0] sm:$0xff]  }
   0xe   :  { %847 = vmatprep.subr.bf16.mxu1 %v921_v13  ;;  %v142_v39 = vcombine.high %v12_v38, %v12_v38  ;;  %v149_v40 = vrot.slane %v12_v38, %v1083_v35  ;;  %v947_v55 = vld [vmem:[%s1204_s1 + $0x130] sm:$0xff]   ;;  %v949_v57 = vld [vmem:[%s1204_s1 + $0x168] sm:$0xff]   ;;  %v953_v61 = vld [vmem:[%s1204_s1 + $0x160] sm:$0xff]  }
   0xf   :  { %v948_v58 = vld [vmem:[%s1204_s1 + $0x1b0] sm:$0xff]   ;;  %v950_v59 = vld [vmem:[%s1204_s1 + $0x1e8] sm:$0xff]   ;;  %v954_v63 = vld [vmem:[%s1204_s1 + $0x1e0] sm:$0xff]  }
  0x10   :  { %826 = vmatpush3.bf16.msra.mxu0 %v922_v14  ;;  %v157_v43 = vcombine.high %v149_v40, %v149_v40  ;;  %v165_v44 = vrot.slane %v149_v40, %v1083_v35  ;;  %v1103_v45 = vrot.slane %v142_v39, %v1083_v35  ;;  %v951_v60 = vld [vmem:[%s1204_s1 + $0x128] sm:$0xff]   ;;  %v955_v0 = vld [vmem:[%s1204_s1 + $0x120] sm:$0xff]   ;;  %v957_v1 = vld [vmem:[%s1204_s1 + $0x158] sm:$0xff]  }
  0x11   :  { %848 = vmatpush3.bf16.msra.mxu1 %v923_v15  ;;  %827 = vmatprep.subr.bf16.mxu0 %v924_v16  ;;  %v952_v62 = vld [vmem:[%s1204_s1 + $0x1a8] sm:$0xff]   ;;  %v956_v2 = vld [vmem:[%s1204_s1 + $0x1a0] sm:$0xff]   ;;  %v958_v3 = vld [vmem:[%s1204_s1 + $0x1d8] sm:$0xff]  }
  0x12   :  { %849 = vmatprep.subr.bf16.mxu1 %v925_v17  ;;  %v179_v46 = vrot.slane %v157_v43, %v1083_v35  ;;  %v158_v48 = vcombine.high %v1103_v45, %v1103_v45  ;;  %v187_v49 = vcombine.high %v165_v44, %v165_v44  ;;  %v959_v4 = vld [vmem:[%s1204_s1 + $0x118] sm:$0xff]   ;;  %v961_v5 = vld [vmem:[%s1204_s1 + $0x150] sm:$0xff]   ;;  %v965_v9 = vld [vmem:[%s1204_s1 + $0x148] sm:$0xff]   ;;  %v172_v17 = vrot.slane %v1103_v45, %v1083_v35 }
  0x13   :  { %v960_v6 = vld [vmem:[%s1204_s1 + $0x198] sm:$0xff]   ;;  %v962_v7 = vld [vmem:[%s1204_s1 + $0x1d0] sm:$0xff]   ;;  %v966_v11 = vld [vmem:[%s1204_s1 + $0x1c8] sm:$0xff]  }
  0x14   :  { %828 = vmatpush3.bf16.msra.mxu0 %v926_v18  ;;  %615 = vmatprep.mubr.bf16.mxu0 %v179_v46  ;;  %v189_v51 = vcombine.high %v179_v46, %v179_v46  ;;  %v186_v53 = vrot.slane %v158_v48, %v1083_v35  ;;  %v963_v8 = vld [vmem:[%s1204_s1 + $0x110] sm:$0xff]   ;;  %v967_v12 = vld [vmem:[%s1204_s1 + $0x108] sm:$0xff]   ;;  %v969_v13 = vld [vmem:[%s1204_s1 + $0x140] sm:$0xff]  }
  0x15   :  { %850 = vmatpush3.bf16.msra.mxu1 %v927_v19  ;;  %829 = vmatprep.subr.bf16.mxu0 %v928_v20  ;;  %v964_v10 = vld [vmem:[%s1204_s1 + $0x190] sm:$0xff]   ;;  %v968_v14 = vld [vmem:[%s1204_s1 + $0x188] sm:$0xff]   ;;  %v970_v15 = vld [vmem:[%s1204_s1 + $0x1c0] sm:$0xff]   ;;  %v188_v19 = vcombine.high %v172_v17, %v172_v17 }
  0x16   :  { %851 = vmatprep.subr.bf16.mxu1 %v929_v21  ;;  %655 = vmatprep.mubr.bf16.mxu1 %v189_v51  ;;  %v190_v56 = vcombine.high %v186_v53, %v186_v53  ;;  %v971_v16 = vld [vmem:[%s1204_s1 + $0x100] sm:$0xff]  }
  0x17   :  { %v972_v18 = vld [vmem:[%s1204_s1 + $0x180] sm:$0xff]  }
  0x18   :  { %830 = vmatpush3.bf16.msra.mxu0 %v930_v25 }
  0x19   :  { %852 = vmatpush3.bf16.msra.mxu1 %v931_v26  ;;  %831 = vmatprep.subr.bf16.mxu0 %v932_v27 }
  0x1a   :  { %853 = vmatprep.subr.bf16.mxu1 %v933_v28 }
  0x1c   :  { %832 = vmatpush3.bf16.msra.mxu0 %v934_v31 }
  0x1d   :  { %854 = vmatpush3.bf16.msra.mxu1 %v935_v32  ;;  %833 = vmatprep.subr.bf16.mxu0 %v936_v33 }
  0x1e   :  { %855 = vmatprep.subr.bf16.mxu1 %v937_v34 }
  0x20   :  { %834 = vmatpush3.bf16.msra.mxu0 %v938_v36 }
  0x21   :  { %856 = vmatpush3.bf16.msra.mxu1 %v939_v37  ;;  %863 = vmatprep.subr.bf16.mxu0 %v941_v41 }
  0x22   :  { %885 = vmatprep.subr.bf16.mxu1 %v942_v42 }
  0x23   :  { %616 = vmatmul.mubr.bf16.vlgmr.msra.gmra.mxu0 %v165_v44 }
  0x24   :  { %864 = vmatpush3.bf16.msra.mxu0 %v943_v47  ;;  %656 = vmatmul.mubr.bf16.vlgmr.msra.gmra.mxu1 %v187_v49 }
  0x25   :  { %865 = vmatprep.subr.bf16.mxu0 %v945_v50  ;;  %886 = vmatpush3.bf16.msra.mxu1 %v944_v52 }
  0x26   :  { %695 = vmatprep.mubr.bf16.mxu0 %v186_v53  ;;  %887 = vmatprep.subr.bf16.mxu1 %v946_v54 }
  0x27   :  { %735 = vmatprep.mubr.bf16.mxu1 %v190_v56 }
  0x28   :  { %866 = vmatpush3.bf16.msra.mxu0 %v947_v55 }
  0x29   :  { %867 = vmatprep.subr.bf16.mxu0 %v949_v57  ;;  %888 = vmatpush3.bf16.msra.mxu1 %v948_v58 }
  0x2a   :  { %889 = vmatprep.subr.bf16.mxu1 %v950_v59 }
  0x2c   :  { %868 = vmatpush3.bf16.msra.mxu0 %v951_v60 }
  0x2d   :  { %869 = vmatprep.subr.bf16.mxu0 %v953_v61  ;;  %890 = vmatpush3.bf16.msra.mxu1 %v952_v62 }
  0x2e   :  { %891 = vmatprep.subr.bf16.mxu1 %v954_v63 }
  0x30   :  { %870 = vmatpush3.bf16.msra.mxu0 %v955_v0 }
  0x31   :  { %871 = vmatprep.subr.bf16.mxu0 %v957_v1  ;;  %892 = vmatpush3.bf16.msra.mxu1 %v956_v2 }
  0x32   :  { %893 = vmatprep.subr.bf16.mxu1 %v958_v3 }
  0x34   :  { %872 = vmatpush3.bf16.msra.mxu0 %v959_v4 }
  0x35   :  { %873 = vmatprep.subr.bf16.mxu0 %v961_v5  ;;  %894 = vmatpush3.bf16.msra.mxu1 %v960_v6 }
  0x36   :  { %895 = vmatprep.subr.bf16.mxu1 %v962_v7 }
  0x38   :  { %874 = vmatpush3.bf16.msra.mxu0 %v963_v8 }
  0x39   :  { %875 = vmatprep.subr.bf16.mxu0 %v965_v9  ;;  %896 = vmatpush3.bf16.msra.mxu1 %v964_v10 }
  0x3a   :  { %897 = vmatprep.subr.bf16.mxu1 %v966_v11 }
  0x3c   :  { %876 = vmatpush3.bf16.msra.mxu0 %v967_v12 }
  0x3d   :  { %877 = vmatprep.subr.bf16.mxu0 %v969_v13  ;;  %898 = vmatpush3.bf16.msra.mxu1 %v968_v14 }
  0x3e   :  { %899 = vmatprep.subr.bf16.mxu1 %v970_v15 }
  0x40   :  { %878 = vmatpush3.bf16.msra.mxu0 %v971_v16 }
  0x41   :  { %900 = vmatpush3.bf16.msra.mxu1 %v972_v18 }
  0x43   :  { %696 = vmatmul.mubr.bf16.vlgmr.msra.gmra.mxu0 %v172_v17 }
  0x44   :  { %736 = vmatmul.mubr.bf16.vlgmr.msra.gmra.mxu1 %v188_v19 }
  0xe3   :  { %v835_v20 = vpop.f32.mrf.mxu0 }
  0xe4   :  { %v857_v21 = vpop.f32.mrf.mxu1 }
  0xe5   :  { %v836_v22 = vpop.f32.mrf.mxu0 }
  0xe6   :  { %v858_v23 = vpop.f32.mrf.mxu1  ;;  %v837_v28 = vadd.f32 %v836_v22, %v835_v20 }
  0xe7   :  { %v838_v24 = vpop.f32.mrf.mxu0  ;;  %v859_v29 = vadd.f32 %v858_v23, %v857_v21 }
  0xe8   :  { %v860_v25 = vpop.f32.mrf.mxu1 }
  0xe9   :  { %v839_v26 = vpop.f32.mrf.mxu0  ;;  %v658_v33 = vadd.f32 %v859_v29, %v837_v28 }
  0xea   :  { %v861_v27 = vpop.f32.mrf.mxu1 }
 0x103   :  { %v879_v30 = vpop.f32.mrf.mxu0 }
 0x104   :  { %v901_v31 = vpop.f32.mrf.mxu1 }
 0x105   :  { %v880_v32 = vpop.f32.mrf.mxu0 }
 0x106   :  { %v881_v34 = vadd.f32 %v880_v32, %v879_v30  ;;  %v902_v35 = vpop.f32.mrf.mxu1 }
 0x107   :  { %v882_v36 = vpop.f32.mrf.mxu0  ;;  %v903_v38 = vadd.f32 %v902_v35, %v901_v31 }
 0x108   :  { %v698_v37 = vadd.f32 %v881_v34, %v658_v33  ;;  %v904_v39 = vpop.f32.mrf.mxu1 }
 0x109   :  { %v883_v40 = vpop.f32.mrf.mxu0 }
 0x10a   :  { %v738_v41 = vadd.f32 %v903_v38, %v698_v37  ;;  %v905_v42 = vpop.f32.mrf.mxu1 }
 0x10c   :  { %v818_v43 = vmul.f32 -1.442695, %v738_v41 }
 0x10e   :  { %973 = vpow2.f32 %v818_v43 }
 0x11b   :  { %v974_v44 = vpop.eup %973 }
 0x11c   :  { %v746_v45 = vadd.f32 1.0, %v974_v44 }
 0x11e   :  { %975 = vrcp.f32 %v746_v45 }
 0x12b   :  { %v976_v46 = vpop.eup %975 }
 0x12c   :  { %749 = vst [vmem:[%s1206_s2] sm:$0x3] %v976_v46 }

</bundles_post_ra>
